<compile_context>
chip_gen: v7x
topology: tpu7x:2x2x1
jax: 0.10.0
libtpu: 0.0.40
codegen_flags: <defaults>
</compile_context>

<pallas_src>
import jax
import jax.numpy as jnp
from jax.experimental import pallas as pl
from jax.experimental.pallas import tpu as pltpu


# ----------------------------- static geometry ------------------------------
# stage 1: 28x28 input, zero-padded to 30x30, flattened to 900 lanes.
H1, W1 = 28, 28
Hp1, Wp1 = H1 + 2, W1 + 2            # 30, 30
NP1 = Hp1 * Wp1                      # 900
CS1 = Wp1 + 1                        # 31   first interior padded coord
CL1 = NP1 - 2 * CS1                  # 838  contiguous range covering interior
ML1 = CL1 - (Wp1 + 1)                # 807  pool-window top-left range

# stage 2: 14x14 pooled map, zero-padded to 16x16, flattened to 256 lanes.
H2, W2 = 14, 14
Hp2, Wp2 = H2 + 2, W2 + 2            # 16, 16
NP2 = Hp2 * Wp2                      # 256
CS2 = Wp2 + 1                        # 17
CL2 = NP2 - 2 * CS2                  # 222
ML2 = CL2 - (Wp2 + 1)                # 205

# 3x3 tap offsets in padded-flattened coordinates (ky-major, kx-minor order;
# must match the weight reshapes in prepare_params).
OFFS1 = tuple(dy * Wp1 + dx for dy in (-1, 0, 1) for dx in (-1, 0, 1))
OFFS2 = tuple(dy * Wp2 + dx for dy in (-1, 0, 1) for dx in (-1, 0, 1))

P2PAD = 128                          # 7*7 = 49 pooled positions padded to 128 lanes
FLATPAD = 32 * P2PAD                 # 4096 classifier input features (1568 real)
NHID = 256                           # FC1 hidden 200 padded to 256
NLOG = 128                           # FC2 logits 10 padded to 128


# ----------------------------- Pallas kernels -------------------------------

def _features_kernel(x_ref, w1_ref, b1_ref, s1_ref, w2_ref, b2_ref, s2_ref,
                     o_ref):
    """Fused conv1+ReLU+pool1+conv2+ReLU+pool2 for a block of TB images.

    x_ref : (TB, 1, NP1)   padded 30x30 images, flattened on lanes (f32)
    w1_ref: (16, 9)        conv1 weights (f32), column = ky*3+kx
    b1_ref: (1, 16, 1)     conv1 bias (f32)
    s1_ref: (ML1, NP2)     0/1 pool1 gather + re-pad matrix (bf16)
    w2_ref: (32, 144)      conv2 weights (bf16), column = (ky*3+kx)*16 + cin
    b2_ref: (1, 32, 1)     conv2 bias (f32)
    s2_ref: (ML2, P2PAD)   0/1 pool2 gather matrix, padded to 128 lanes (bf16)
    o_ref : (TB, 32, 128)  pooled 7x7 maps, spatially padded to 128 lanes (bf16)
    """
    tb = x_ref.shape[0]
    x = x_ref[:, 0, :]                                 # (TB, 900) f32
    w1 = w1_ref[...]                                   # (16, 9)

    # ---- conv1 (1->16) on the VPU: 9 shifted broadcast MACs, batched over TB.
    off0 = OFFS1[0]
    c1 = w1[None, :, 0:1] * x[:, None, CS1 + off0: CS1 + off0 + CL1]
    for t in range(1, 9):
        off = OFFS1[t]
        c1 = c1 + w1[None, :, t:t + 1] * x[:, None, CS1 + off: CS1 + off + CL1]
    c1 = jnp.maximum(c1 + b1_ref[...], 0.0)            # (TB, 16, CL1)

    # ---- 2x2 max pool via 4 shifted lane slices.
    m1 = jnp.maximum(
        jnp.maximum(c1[:, :, 0:ML1], c1[:, :, 1:1 + ML1]),
        jnp.maximum(c1[:, :, Wp1:Wp1 + ML1], c1[:, :, Wp1 + 1:Wp1 + 1 + ML1]))

    # ---- gather stride-2 windows + re-pad to 16x16 (MXU, bf16 ops / f32 acc).
    p1 = jnp.dot(m1.astype(jnp.bfloat16).reshape(tb * 16, ML1), s1_ref[...],
                 preferred_element_type=jnp.float32)    # (TB*16, 256)
    p1 = p1.reshape(tb, 16, NP2).astype(jnp.bfloat16)

    # ---- conv2 (16->32): in-VMEM im2col + one batched K=144 MXU matmul.
    xcol = jnp.concatenate(
        [p1[:, :, CS2 + off: CS2 + off + CL2] for off in OFFS2], axis=1)
    w2b = jnp.broadcast_to(w2_ref[...][None], (tb, 32, 144))
    c2 = jnp.einsum('bok,bkl->bol', w2b, xcol,
                    preferred_element_type=jnp.float32)  # (TB, 32, CL2) f32
    c2 = jnp.maximum(c2 + b2_ref[...], 0.0)

    # ---- 2x2 max pool + gather (49 positions padded to 128 lanes).
    m2 = jnp.maximum(
        jnp.maximum(c2[:, :, 0:ML2], c2[:, :, 1:1 + ML2]),
        jnp.maximum(c2[:, :, Wp2:Wp2 + ML2], c2[:, :, Wp2 + 1:Wp2 + 1 + ML2]))
    p2 = jnp.dot(m2.astype(jnp.bfloat16).reshape(tb * 32, ML2), s2_ref[...],
                 preferred_element_type=jnp.float32)     # (TB*32, 128)
    o_ref[...] = p2.reshape(tb, 32, P2PAD).astype(o_ref.dtype)


def _classifier_kernel(x_ref, w3_ref, b3_ref, w4_ref, b4_ref, o_ref):
    """Linear(4096pad -> 256pad) -> ReLU -> Linear(256pad -> 128pad)."""
    h = jnp.dot(x_ref[...], w3_ref[...], preferred_element_type=jnp.float32)
    h = jnp.maximum(h + b3_ref[...], 0.0)
    o = jnp.dot(h.astype(jnp.bfloat16), w4_ref[...],
                preferred_element_type=jnp.float32) + b4_ref[...]
    o_ref[...] = o.astype(o_ref.dtype)


# --------------------------- pallas_call wrappers ----------------------------

_VMEM_LIMIT = 32 * 1024 * 1024


def features(xp, w1, b1, s1, w2, b2, s2, *, tb):
    B = xp.shape[0]
    return pl.pallas_call(
        _features_kernel,
        out_shape=jax.ShapeDtypeStruct((B, 32, P2PAD), jnp.bfloat16),
        grid=(pl.cdiv(B, tb),),
        in_specs=[
            pl.BlockSpec((tb, 1, NP1), lambda i: (i, 0, 0)),
            pl.BlockSpec((16, 9), lambda i: (0, 0)),
            pl.BlockSpec((1, 16, 1), lambda i: (0, 0, 0)),
            pl.BlockSpec((ML1, NP2), lambda i: (0, 0)),
            pl.BlockSpec((32, 144), lambda i: (0, 0)),
            pl.BlockSpec((1, 32, 1), lambda i: (0, 0, 0)),
            pl.BlockSpec((ML2, P2PAD), lambda i: (0, 0)),
        ],
        out_specs=pl.BlockSpec((tb, 32, P2PAD), lambda i: (i, 0, 0)),
        compiler_params=pltpu.CompilerParams(
            dimension_semantics=("parallel",),
            vmem_limit_bytes=_VMEM_LIMIT),
    )(xp, w1, b1, s1, w2, b2, s2)


def classifier(flat, w3, b3, w4, b4, *, tb):
    B = flat.shape[0]
    return pl.pallas_call(
        _classifier_kernel,
        out_shape=jax.ShapeDtypeStruct((B, NLOG), jnp.float32),
        grid=(pl.cdiv(B, tb),),
        in_specs=[
            pl.BlockSpec((tb, FLATPAD), lambda i: (i, 0)),
            pl.BlockSpec((FLATPAD, NHID), lambda i: (0, 0)),
            pl.BlockSpec((1, NHID), lambda i: (0, 0)),
            pl.BlockSpec((NHID, NLOG), lambda i: (0, 0)),
            pl.BlockSpec((1, NLOG), lambda i: (0, 0)),
        ],
        out_specs=pl.BlockSpec((tb, NLOG), lambda i: (i, 0)),
        compiler_params=pltpu.CompilerParams(
            dimension_semantics=("parallel",),
            vmem_limit_bytes=_VMEM_LIMIT),
    )(flat, w3, b3, w4, b4)


def _round_up(n, m):
    return ((n + m - 1) // m) * m


def _conv_tile(B):
    # >=2 grid steps when possible (v7x two TensorCores); <=16 imgs/step (VMEM).
    return max(1, min(16, (B + 1) // 2))


def _fc_tile(B):
    # Block sublane dim must be a multiple of 8 or equal to B (the (8,128) rule).
    if B <= 8:
        return B
    return min(256, _round_up((B + 1) // 2, 8))


# ------------------------------ params & glue --------------------------------

def init_params(key):
    ks = jax.random.split(key, 8)

    def p(k, shape, fan_in):
        return jax.random.normal(k, shape, jnp.float32) * (1.0 / jnp.sqrt(fan_in))

    return {
        "w1": p(ks[0], (16, 1, 3, 3), 9),     # Conv2d(1, 16, 3, padding=1)
        "b1": p(ks[1], (16,), 9),
        "w2": p(ks[2], (32, 16, 3, 3), 144),  # Conv2d(16, 32, 3, padding=1)
        "b2": p(ks[3], (32,), 144),
        "w3": p(ks[4], (200, 1568), 1568),    # Linear(1568, 200)
        "b3": p(ks[5], (200,), 1568),
        "w4": p(ks[6], (10, 200), 200),       # Linear(200, 10)
        "b4": p(ks[7], (10,), 200),
    }


def _build_s1():
    # pool-window top-left index (60*yo + 2*xo) -> padded 16x16 coordinate.
    yo, xo = jnp.meshgrid(jnp.arange(14), jnp.arange(14), indexing="ij")
    rows = (2 * Wp1 * yo + 2 * xo).reshape(-1)
    cols = ((yo + 1) * Wp2 + (xo + 1)).reshape(-1)
    return jnp.zeros((ML1, NP2), jnp.float32).at[rows, cols].set(1.0)


def _build_s2():
    # pool-window top-left index (32*yo + 2*xo) -> flat 7x7 coord, padded to 128.
    yo, xo = jnp.meshgrid(jnp.arange(7), jnp.arange(7), indexing="ij")
    rows = (2 * Wp2 * yo + 2 * xo).reshape(-1)
    cols = (7 * yo + xo).reshape(-1)
    return jnp.zeros((ML2, P2PAD), jnp.float32).at[rows, cols].set(1.0)


def prepare_params(params):
    """One-time conversion of PyTorch-layout weights into kernel layouts
    (bf16 MXU operands, padded dims, remapped FC1 rows)."""
    f32, bf16 = jnp.float32, jnp.bfloat16
    # FC1 rows remapped from flatten index c*49+p to the padded c*128+p layout.
    w3t = params["w3"].T.reshape(32, 49, 200)                    # (c, p, n)
    w3p = (jnp.zeros((32, P2PAD, NHID), f32).at[:, :49, :200].set(w3t)
           .reshape(FLATPAD, NHID).astype(bf16))
    w4p = (jnp.zeros((NHID, NLOG), f32).at[:200, :10].set(params["w4"].T)
           .astype(bf16))
    return {
        "w1m": params["w1"].reshape(16, 9).astype(f32),
        "b1": params["b1"].reshape(1, 16, 1).astype(f32),
        "s1": _build_s1().astype(bf16),
        # column ordering (ky*3+kx)*16 + cin matches OFFS2 / xcol stacking.
        "w2m": params["w2"].transpose(0, 2, 3, 1).reshape(32, 144).astype(bf16),
        "b2": params["b2"].reshape(1, 32, 1).astype(f32),
        "s2": _build_s2().astype(bf16),
        "w3p": w3p,
        "b3p": jnp.zeros((1, NHID), f32).at[0, :200].set(params["b3"]),
        "w4p": w4p,
        "b4p": jnp.zeros((1, NLOG), f32).at[0, :10].set(params["b4"]),
    }


def net_forward(kp, x):
    B = x.shape[0]
    # pad + flatten the raw input once (tiny; everything else stays in-kernel).
    xp = jnp.pad(x, ((0, 0), (0, 0), (1, 1), (1, 1))).reshape(B, 1, NP1)
    p2 = features(xp, kp["w1m"], kp["b1"], kp["s1"],
                  kp["w2m"], kp["b2"], kp["s2"], tb=_conv_tile(B))  # (B,32,128)
    flat = p2.reshape(B, FLATPAD)                    # free: buffer is contiguous
    logits = classifier(flat, kp["w3p"], kp["b3p"], kp["w4p"], kp["b4p"],
                        tb=_fc_tile(B))              # (B, 128)
    return logits[:, :10]                            # drop logit padding


# ------------------------------ reference model ------------------------------

def net_reference(params, x):
    dn = ("NCHW", "OIHW", "NCHW")
    y = jax.lax.conv_general_dilated(x, params["w1"], (1, 1), "SAME",
                                     dimension_numbers=dn)
    y = jax.nn.relu(y + params["b1"].reshape(1, 16, 1, 1))
    y = y.reshape(y.shape[0], 16, 14, 2, 14, 2).max(axis=(3, 5))
    y = jax.lax.conv_general_dilated(y, params["w2"], (1, 1), "SAME",
                                     dimension_numbers=dn)
    y = jax.nn.relu(y + params["b2"].reshape(1, 32, 1, 1))
    y = y.reshape(y.shape[0], 32, 7, 2, 7, 2).max(axis=(3, 5))
    flat = y.reshape(y.shape[0], -1)
    h = jax.nn.relu(flat @ params["w3"].T + params["b3"])
    return h @ params["w4"].T + params["b4"]


if __name__ == "__main__":
    key = jax.random.PRNGKey(0)
    pkey, xkey = jax.random.split(key)
    params = init_params(pkey)
    kparams = prepare_params(params)
    # Linear(1568 = 32*7*7) pins the input to 1 channel, 28x28 spatial.
    x = jax.random.normal(xkey, (2, 1, 28, 28), jnp.float32)
    logits = jax.jit(net_forward)(kparams, x)
    jax.block_until_ready(logits)
    assert logits.shape == (2, 10) and logits.dtype == jnp.float32
    # numerical check vs plain-JAX reference (bf16 MXU operands -> loose tol).
    ref = net_reference(params, x)
    err = float(jnp.max(jnp.abs(logits - ref)))
    assert err < 0.1, f"max |logits - ref| = {err}"
    print("KERNEL_OK")
</pallas_src>

<mosaic_0001>
module attributes {stable_mosaic.version = 11 : i64} {
  func.func @_features_kernel(%arg0: i32, %arg1: memref<1x1x900xf32, #tpu.memory_space<vmem>>, %arg2: memref<16x9xf32, #tpu.memory_space<vmem>>, %arg3: memref<1x16x1xf32, #tpu.memory_space<vmem>>, %arg4: memref<807x256xbf16, #tpu.memory_space<vmem>>, %arg5: memref<32x144xbf16, #tpu.memory_space<vmem>>, %arg6: memref<1x32x1xf32, #tpu.memory_space<vmem>>, %arg7: memref<205x128xbf16, #tpu.memory_space<vmem>>, %arg8: memref<1x32x128xbf16, #tpu.memory_space<vmem>>) attributes {dimension_semantics = [#tpu.dimension_semantics<parallel>], iteration_bounds = array<i64: 2>, scalar_prefetch = 0 : i64, scratch_operands = 0 : i64, tpu.core_type = #tpu.core_type<tc>, window_params = [{transform_indices = @transform_0, window_bounds = array<i64: 1, 1, 900>}, {pipeline_mode = #tpu.pipeline_mode<synchronous>, transform_indices = @transform_1, window_bounds = array<i64: 16, 9>}, {pipeline_mode = #tpu.pipeline_mode<synchronous>, transform_indices = @transform_2, window_bounds = array<i64: 1, 16, 1>}, {pipeline_mode = #tpu.pipeline_mode<synchronous>, transform_indices = @transform_3, window_bounds = array<i64: 807, 256>}, {pipeline_mode = #tpu.pipeline_mode<synchronous>, transform_indices = @transform_4, window_bounds = array<i64: 32, 144>}, {pipeline_mode = #tpu.pipeline_mode<synchronous>, transform_indices = @transform_5, window_bounds = array<i64: 1, 32, 1>}, {pipeline_mode = #tpu.pipeline_mode<synchronous>, transform_indices = @transform_6, window_bounds = array<i64: 205, 128>}, {transform_indices = @transform_7, window_bounds = array<i64: 1, 32, 128>}]} {
    %c0 = arith.constant 0 : index
    %c0_0 = arith.constant 0 : index
    %c0_1 = arith.constant 0 : index
    %0 = vector.load %arg1[%c0, %c0_0, %c0_1] : memref<1x1x900xf32, #tpu.memory_space<vmem>>, vector<1x1x900xf32>
    %1 = vector.shape_cast %0 : vector<1x1x900xf32> to vector<1x900xf32>
    %c0_2 = arith.constant 0 : index
    %c0_3 = arith.constant 0 : index
    %2 = vector.load %arg2[%c0_2, %c0_3] : memref<16x9xf32, #tpu.memory_space<vmem>>, vector<16x9xf32>
    %3 = vector.extract_strided_slice %2 {offsets = [0, 0], sizes = [16, 1], strides = [1, 1]} : vector<16x9xf32> to vector<16x1xf32>
    %4 = vector.shape_cast %3 : vector<16x1xf32> to vector<1x16x1xf32>
    %5 = vector.extract_strided_slice %1 {offsets = [0, 0], sizes = [1, 838], strides = [1, 1]} : vector<1x900xf32> to vector<1x838xf32>
    %6 = vector.shape_cast %5 : vector<1x838xf32> to vector<1x1x838xf32>
    %7 = vector.broadcast %4 : vector<1x16x1xf32> to vector<1x16x838xf32>
    %8 = vector.broadcast %6 : vector<1x1x838xf32> to vector<1x16x838xf32>
    %9 = arith.mulf %7, %8 : vector<1x16x838xf32>
    %10 = vector.extract_strided_slice %2 {offsets = [0, 1], sizes = [16, 1], strides = [1, 1]} : vector<16x9xf32> to vector<16x1xf32>
    %11 = vector.shape_cast %10 : vector<16x1xf32> to vector<1x16x1xf32>
    %12 = vector.extract_strided_slice %1 {offsets = [0, 1], sizes = [1, 838], strides = [1, 1]} : vector<1x900xf32> to vector<1x838xf32>
    %13 = vector.shape_cast %12 : vector<1x838xf32> to vector<1x1x838xf32>
    %14 = vector.broadcast %11 : vector<1x16x1xf32> to vector<1x16x838xf32>
    %15 = vector.broadcast %13 : vector<1x1x838xf32> to vector<1x16x838xf32>
    %16 = arith.mulf %14, %15 : vector<1x16x838xf32>
    %17 = arith.addf %9, %16 : vector<1x16x838xf32>
    %18 = vector.extract_strided_slice %2 {offsets = [0, 2], sizes = [16, 1], strides = [1, 1]} : vector<16x9xf32> to vector<16x1xf32>
    %19 = vector.shape_cast %18 : vector<16x1xf32> to vector<1x16x1xf32>
    %20 = vector.extract_strided_slice %1 {offsets = [0, 2], sizes = [1, 838], strides = [1, 1]} : vector<1x900xf32> to vector<1x838xf32>
    %21 = vector.shape_cast %20 : vector<1x838xf32> to vector<1x1x838xf32>
    %22 = vector.broadcast %19 : vector<1x16x1xf32> to vector<1x16x838xf32>
    %23 = vector.broadcast %21 : vector<1x1x838xf32> to vector<1x16x838xf32>
    %24 = arith.mulf %22, %23 : vector<1x16x838xf32>
    %25 = arith.addf %17, %24 : vector<1x16x838xf32>
    %26 = vector.extract_strided_slice %2 {offsets = [0, 3], sizes = [16, 1], strides = [1, 1]} : vector<16x9xf32> to vector<16x1xf32>
    %27 = vector.shape_cast %26 : vector<16x1xf32> to vector<1x16x1xf32>
    %28 = vector.extract_strided_slice %1 {offsets = [0, 30], sizes = [1, 838], strides = [1, 1]} : vector<1x900xf32> to vector<1x838xf32>
    %29 = vector.shape_cast %28 : vector<1x838xf32> to vector<1x1x838xf32>
    %30 = vector.broadcast %27 : vector<1x16x1xf32> to vector<1x16x838xf32>
    %31 = vector.broadcast %29 : vector<1x1x838xf32> to vector<1x16x838xf32>
    %32 = arith.mulf %30, %31 : vector<1x16x838xf32>
    %33 = arith.addf %25, %32 : vector<1x16x838xf32>
    %34 = vector.extract_strided_slice %2 {offsets = [0, 4], sizes = [16, 1], strides = [1, 1]} : vector<16x9xf32> to vector<16x1xf32>
    %35 = vector.shape_cast %34 : vector<16x1xf32> to vector<1x16x1xf32>
    %36 = vector.extract_strided_slice %1 {offsets = [0, 31], sizes = [1, 838], strides = [1, 1]} : vector<1x900xf32> to vector<1x838xf32>
    %37 = vector.shape_cast %36 : vector<1x838xf32> to vector<1x1x838xf32>
    %38 = vector.broadcast %35 : vector<1x16x1xf32> to vector<1x16x838xf32>
    %39 = vector.broadcast %37 : vector<1x1x838xf32> to vector<1x16x838xf32>
    %40 = arith.mulf %38, %39 : vector<1x16x838xf32>
    %41 = arith.addf %33, %40 : vector<1x16x838xf32>
    %42 = vector.extract_strided_slice %2 {offsets = [0, 5], sizes = [16, 1], strides = [1, 1]} : vector<16x9xf32> to vector<16x1xf32>
    %43 = vector.shape_cast %42 : vector<16x1xf32> to vector<1x16x1xf32>
    %44 = vector.extract_strided_slice %1 {offsets = [0, 32], sizes = [1, 838], strides = [1, 1]} : vector<1x900xf32> to vector<1x838xf32>
    %45 = vector.shape_cast %44 : vector<1x838xf32> to vector<1x1x838xf32>
    %46 = vector.broadcast %43 : vector<1x16x1xf32> to vector<1x16x838xf32>
    %47 = vector.broadcast %45 : vector<1x1x838xf32> to vector<1x16x838xf32>
    %48 = arith.mulf %46, %47 : vector<1x16x838xf32>
    %49 = arith.addf %41, %48 : vector<1x16x838xf32>
    %50 = vector.extract_strided_slice %2 {offsets = [0, 6], sizes = [16, 1], strides = [1, 1]} : vector<16x9xf32> to vector<16x1xf32>
    %51 = vector.shape_cast %50 : vector<16x1xf32> to vector<1x16x1xf32>
    %52 = vector.extract_strided_slice %1 {offsets = [0, 60], sizes = [1, 838], strides = [1, 1]} : vector<1x900xf32> to vector<1x838xf32>
    %53 = vector.shape_cast %52 : vector<1x838xf32> to vector<1x1x838xf32>
    %54 = vector.broadcast %51 : vector<1x16x1xf32> to vector<1x16x838xf32>
    %55 = vector.broadcast %53 : vector<1x1x838xf32> to vector<1x16x838xf32>
    %56 = arith.mulf %54, %55 : vector<1x16x838xf32>
    %57 = arith.addf %49, %56 : vector<1x16x838xf32>
    %58 = vector.extract_strided_slice %2 {offsets = [0, 7], sizes = [16, 1], strides = [1, 1]} : vector<16x9xf32> to vector<16x1xf32>
    %59 = vector.shape_cast %58 : vector<16x1xf32> to vector<1x16x1xf32>
    %60 = vector.extract_strided_slice %1 {offsets = [0, 61], sizes = [1, 838], strides = [1, 1]} : vector<1x900xf32> to vector<1x838xf32>
    %61 = vector.shape_cast %60 : vector<1x838xf32> to vector<1x1x838xf32>
    %62 = vector.broadcast %59 : vector<1x16x1xf32> to vector<1x16x838xf32>
    %63 = vector.broadcast %61 : vector<1x1x838xf32> to vector<1x16x838xf32>
    %64 = arith.mulf %62, %63 : vector<1x16x838xf32>
    %65 = arith.addf %57, %64 : vector<1x16x838xf32>
    %66 = vector.extract_strided_slice %2 {offsets = [0, 8], sizes = [16, 1], strides = [1, 1]} : vector<16x9xf32> to vector<16x1xf32>
    %67 = vector.shape_cast %66 : vector<16x1xf32> to vector<1x16x1xf32>
    %68 = vector.extract_strided_slice %1 {offsets = [0, 62], sizes = [1, 838], strides = [1, 1]} : vector<1x900xf32> to vector<1x838xf32>
    %69 = vector.shape_cast %68 : vector<1x838xf32> to vector<1x1x838xf32>
    %70 = vector.broadcast %67 : vector<1x16x1xf32> to vector<1x16x838xf32>
    %71 = vector.broadcast %69 : vector<1x1x838xf32> to vector<1x16x838xf32>
    %72 = arith.mulf %70, %71 : vector<1x16x838xf32>
    %73 = arith.addf %65, %72 : vector<1x16x838xf32>
    %c0_4 = arith.constant 0 : index
    %c0_5 = arith.constant 0 : index
    %c0_6 = arith.constant 0 : index
    %74 = vector.load %arg3[%c0_4, %c0_5, %c0_6] : memref<1x16x1xf32, #tpu.memory_space<vmem>>, vector<1x16x1xf32>
    %75 = vector.broadcast %74 : vector<1x16x1xf32> to vector<1x16x838xf32>
    %76 = arith.addf %73, %75 : vector<1x16x838xf32>
    %cst = arith.constant 0.000000e+00 : f32
    %77 = vector.broadcast %cst : f32 to vector<1x16x838xf32>
    %78 = arith.maximumf %76, %77 : vector<1x16x838xf32>
    %79 = vector.extract_strided_slice %78 {offsets = [0, 0, 0], sizes = [1, 16, 807], strides = [1, 1, 1]} : vector<1x16x838xf32> to vector<1x16x807xf32>
    %80 = vector.extract_strided_slice %78 {offsets = [0, 0, 1], sizes = [1, 16, 807], strides = [1, 1, 1]} : vector<1x16x838xf32> to vector<1x16x807xf32>
    %81 = arith.maximumf %79, %80 : vector<1x16x807xf32>
    %82 = vector.extract_strided_slice %78 {offsets = [0, 0, 30], sizes = [1, 16, 807], strides = [1, 1, 1]} : vector<1x16x838xf32> to vector<1x16x807xf32>
    %83 = vector.extract_strided_slice %78 {offsets = [0, 0, 31], sizes = [1, 16, 807], strides = [1, 1, 1]} : vector<1x16x838xf32> to vector<1x16x807xf32>
    %84 = arith.maximumf %82, %83 : vector<1x16x807xf32>
    %85 = arith.maximumf %81, %84 : vector<1x16x807xf32>
    %86 = arith.truncf %85 : vector<1x16x807xf32> to vector<1x16x807xbf16>
    %87 = vector.shape_cast %86 : vector<1x16x807xbf16> to vector<16x807xbf16>
    %c0_7 = arith.constant 0 : index
    %c0_8 = arith.constant 0 : index
    %88 = vector.load %arg4[%c0_7, %c0_8] : memref<807x256xbf16, #tpu.memory_space<vmem>>, vector<807x256xbf16>
    %cst_9 = arith.constant dense<0.000000e+00> : vector<16x256xf32>
    %89 = tpu.matmul %87, %88, %cst_9 {dimension_numbers = #tpu.dot_dimension_numbers<[1], [0], [0], [1], [0, 0, 1, 1], [], []>} : vector<16x807xbf16>, vector<807x256xbf16>, vector<16x256xf32> -> vector<16x256xf32>
    %90 = vector.shape_cast %89 : vector<16x256xf32> to vector<1x16x256xf32>
    %91 = arith.truncf %90 : vector<1x16x256xf32> to vector<1x16x256xbf16>
    %92 = vector.extract_strided_slice %91 {offsets = [0, 0, 0], sizes = [1, 16, 222], strides = [1, 1, 1]} : vector<1x16x256xbf16> to vector<1x16x222xbf16>
    %93 = vector.extract_strided_slice %91 {offsets = [0, 0, 1], sizes = [1, 16, 222], strides = [1, 1, 1]} : vector<1x16x256xbf16> to vector<1x16x222xbf16>
    %94 = vector.extract_strided_slice %91 {offsets = [0, 0, 2], sizes = [1, 16, 222], strides = [1, 1, 1]} : vector<1x16x256xbf16> to vector<1x16x222xbf16>
    %95 = vector.extract_strided_slice %91 {offsets = [0, 0, 16], sizes = [1, 16, 222], strides = [1, 1, 1]} : vector<1x16x256xbf16> to vector<1x16x222xbf16>
    %96 = vector.extract_strided_slice %91 {offsets = [0, 0, 17], sizes = [1, 16, 222], strides = [1, 1, 1]} : vector<1x16x256xbf16> to vector<1x16x222xbf16>
    %97 = vector.extract_strided_slice %91 {offsets = [0, 0, 18], sizes = [1, 16, 222], strides = [1, 1, 1]} : vector<1x16x256xbf16> to vector<1x16x222xbf16>
    %98 = vector.extract_strided_slice %91 {offsets = [0, 0, 32], sizes = [1, 16, 222], strides = [1, 1, 1]} : vector<1x16x256xbf16> to vector<1x16x222xbf16>
    %99 = vector.extract_strided_slice %91 {offsets = [0, 0, 33], sizes = [1, 16, 222], strides = [1, 1, 1]} : vector<1x16x256xbf16> to vector<1x16x222xbf16>
    %100 = vector.extract_strided_slice %91 {offsets = [0, 0, 34], sizes = [1, 16, 222], strides = [1, 1, 1]} : vector<1x16x256xbf16> to vector<1x16x222xbf16>
    %101 = tpu.concatenate %92, %93, %94, %95, %96, %97, %98, %99, %100 in 1 : vector<1x16x222xbf16>, vector<1x16x222xbf16>, vector<1x16x222xbf16>, vector<1x16x222xbf16>, vector<1x16x222xbf16>, vector<1x16x222xbf16>, vector<1x16x222xbf16>, vector<1x16x222xbf16>, vector<1x16x222xbf16> -> vector<1x144x222xbf16>
    %c0_10 = arith.constant 0 : index
    %c0_11 = arith.constant 0 : index
    %102 = vector.load %arg5[%c0_10, %c0_11] : memref<32x144xbf16, #tpu.memory_space<vmem>>, vector<32x144xbf16>
    %103 = vector.shape_cast %102 : vector<32x144xbf16> to vector<1x32x144xbf16>
    "tpu.trace_start"() <{level = 10 : i32, message = "bok,bkl->bol"}> : () -> ()
    %cst_12 = arith.constant dense<0.000000e+00> : vector<1x32x222xf32>
    %104 = tpu.matmul %103, %101, %cst_12 {dimension_numbers = #tpu.dot_dimension_numbers<[2], [1], [1], [2], [0, 0, 0, 1, 1, 2], [0], [0]>} : vector<1x32x144xbf16>, vector<1x144x222xbf16>, vector<1x32x222xf32> -> vector<1x32x222xf32>
    "tpu.trace_stop"() : () -> ()
    %c0_13 = arith.constant 0 : index
    %c0_14 = arith.constant 0 : index
    %c0_15 = arith.constant 0 : index
    %105 = vector.load %arg6[%c0_13, %c0_14, %c0_15] : memref<1x32x1xf32, #tpu.memory_space<vmem>>, vector<1x32x1xf32>
    %106 = vector.broadcast %105 : vector<1x32x1xf32> to vector<1x32x222xf32>
    %107 = arith.addf %104, %106 : vector<1x32x222xf32>
    %cst_16 = arith.constant 0.000000e+00 : f32
    %108 = vector.broadcast %cst_16 : f32 to vector<1x32x222xf32>
    %109 = arith.maximumf %107, %108 : vector<1x32x222xf32>
    %110 = vector.extract_strided_slice %109 {offsets = [0, 0, 0], sizes = [1, 32, 205], strides = [1, 1, 1]} : vector<1x32x222xf32> to vector<1x32x205xf32>
    %111 = vector.extract_strided_slice %109 {offsets = [0, 0, 1], sizes = [1, 32, 205], strides = [1, 1, 1]} : vector<1x32x222xf32> to vector<1x32x205xf32>
    %112 = arith.maximumf %110, %111 : vector<1x32x205xf32>
    %113 = vector.extract_strided_slice %109 {offsets = [0, 0, 16], sizes = [1, 32, 205], strides = [1, 1, 1]} : vector<1x32x222xf32> to vector<1x32x205xf32>
    %114 = vector.extract_strided_slice %109 {offsets = [0, 0, 17], sizes = [1, 32, 205], strides = [1, 1, 1]} : vector<1x32x222xf32> to vector<1x32x205xf32>
    %115 = arith.maximumf %113, %114 : vector<1x32x205xf32>
    %116 = arith.maximumf %112, %115 : vector<1x32x205xf32>
    %117 = arith.truncf %116 : vector<1x32x205xf32> to vector<1x32x205xbf16>
    %118 = vector.shape_cast %117 : vector<1x32x205xbf16> to vector<32x205xbf16>
    %c0_17 = arith.constant 0 : index
    %c0_18 = arith.constant 0 : index
    %119 = vector.load %arg7[%c0_17, %c0_18] : memref<205x128xbf16, #tpu.memory_space<vmem>>, vector<205x128xbf16>
    %cst_19 = arith.constant dense<0.000000e+00> : vector<32x128xf32>
    %120 = tpu.matmul %118, %119, %cst_19 {dimension_numbers = #tpu.dot_dimension_numbers<[1], [0], [0], [1], [0, 0, 1, 1], [], []>} : vector<32x205xbf16>, vector<205x128xbf16>, vector<32x128xf32> -> vector<32x128xf32>
    %121 = vector.shape_cast %120 : vector<32x128xf32> to vector<1x32x128xf32>
    %122 = arith.truncf %121 : vector<1x32x128xf32> to vector<1x32x128xbf16>
    %c0_20 = arith.constant 0 : index
    %c0_21 = arith.constant 0 : index
    %c0_22 = arith.constant 0 : index
    %123 = vector.load %arg8[%c0_20, %c0_21, %c0_22] : memref<1x32x128xbf16, #tpu.memory_space<vmem>>, vector<1x32x128xbf16>
    tpu.vector_store %arg8[%c0_20, %c0_21, %c0_22], %122 {strides = array<i32>} : memref<1x32x128xbf16, #tpu.memory_space<vmem>>, vector<1x32x128xbf16>,
    return
  }
  func.func @transform_0(%arg0: i32) -> (i32, i32, i32) {
    %c0_i32 = arith.constant 0 : i32
    %c0_i32_0 = arith.constant 0 : i32
    %c0_i32_1 = arith.constant 0 : i32
    return %arg0, %c0_i32, %c0_i32_0 : i32, i32, i32
  }
  func.func @transform_1(%arg0: i32) -> (i32, i32) {
    %c0_i32 = arith.constant 0 : i32
    %c0_i32_0 = arith.constant 0 : i32
    %c0_i32_1 = arith.constant 0 : i32
    return %c0_i32, %c0_i32_0 : i32, i32
  }
  func.func @transform_2(%arg0: i32) -> (i32, i32, i32) {
    %c0_i32 = arith.constant 0 : i32
    %c0_i32_0 = arith.constant 0 : i32
    %c0_i32_1 = arith.constant 0 : i32
    %c0_i32_2 = arith.constant 0 : i32
    return %c0_i32, %c0_i32_0, %c0_i32_1 : i32, i32, i32
  }
  func.func @transform_3(%arg0: i32) -> (i32, i32) {
    %c0_i32 = arith.constant 0 : i32
    %c0_i32_0 = arith.constant 0 : i32
    %c0_i32_1 = arith.constant 0 : i32
    return %c0_i32, %c0_i32_0 : i32, i32
  }
  func.func @transform_4(%arg0: i32) -> (i32, i32) {
    %c0_i32 = arith.constant 0 : i32
    %c0_i32_0 = arith.constant 0 : i32
    %c0_i32_1 = arith.constant 0 : i32
    return %c0_i32, %c0_i32_0 : i32, i32
  }
  func.func @transform_5(%arg0: i32) -> (i32, i32, i32) {
    %c0_i32 = arith.constant 0 : i32
    %c0_i32_0 = arith.constant 0 : i32
    %c0_i32_1 = arith.constant 0 : i32
    %c0_i32_2 = arith.constant 0 : i32
    return %c0_i32, %c0_i32_0, %c0_i32_1 : i32, i32, i32
  }
  func.func @transform_6(%arg0: i32) -> (i32, i32) {
    %c0_i32 = arith.constant 0 : i32
    %c0_i32_0 = arith.constant 0 : i32
    %c0_i32_1 = arith.constant 0 : i32
    return %c0_i32, %c0_i32_0 : i32, i32
  }
  func.func @transform_7(%arg0: i32) -> (i32, i32, i32) {
    %c0_i32 = arith.constant 0 : i32
    %c0_i32_0 = arith.constant 0 : i32
    %c0_i32_1 = arith.constant 0 : i32
    return %arg0, %c0_i32, %c0_i32_0 : i32, i32, i32
  }
}

module attributes {stable_mosaic.version = 11 : i64} {
  func.func @_classifier_kernel(%arg0: i32, %arg1: memref<2x4096xbf16, #tpu.memory_space<vmem>>, %arg2: memref<4096x256xbf16, #tpu.memory_space<vmem>>, %arg3: memref<1x256xf32, #tpu.memory_space<vmem>>, %arg4: memref<256x128xbf16, #tpu.memory_space<vmem>>, %arg5: memref<1x128xf32, #tpu.memory_space<vmem>>, %arg6: memref<2x128xf32, #tpu.memory_space<vmem>>) attributes {dimension_semantics = [#tpu.dimension_semantics<parallel>], iteration_bounds = array<i64: 1>, scalar_prefetch = 0 : i64, scratch_operands = 0 : i64, tpu.core_type = #tpu.core_type<tc>, window_params = [{transform_indices = @transform_0, window_bounds = array<i64: 2, 4096>}, {pipeline_mode = #tpu.pipeline_mode<synchronous>, transform_indices = @transform_1, window_bounds = array<i64: 4096, 256>}, {pipeline_mode = #tpu.pipeline_mode<synchronous>, transform_indices = @transform_2, window_bounds = array<i64: 1, 256>}, {pipeline_mode = #tpu.pipeline_mode<synchronous>, transform_indices = @transform_3, window_bounds = array<i64: 256, 128>}, {pipeline_mode = #tpu.pipeline_mode<synchronous>, transform_indices = @transform_4, window_bounds = array<i64: 1, 128>}, {transform_indices = @transform_5, window_bounds = array<i64: 2, 128>}]} {
    %c0 = arith.constant 0 : index
    %c0_0 = arith.constant 0 : index
    %0 = vector.load %arg1[%c0, %c0_0] : memref<2x4096xbf16, #tpu.memory_space<vmem>>, vector<2x4096xbf16>
    %c0_1 = arith.constant 0 : index
    %c0_2 = arith.constant 0 : index
    %1 = vector.load %arg2[%c0_1, %c0_2] : memref<4096x256xbf16, #tpu.memory_space<vmem>>, vector<4096x256xbf16>
    %cst = arith.constant dense<0.000000e+00> : vector<2x256xf32>
    %2 = tpu.matmul %0, %1, %cst {dimension_numbers = #tpu.dot_dimension_numbers<[1], [0], [0], [1], [0, 0, 1, 1], [], []>} : vector<2x4096xbf16>, vector<4096x256xbf16>, vector<2x256xf32> -> vector<2x256xf32>
    %c0_3 = arith.constant 0 : index
    %c0_4 = arith.constant 0 : index
    %3 = vector.load %arg3[%c0_3, %c0_4] : memref<1x256xf32, #tpu.memory_space<vmem>>, vector<1x256xf32>
    %4 = vector.broadcast %3 : vector<1x256xf32> to vector<2x256xf32>
    %5 = arith.addf %2, %4 : vector<2x256xf32>
    %cst_5 = arith.constant 0.000000e+00 : f32
    %6 = vector.broadcast %cst_5 : f32 to vector<2x256xf32>
    %7 = arith.maximumf %5, %6 : vector<2x256xf32>
    %8 = arith.truncf %7 : vector<2x256xf32> to vector<2x256xbf16>
    %c0_6 = arith.constant 0 : index
    %c0_7 = arith.constant 0 : index
    %9 = vector.load %arg4[%c0_6, %c0_7] : memref<256x128xbf16, #tpu.memory_space<vmem>>, vector<256x128xbf16>
    %cst_8 = arith.constant dense<0.000000e+00> : vector<2x128xf32>
    %10 = tpu.matmul %8, %9, %cst_8 {dimension_numbers = #tpu.dot_dimension_numbers<[1], [0], [0], [1], [0, 0, 1, 1], [], []>} : vector<2x256xbf16>, vector<256x128xbf16>, vector<2x128xf32> -> vector<2x128xf32>
    %c0_9 = arith.constant 0 : index
    %c0_10 = arith.constant 0 : index
    %11 = vector.load %arg5[%c0_9, %c0_10] : memref<1x128xf32, #tpu.memory_space<vmem>>, vector<1x128xf32>
    %12 = vector.broadcast %11 : vector<1x128xf32> to vector<2x128xf32>
    %13 = arith.addf %10, %12 : vector<2x128xf32>
    %c0_11 = arith.constant 0 : index
    %c0_12 = arith.constant 0 : index
    %14 = vector.load %arg6[%c0_11, %c0_12] : memref<2x128xf32, #tpu.memory_space<vmem>>, vector<2x128xf32>
    tpu.vector_store %arg6[%c0_11, %c0_12], %13 {strides = array<i32>} : memref<2x128xf32, #tpu.memory_space<vmem>>, vector<2x128xf32>,
    return
  }
  func.func @transform_0(%arg0: i32) -> (i32, i32) {
    %c0_i32 = arith.constant 0 : i32
    %c0_i32_0 = arith.constant 0 : i32
    return %arg0, %c0_i32 : i32, i32
  }
  func.func @transform_1(%arg0: i32) -> (i32, i32) {
    %c0_i32 = arith.constant 0 : i32
    %c0_i32_0 = arith.constant 0 : i32
    %c0_i32_1 = arith.constant 0 : i32
    return %c0_i32, %c0_i32_0 : i32, i32
  }
  func.func @transform_2(%arg0: i32) -> (i32, i32) {
    %c0_i32 = arith.constant 0 : i32
    %c0_i32_0 = arith.constant 0 : i32
    %c0_i32_1 = arith.constant 0 : i32
    return %c0_i32, %c0_i32_0 : i32, i32
  }
  func.func @transform_3(%arg0: i32) -> (i32, i32) {
    %c0_i32 = arith.constant 0 : i32
    %c0_i32_0 = arith.constant 0 : i32
    %c0_i32_1 = arith.constant 0 : i32
    return %c0_i32, %c0_i32_0 : i32, i32
  }
  func.func @transform_4(%arg0: i32) -> (i32, i32) {
    %c0_i32 = arith.constant 0 : i32
    %c0_i32_0 = arith.constant 0 : i32
    %c0_i32_1 = arith.constant 0 : i32
    return %c0_i32, %c0_i32_0 : i32, i32
  }
  func.func @transform_5(%arg0: i32) -> (i32, i32) {
    %c0_i32 = arith.constant 0 : i32
    %c0_i32_0 = arith.constant 0 : i32
    return %arg0, %c0_i32 : i32, i32
  }
}

</mosaic_0001>

<bundles_post_ra>
// kernel: net_forward.2
= control target key start
LH: loop header
LB: loop body
LE: loop exit
PB: predicated region body
PF: predicated region fallthrough
CT: control target
= control target key end

     0   :  { %12 = vsyncpa [#allocation3], 0  ;;  %s5072_s0 = inlined_call_operand.vmem [shape: f32[2,1,900], index: 0, kind: input, shape index: {}]   ;;  %s5073_s1 = inlined_call_operand.hbm [shape: f32[16,9], index: 1, kind: input, shape index: {}]   ;;  %s5074_s2 = inlined_call_operand.vmem [shape: f32[1,16,1], index: 2, kind: input, shape index: {}]   ;;  %s5075_s3 = inlined_call_operand.hbm [shape: bf16[807,256], index: 3, kind: input, shape index: {}]   ;;  %s5076_s4 = inlined_call_operand.hbm [shape: bf16[32,144], index: 4, kind: input, shape index: {}]   ;;  %s5077_s5 = inlined_call_operand.vmem [shape: f32[1,32,1], index: 5, kind: input, shape index: {}]   ;;  %s5078_s6 = inlined_call_operand.hbm [shape: bf16[205,128], index: 6, kind: input, shape index: {}]   ;;  %s5079_s7 = inlined_call_operand.vmem [shape: bf16[2,32,128], index: 7, kind: output, shape index: {}]  }
   0x1   :  { %13 = vsyncpa [#allocation5], 0 }
   0x2   :  { %14 = vsyncpa [#allocation8], 0  ;;  %s3582_s24 = smov 0  }
   0x3 LB: > { %s3588_s25 = sadd.s32 4294967295, %s3509_s24   ;;  %p2836_p0 = scmp.ge.s32.totalorder %s3509_s24, 1  ;;  %s3509_s24 = sphi %s3582_s24, %s20_s24  }
   0x4   : > { %p203_p1 = scmp.lt.s32.totalorder %s3509_s24, 3  ;;  %p5080_p2 = scmp.eq.s32.totalorder %s3588_s25, 0 }
   0x5   : > { %s3511_s27 = smov [#allocation4]   ;;  %s3512_s29 = smov [#allocation2]  }
   0x6   : > { %p3593_p3 = pnand %p2836_p0, %p203_p1  ;;  %s231_s28 = sshll.u32 %s3511_s27, 4  ;;  %s3597_s28 = int_to_ptr.vmem [resolvable:$true] %s231_s28 }
   0x7   : > { %s215_s30 = sshll.u32 %s3512_s29, 4  ;;  %s3513_s9 = smov [#allocation6]   ;;  %s3601_s30 = int_to_ptr.vmem [resolvable:$true] %s215_s30 }
   0x8   : > { %s5135_s26 = scalar_select %p3593_p3, 1, 0 }
   0x9   : > { %p3024_p4 = pneg %p3593_p3  ;;  %s244_s10 = sshll.u32 %s3513_s9, 4  ;;  %s3609_s10 = int_to_ptr.vmem [resolvable:$true] %s244_s10 }
   0xa   : > { %s3514_s11 = smov [#allocation7]   ;;  %s3379_s15 = scalar_lea.hbm %s5075_s3, 12928 }
   0xb   : > { %p3605_p5 = pnand %p5080_p2, %p3024_p4  ;;  %s3611_s12 = sshll.u32 %s3514_s11, 4  ;;  %s261_s12 = int_to_ptr.vmem [resolvable:$true] %s3611_s12 }
   0xc   : > { %p3380_p6 = scmp.ne.s32.totalorder %s5075_s3, %s3379_s15  ;;  %p3386_p10 = scmp.lt.u32.totalorder %s3379_s15, %s5075_s3 }
   0xd   : > { %p3621_p7 = pneg %p3605_p5 }
   0xf   : > { %p3382_p8 = pnand %p3621_p7, %p3380_p6 }
  0x11   : > { %p3383_p9 = pneg %p3382_p8 }
  0x13   : > { %p3388_p11 = pnand %p3386_p10, %p3383_p9 }
  0x15   : > { %3391 = shalt.err (!%p3388_p11)
}
  0x16   : > { %s3392_s21 = scalar_lea.vmem %s3597_s28, 12928  ;;  %p3400_p1 = scmp.lt.s32.totalorder %s3597_s28, %s3597_s28 }
  0x17   : > { %p3393_p12 = scmp.ne.s32.totalorder %s3597_s28, %s3392_s21  ;;  %p3401_p4 = scmp.lt.s32.totalorder %s3392_s21, %s3392_s21 }
  0x19   : > { %p3395_p13 = pnand %p3393_p12, %p3621_p7  ;;  %p3402_p6 = por %p3401_p4, %p3400_p1 }
  0x1b   : > { %p3396_p0 = pneg %p3395_p13 }
  0x1d   : > { %p3403_p8 = pnand %p3402_p6, %p3396_p0 }
  0x1f   : > { %3406 = shalt.err (!%p3403_p8)
}
  0x20   : > { %s3515_s22 = smov 128   ;;  %s3516_s23 = smov 8  }
  0x21   : > { %3030 = dma.hbm_to_vmem [thread:$0]  (!%p3605_p5), %s5075_s3, 12928, %s3597_s28, [#allocation5], %s3515_s22, %s3515_s22, %s3516_s23  }
  0x22   : > { %s3407_s13 = scalar_lea.hbm %s5073_s1, 256 }
  0x23   : > { %p3408_p9 = scmp.ne.s32.totalorder %s5073_s1, %s3407_s13  ;;  %p3414_p12 = scmp.lt.u32.totalorder %s3407_s13, %s5073_s1 }
  0x25   : > { %p3410_p10 = pnand %p3408_p9, %p3621_p7 }
  0x27   : > { %p3411_p11 = pneg %p3410_p10 }
  0x29   : > { %p3416_p13 = pnand %p3414_p12, %p3411_p11 }
  0x2b   : > { %3419 = shalt.err (!%p3416_p13)
}
  0x2c   : > { %s3420_s28 = scalar_lea.vmem %s3601_s30, 256  ;;  %p3428_p6 = scmp.lt.s32.totalorder %s3601_s30, %s3601_s30 }
  0x2d   : > { %p3421_p0 = scmp.ne.s32.totalorder %s3601_s30, %s3420_s28  ;;  %p3429_p8 = scmp.lt.s32.totalorder %s3420_s28, %s3420_s28 }
  0x2f   : > { %p3423_p1 = pnand %p3421_p0, %p3621_p7  ;;  %p3430_p9 = por %p3429_p8, %p3428_p6 }
  0x31   : > { %p3424_p4 = pneg %p3423_p1 }
  0x33   : > { %p3431_p10 = pnand %p3430_p9, %p3424_p4 }
  0x35   : > { %3434 = shalt.err (!%p3431_p10)
}
  0x36   : > { %3027 = dma.hbm_to_vmem [thread:$0]  (!%p3605_p5), %s5073_s1, 256, %s3601_s30, [#allocation3], %s3515_s22, %s3515_s22, %s3516_s23  }
  0x37   : > { %s3435_s29 = scalar_lea.hbm %s5076_s4, 512 }
  0x38   : > { %p3436_p11 = scmp.ne.s32.totalorder %s5076_s4, %s3435_s29  ;;  %p3442_p0 = scmp.lt.u32.totalorder %s3435_s29, %s5076_s4 }
  0x3a   : > { %p3438_p12 = pnand %p3436_p11, %p3621_p7 }
  0x3c   : > { %p3439_p13 = pneg %p3438_p12 }
  0x3e   : > { %p3444_p1 = pnand %p3442_p0, %p3439_p13 }
  0x40   : > { %3447 = shalt.err (!%p3444_p1)
}
  0x41   : > { %s3448_s30 = scalar_lea.vmem %s3609_s10, 512  ;;  %p3456_p9 = scmp.lt.s32.totalorder %s3609_s10, %s3609_s10 }
  0x42   : > { %p3449_p4 = scmp.ne.s32.totalorder %s3609_s10, %s3448_s30  ;;  %p3457_p10 = scmp.lt.s32.totalorder %s3448_s30, %s3448_s30 }
  0x44   : > { %p3451_p6 = pnand %p3449_p4, %p3621_p7  ;;  %p3458_p11 = por %p3457_p10, %p3456_p9 }
  0x46   : > { %p3452_p8 = pneg %p3451_p6 }
  0x48   : > { %p3459_p12 = pnand %p3458_p11, %p3452_p8 }
  0x4a   : > { %3462 = shalt.err (!%p3459_p12)
}
  0x4b   : > { %3033 = dma.hbm_to_vmem [thread:$0]  (!%p3605_p5), %s5076_s4, 512, %s3609_s10, [#allocation5], %s3515_s22, %s3515_s22, %s3516_s23  }
  0x4c   : > { %s3463_s19 = scalar_lea.hbm %s5078_s6, 1664 }
  0x4d   : > { %p3464_p13 = scmp.ne.s32.totalorder %s5078_s6, %s3463_s19  ;;  %p3470_p4 = scmp.lt.u32.totalorder %s3463_s19, %s5078_s6 }
  0x4f   : > { %p3466_p0 = pnand %p3464_p13, %p3621_p7 }
  0x51   : > { %p3467_p1 = pneg %p3466_p0 }
  0x53   : > { %p3472_p6 = pnand %p3470_p4, %p3467_p1 }
  0x55   : > { %3475 = shalt.err (!%p3472_p6)
}
  0x56   : > { %s3476_s9 = scalar_lea.vmem %s261_s12, 1664  ;;  %p3484_p11 = scmp.lt.s32.totalorder %s261_s12, %s261_s12 }
  0x57   : > { %p3477_p8 = scmp.ne.s32.totalorder %s261_s12, %s3476_s9  ;;  %p3485_p12 = scmp.lt.s32.totalorder %s3476_s9, %s3476_s9 }
  0x59   : > { %p3479_p9 = pnand %p3477_p8, %p3621_p7  ;;  %p3486_p2 = por %p3485_p12, %p3484_p11 }
  0x5b   : > { %p3480_p10 = pneg %p3479_p9 }
  0x5d   : > { %p3487_p3 = pnand %p3486_p2, %p3480_p10 }
  0x5f   : > { %3490 = shalt.err (!%p3487_p3)
}
  0x60   : > { %s3517_s10 = smov 64   ;;  %s3518_s22 = smov 4  }
  0x61   : > { %3036 = dma.hbm_to_vmem [thread:$0]  (!%p3605_p5), %s5078_s6, 1664, %s261_s12, [#allocation8], %s3517_s10, %s3517_s10, %s3518_s22  }
  0x62   : > { %p5138_p13 = scmp.ne.s32.totalorder %s5135_s26, 0 }
  0x64   : > { %283 = sbr.rel (%p5138_p13) target bundleno = 1989 (0x7c5), region = 48 }
  0x6b   : > { %p5139_p0 = scmp.eq.s32.totalorder %s3588_s25, 0 }
  0x6d   : > { %3496 = dma.done.wait (%p5139_p0), [#allocation3], 256   ;;  %p5140_p7 = pmov %p5139_p0 }
  0x6e   : > { %p5141_p2 = pmov %p5139_p0 }
  0x6f   : > { %3498 = vsyncadd (%p5140_p7), [#allocation3], 4294967040 }
  0x70   : > { %3500 = dma.done.wait (%p5141_p2), [#allocation5], 13440   ;;  %p5142_p3 = pmov %p5139_p0 }
  0x71   : > { %p5143_p1 = pmov %p5139_p0 }
  0x72   : > { %3502 = vsyncadd (%p5142_p3), [#allocation5], 4294953856 }
  0x73   : > { %3504 = dma.done.wait (%p5143_p1), [#allocation8], 1664   ;;  %p5144_p5 = pmov %p5139_p0 }
  0x74   : > { %v3519_v0 = vmov 1   ;;  %v3520_v1 = vmov 2   ;;  %v337_v2 = vld [vmem:[#allocation2] sm:$0xff]  ;;  %v338_v3 = vld [vmem:[#allocation2 + $0x8] sm:$0xff]  ;;  %v3521_v4 = vmov 3   ;;  %v3522_v5 = vmov 4  }
  0x75   : > { %3506 = vsyncadd (%p5144_p5), [#allocation8], 4294965632  ;;  %3084 = vset.pattern.permute.xlu0 %v3519_v0  ;;  %3085 = vset.pattern.permute.xlu1 %v3520_v1  ;;  %v3523_v6 = vmov 5   ;;  %v3524_v7 = vmov 6   ;;  %v3525_v8 = vmov 7   ;;  %v5082_v9 = vmov 0  }
  0x76   : > { %400 = vperm.xlu0 %3084, %v337_v2   ;;  %505 = vperm.xlu1 %3085, %v337_v2   ;;  %v3527_v10 = vmov 8   ;;  %p326_p4 = scmp.lt.s32.totalorder %s3588_s25, 1  ;;  %v350_v11 = vlaneseq  ;;  %s3528_s13 = smov 127   ;;  %vm463_vm0 = vcmask 1039360   ;;  %vm568_vm1 = vcmask 1031168  }
  0x77   : > { %s3529_s14 = smov 126   ;;  %s3530_s30 = smov 98   ;;  %vm673_vm2 = vcmask 801792   ;;  %vm778_vm3 = vcmask 793600   ;;  %vm883_vm4 = vcmask 785408   ;;  %vm1001_vm5 = vcmask 556032  }
  0x78   : > { %s5226_s25 = smov (!%p326_p4, %s3588_s25), 1  ;;  %v3737_v12 = vshrl.u32 %v350_v11, 7  ;;  %s3531_s15 = smov 97   ;;  %vm1116_vm6 = vcmask 547840   ;;  %vm1231_vm7 = vcmask 539648   ;;  %vm2095_vm8 = vcmask 1042432  }
  0x79   : > { %s2847_s26 = sshll.u32 %s5226_s25, 3  ;;  %s3532_s16 = smov 96   ;;  %vm2096_vm9 = vcmask 1043456   ;;  %vm2091_vm10 = vcmask 318464   ;;  %vm2391_vm11 = vcmask 130048   ;;  %vm2301_vm12 = vcmask 916480  }
  0x7a   : > { %404 = vperm.xlu0 %3084, %v338_v3   ;;  %509 = vperm.xlu1 %3085, %v338_v3   ;;  %s329_s18 = scalar_lea.vmem %s5072_s0, %s2847_s26  ;;  %v368_v13 = vsub.s32 4, %v3737_v12  ;;  %v364_v14 = vsub.s32 3, %v3737_v12  ;;  %v376_v18 = vsub.s32 6, %v3737_v12  ;;  %v372_v19 = vsub.s32 5, %v3737_v12  ;;  %s3533_s17 = smov 68  }
  0x7b   : > { %v3744_v15 = vld [vmem:[%s329_s18] sm:$0xff]  ;;  %v360_v30 = vsub.s32 2, %v3737_v12  ;;  %s3534_s27 = smov 67   ;;  %s3535_s29 = smov 66   ;;  %vm2309_vm13 = vcmask 908288   ;;  %vm2317_vm14 = vcmask 900096  }
  0x7c   : > { %v3747_v16 = vrot.slane %v3744_v15, %v368_v13  ;;  %v3750_v17 = vrot.slane %v3744_v15, %v364_v14  ;;  %v3761_v23 = vrot.slane %v3744_v15, %v376_v18  ;;  %v3764_v24 = vrot.slane %v3744_v15, %v372_v19  ;;  %s3537_s9 = smov 112   ;;  %s3538_s10 = smov 111  }
  0x7d   : > { %v3788_v33 = vrot.slane %v3744_v15, %v360_v30  ;;  %s3539_s22 = smov 110   ;;  %s3540_s23 = smov 95   ;;  %vm2333_vm15 = vcmask 777216  }
  0x7e   : > { %3086 = vset.pattern.permute.xlu0 %v3521_v4  ;;  %3087 = vset.pattern.permute.xlu1 %v3521_v4  ;;  %5145 = vst [vmem:[#allocation12_spill] sm:$0xff] %v3761_v23  ;;  %s3541_s11 = smov 94  }
  0x7f   : > { %610 = vperm.xlu0 %3086, %v337_v2   ;;  %614 = vperm.xlu1 %3087, %v338_v3  }
  0x83   : > { %3088 = vset.pattern.permute.xlu1 %v3522_v5  ;;  %3089 = vset.pattern.permute.xlu0 %v3522_v5 }
  0x84   : > { %715 = vperm.xlu1 %3088, %v337_v2   ;;  %719 = vperm.xlu0 %3089, %v338_v3  }
  0x88   : > { %3090 = vset.pattern.permute.xlu1 %v3523_v6  ;;  %3091 = vset.pattern.permute.xlu0 %v3524_v7 }
  0x89   : > { %820 = vperm.xlu1 %3090, %v337_v2   ;;  %925 = vperm.xlu0 %3091, %v337_v2  }
  0x8d   : > { %824 = vperm.xlu1 %3090, %v338_v3   ;;  %3094 = vset.pattern.permute.xlu0 %v3525_v8 }
  0x8e   : > { %1049 = vperm.xlu0 %3094, %v338_v3  }
  0x91   : > { %3092 = vset.pattern.permute.xlu1 %v3524_v7 }
  0x92   : > { %929 = vperm.xlu1 %3092, %v338_v3   ;;  %3096 = vset.pattern.permute.xlu0 %v5082_v9 }
  0x93   : > { %341 = vperm.xlu0 %3096, %v337_v2  }
  0x96   : > { %3093 = vset.pattern.permute.xlu1 %v3525_v8 }
  0x97   : > { %1045 = vperm.xlu1 %3093, %v337_v2  }
  0x9b   : > { %3095 = vset.pattern.permute.xlu1 %v3527_v10 }
  0x9c   : > { %1160 = vperm.xlu1 %3095, %v337_v2  }
  0xa0   : > { %1164 = vperm.xlu1 %3095, %v338_v3  }
  0xa4   : > { %3097 = vset.pattern.permute.xlu1 %v5082_v9 }
  0xa5   : > { %346 = vperm.xlu1 %3097, %v338_v3  }
  0xf5   : > { %v3754_v20 = vpop.permute.xlu0 %400  ;;  %v3796_v36 = vpop.permute.xlu1 %505 }
  0xf6   : > { %v411_v21 = vmul.f32 %v3754_v20, %v3747_v16  ;;  %v410_v22 = vmul.f32 %v3754_v20, %v3750_v17  ;;  %v413_v25 = vmul.f32 %v3754_v20, %v3761_v23  ;;  %v412_v26 = vmul.f32 %v3754_v20, %v3764_v24 }
  0xf7   : > { %v409_v35 = vmul.f32 %v3754_v20, %v3788_v33  ;;  %v516_v37 = vmul.f32 %v3796_v36, %v3747_v16  ;;  %v515_v38 = vmul.f32 %v3796_v36, %v3750_v17  ;;  %v518_v39 = vmul.f32 %v3796_v36, %v3761_v23 }
  0xf8   : > { %443 = vrot.lane.b32.xlu0 %v411_v21, %s3528_s13  ;;  %441 = vrot.lane.b32.xlu1 %v410_v22, %s3528_s13  ;;  %v517_v40 = vmul.f32 %v3796_v36, %v3764_v24  ;;  %v514_v48 = vmul.f32 %v3796_v36, %v3788_v33 }
  0xf9   : > { %v3772_v27 = vpop.permute.xlu0 %404  ;;  %v3810_v41 = vpop.permute.xlu1 %509 }
  0xfa   : > { %v418_v28 = vmul.f32 %v3772_v27, %v3747_v16  ;;  %v417_v29 = vmul.f32 %v3772_v27, %v3750_v17  ;;  %v420_v31 = vmul.f32 %v3772_v27, %v3761_v23  ;;  %v419_v32 = vmul.f32 %v3772_v27, %v3764_v24 }
  0xfb   : > { %v416_v34 = vmul.f32 %v3772_v27, %v3788_v33  ;;  %v523_v42 = vmul.f32 %v3810_v41, %v3747_v16  ;;  %v522_v43 = vmul.f32 %v3810_v41, %v3750_v17  ;;  %v525_v44 = vmul.f32 %v3810_v41, %v3761_v23 }
  0xfc   : > { %447 = vrot.lane.b32.xlu0 %v413_v25, %s3528_s13  ;;  %445 = vrot.lane.b32.xlu1 %v412_v26, %s3528_s13  ;;  %v524_v45 = vmul.f32 %v3810_v41, %v3764_v24  ;;  %v521_v47 = vmul.f32 %v3810_v41, %v3788_v33 }
  0xfe   : > { %v3826_v46 = vpop.permute.xlu0 %610  ;;  %v3840_v51 = vpop.permute.xlu1 %614 }
  0xff   : > { %v621_v49 = vmul.f32 %v3826_v46, %v3747_v16  ;;  %v620_v50 = vmul.f32 %v3826_v46, %v3750_v17  ;;  %v623_v52 = vmul.f32 %v3826_v46, %v3761_v23  ;;  %v622_v53 = vmul.f32 %v3826_v46, %v3764_v24 }
 0x100   : > { %457 = vrot.lane.b32.xlu0 %v418_v28, %s3528_s13  ;;  %455 = vrot.lane.b32.xlu1 %v417_v29, %s3528_s13  ;;  %v628_v54 = vmul.f32 %v3840_v51, %v3747_v16  ;;  %v627_v55 = vmul.f32 %v3840_v51, %v3750_v17  ;;  %v630_v56 = vmul.f32 %v3840_v51, %v3761_v23 }
 0x101   : > { %v629_v57 = vmul.f32 %v3840_v51, %v3764_v24  ;;  %v626_v59 = vmul.f32 %v3840_v51, %v3788_v33  ;;  %v619_v60 = vmul.f32 %v3826_v46, %v3788_v33 }
 0x103   : > { %v3860_v58 = vpop.permute.xlu1 %715  ;;  %v3874_v63 = vpop.permute.xlu0 %719 }
 0x104   : > { %461 = vrot.lane.b32.xlu0 %v420_v31, %s3528_s13  ;;  %459 = vrot.lane.b32.xlu1 %v419_v32, %s3528_s13  ;;  %v726_v61 = vmul.f32 %v3860_v58, %v3747_v16  ;;  %v725_v62 = vmul.f32 %v3860_v58, %v3750_v17  ;;  %v728_v0 = vmul.f32 %v3860_v58, %v3761_v23 }
 0x105   : > { %v727_v1 = vmul.f32 %v3860_v58, %v3764_v24  ;;  %v733_v2 = vmul.f32 %v3874_v63, %v3747_v16  ;;  %v732_v3 = vmul.f32 %v3874_v63, %v3750_v17  ;;  %v735_v4 = vmul.f32 %v3874_v63, %v3761_v23 }
 0x106   : > { %v734_v5 = vmul.f32 %v3874_v63, %v3764_v24  ;;  %v731_v7 = vmul.f32 %v3874_v63, %v3788_v33  ;;  %v724_v8 = vmul.f32 %v3860_v58, %v3788_v33 }
 0x108   : > { %453 = vrot.lane.b32.xlu0 %v416_v34, %s3528_s13  ;;  %439 = vrot.lane.b32.xlu1 %v409_v35, %s3528_s13  ;;  %v3894_v6 = vpop.permute.xlu1 %820  ;;  %v3932_v29 = vpop.permute.xlu0 %925 }
 0x109   : > { %v831_v10 = vmul.f32 %v3894_v6, %v3747_v16  ;;  %v830_v11 = vmul.f32 %v3894_v6, %v3750_v17  ;;  %v833_v14 = vmul.f32 %v3894_v6, %v3761_v23  ;;  %v832_v18 = vmul.f32 %v3894_v6, %v3764_v24 }
 0x10a   : > { %v829_v31 = vmul.f32 %v3894_v6, %v3788_v33  ;;  %v941_v32 = vmul.f32 %v3932_v29, %v3747_v16  ;;  %v940_v34 = vmul.f32 %v3932_v29, %v3750_v17 }
 0x10c   : > { %548 = vrot.lane.b32.xlu0 %v516_v37, %s3529_s14  ;;  %546 = vrot.lane.b32.xlu1 %v515_v38, %s3529_s14  ;;  %v3906_v13 = vpop.permute.xlu1 %824  ;;  %v943_v37 = vmul.f32 %v3932_v29, %v3761_v23  ;;  %v942_v38 = vmul.f32 %v3932_v29, %v3764_v24 }
 0x10d   : > { %v838_v21 = vmul.f32 %v3906_v13, %v3747_v16  ;;  %v837_v22 = vmul.f32 %v3906_v13, %v3750_v17  ;;  %v840_v25 = vmul.f32 %v3906_v13, %v3761_v23  ;;  %v839_v26 = vmul.f32 %v3906_v13, %v3764_v24 }
 0x10e   : > { %v836_v30 = vmul.f32 %v3906_v13, %v3788_v33 }
 0x110   : > { %552 = vrot.lane.b32.xlu0 %v518_v39, %s3529_s14  ;;  %550 = vrot.lane.b32.xlu1 %v517_v40, %s3529_s14  ;;  %v3954_v40 = vpop.permute.xlu0 %1049 }
 0x111   : > { %v3916_v19 = vpop.permute.xlu1 %929  ;;  %5150 = vst [vmem:[#allocation17_spill] sm:$0xff] %v3954_v40 }
 0x112   : > { %5146 = vst [vmem:[#allocation13_spill] sm:$0xff] %v3916_v19 }
 0x114   : > { %562 = vrot.lane.b32.xlu0 %v523_v42, %s3529_s14  ;;  %560 = vrot.lane.b32.xlu1 %v522_v43, %s3529_s14  ;;  %v949_v42 = vmul.f32 %v3916_v19, %v3747_v16  ;;  %v948_v43 = vmul.f32 %v3916_v19, %v3750_v17 }
 0x116   : > { %v3928_v28 = vpop.permute.xlu1 %1045 }
 0x117   : > { %5147 = vst [vmem:[#allocation14_spill] sm:$0xff] %v3928_v28 }
 0x118   : > { %566 = vrot.lane.b32.xlu0 %v525_v44, %s3529_s14  ;;  %564 = vrot.lane.b32.xlu1 %v524_v45, %s3529_s14  ;;  %v3966_v45 = vpop.permute.xlu0 %341 }
 0x119   : > { %5152 = vst [vmem:[#allocation19_spill] sm:$0xff] %v3966_v45 }
 0x11b   : > { %v3944_v35 = vpop.permute.xlu1 %1160 }
 0x11c   : > { %558 = vrot.lane.b32.xlu0 %v521_v47, %s3529_s14  ;;  %544 = vrot.lane.b32.xlu1 %v514_v48, %s3529_s14  ;;  %5148 = vst [vmem:[#allocation15_spill] sm:$0xff] %v3944_v35  ;;  %v951_v47 = vmul.f32 %v3916_v19, %v3761_v23  ;;  %v950_v48 = vmul.f32 %v3916_v19, %v3764_v24 }
 0x11f   : > { %v3952_v39 = vpop.permute.xlu1 %1164 }
 0x120   : > { %653 = vrot.lane.b32.xlu0 %v621_v49, %s3530_s30  ;;  %651 = vrot.lane.b32.xlu1 %v620_v50, %s3530_s30  ;;  %5149 = vst [vmem:[#allocation16_spill] sm:$0xff] %v3952_v39  ;;  %v1275_v49 = vld [vmem:[%s5074_s2 + $0x8] sm:$0xff]  ;;  %v1274_v50 = vld [vmem:[%s5074_s2] sm:$0xff] }
 0x124   : > { %657 = vrot.lane.b32.xlu0 %v623_v52, %s3530_s30  ;;  %655 = vrot.lane.b32.xlu1 %v622_v53, %s3530_s30  ;;  %v3964_v44 = vpop.permute.xlu1 %346 }
 0x125   : > { %5151 = vst [vmem:[#allocation18_spill] sm:$0xff] %v3964_v44 }
 0x128   : > { %667 = vrot.lane.b32.xlu0 %v628_v54, %s3530_s30  ;;  %665 = vrot.lane.b32.xlu1 %v627_v55, %s3530_s30 }
 0x12c   : > { %671 = vrot.lane.b32.xlu0 %v630_v56, %s3530_s30  ;;  %669 = vrot.lane.b32.xlu1 %v629_v57, %s3530_s30  ;;  %v947_v56 = vmul.f32 %v3916_v19, %v3788_v33  ;;  %v939_v57 = vmul.f32 %v3932_v29, %v3788_v33 }
 0x130   : > { %663 = vrot.lane.b32.xlu0 %v626_v59, %s3530_s30  ;;  %649 = vrot.lane.b32.xlu1 %v619_v60, %s3530_s30 }
 0x134   : > { %758 = vrot.lane.b32.xlu0 %v726_v61, %s3531_s15  ;;  %756 = vrot.lane.b32.xlu1 %v725_v62, %s3531_s15  ;;  %v1056_v61 = vmul.f32 %v3928_v28, %v3747_v16  ;;  %v1055_v62 = vmul.f32 %v3928_v28, %v3750_v17 }
 0x138   : > { %762 = vrot.lane.b32.xlu0 %v728_v0, %s3531_s15  ;;  %760 = vrot.lane.b32.xlu1 %v727_v1, %s3531_s15 }
 0x13c   : > { %772 = vrot.lane.b32.xlu0 %v733_v2, %s3531_s15  ;;  %770 = vrot.lane.b32.xlu1 %v732_v3, %s3531_s15  ;;  %v1058_v2 = vmul.f32 %v3928_v28, %v3761_v23  ;;  %v1057_v3 = vmul.f32 %v3928_v28, %v3764_v24 }
 0x140   : > { %776 = vrot.lane.b32.xlu0 %v735_v4, %s3531_s15  ;;  %774 = vrot.lane.b32.xlu1 %v734_v5, %s3531_s15 }
 0x144   : > { %768 = vrot.lane.b32.xlu0 %v731_v7, %s3531_s15  ;;  %754 = vrot.lane.b32.xlu1 %v724_v8, %s3531_s15  ;;  %v1064_v7 = vmul.f32 %v3954_v40, %v3747_v16  ;;  %v1063_v8 = vmul.f32 %v3954_v40, %v3750_v17 }
 0x148   : > { %863 = vrot.lane.b32.xlu0 %v831_v10, %s3532_s16  ;;  %861 = vrot.lane.b32.xlu1 %v830_v11, %s3532_s16 }
 0x14c   : > { %867 = vrot.lane.b32.xlu0 %v833_v14, %s3532_s16  ;;  %865 = vrot.lane.b32.xlu1 %v832_v18, %s3532_s16  ;;  %v1066_v14 = vmul.f32 %v3954_v40, %v3761_v23  ;;  %v1065_v18 = vmul.f32 %v3954_v40, %v3764_v24 }
 0x150   : > { %877 = vrot.lane.b32.xlu0 %v838_v21, %s3532_s16  ;;  %875 = vrot.lane.b32.xlu1 %v837_v22, %s3532_s16 }
 0x154   : > { %881 = vrot.lane.b32.xlu0 %v840_v25, %s3532_s16  ;;  %879 = vrot.lane.b32.xlu1 %v839_v26, %s3532_s16  ;;  %v1062_v25 = vmul.f32 %v3954_v40, %v3788_v33  ;;  %v1054_v26 = vmul.f32 %v3928_v28, %v3788_v33 }
 0x158   : > { %873 = vrot.lane.b32.xlu0 %v836_v30, %s3532_s16  ;;  %859 = vrot.lane.b32.xlu1 %v829_v31, %s3532_s16 }
 0x15c   : > { %977 = vrot.lane.b32.xlu0 %v941_v32, %s3533_s17  ;;  %975 = vrot.lane.b32.xlu1 %v940_v34, %s3533_s17  ;;  %v1171_v32 = vmul.f32 %v3944_v35, %v3747_v16  ;;  %v1170_v34 = vmul.f32 %v3944_v35, %v3750_v17 }
 0x160   : > { %981 = vrot.lane.b32.xlu0 %v943_v37, %s3533_s17  ;;  %979 = vrot.lane.b32.xlu1 %v942_v38, %s3533_s17 }
 0x164   : > { %993 = vrot.lane.b32.xlu0 %v949_v42, %s3533_s17  ;;  %991 = vrot.lane.b32.xlu1 %v948_v43, %s3533_s17  ;;  %v1173_v42 = vmul.f32 %v3944_v35, %v3761_v23  ;;  %v1172_v43 = vmul.f32 %v3944_v35, %v3764_v24 }
 0x168   : > { %997 = vrot.lane.b32.xlu0 %v951_v47, %s3533_s17  ;;  %995 = vrot.lane.b32.xlu1 %v950_v48, %s3533_s17 }
 0x16a   : > { %v3980_v52 = vpop.permute.xlu0 %443  ;;  %v3982_v53 = vpop.permute.xlu1 %441 }
 0x16c   : > { %1283 = vperm.xlu0 %3096, %v1275_v49   ;;  %1278 = vperm.xlu1 %3097, %v1274_v50   ;;  %v1179_v49 = vmul.f32 %v3952_v39, %v3747_v16  ;;  %v1178_v50 = vmul.f32 %v3952_v39, %v3750_v17 }
 0x16e   : > { %v3984_v54 = vpop.permute.xlu0 %447  ;;  %v3986_v55 = vpop.permute.xlu1 %445 }
 0x16f   : > { %5153 = vst [vmem:[#allocation20_spill] sm:$0xff] %v3984_v54 }
 0x170   : > { %989 = vrot.lane.b32.xlu0 %v947_v56, %s3533_s17  ;;  %973 = vrot.lane.b32.xlu1 %v939_v57, %s3533_s17 }
 0x172   : > { %v3994_v59 = vpop.permute.xlu0 %457  ;;  %v3996_v60 = vpop.permute.xlu1 %455 }
 0x174   : > { %1092 = vrot.lane.b32.xlu0 %v1056_v61, %s3534_s27  ;;  %1090 = vrot.lane.b32.xlu1 %v1055_v62, %s3534_s27  ;;  %v1181_v61 = vmul.f32 %v3952_v39, %v3761_v23  ;;  %v1180_v62 = vmul.f32 %v3952_v39, %v3764_v24 }
 0x176   : > { %v4004_v0 = vpop.permute.xlu0 %461  ;;  %v4006_v1 = vpop.permute.xlu1 %459 }
 0x177   : > { %5154 = vst [vmem:[#allocation21_spill] sm:$0xff] %v4004_v0 }
 0x178   : > { %1096 = vrot.lane.b32.xlu0 %v1058_v2, %s3534_s27  ;;  %1094 = vrot.lane.b32.xlu1 %v1057_v3, %s3534_s27  ;;  %v934_v2 = vsub.s32 7, %v3737_v12 }
 0x17a   : > { %v4014_v4 = vpop.permute.xlu0 %453  ;;  %v4016_v5 = vpop.permute.xlu1 %439 }
 0x17c   : > { %1108 = vrot.lane.b32.xlu0 %v1064_v7, %s3534_s27  ;;  %1106 = vrot.lane.b32.xlu1 %v1063_v8, %s3534_s27  ;;  %v1177_v8 = vmul.f32 %v3952_v39, %v3788_v33 }
 0x17e   : > { %v4024_v10 = vpop.permute.xlu0 %548  ;;  %v4026_v11 = vpop.permute.xlu1 %546 }
 0x180   : > { %1112 = vrot.lane.b32.xlu0 %v1066_v14, %s3534_s27  ;;  %1110 = vrot.lane.b32.xlu1 %v1065_v18, %s3534_s27  ;;  %v1169_v14 = vmul.f32 %v3944_v35, %v3788_v33  ;;  %v935_v18 = vrot.slane %v3744_v15, %v934_v2  ;;  %v352_v2 = vsub.s32 0, %v3737_v12 }
 0x182   : > { %v4034_v21 = vpop.permute.xlu0 %552  ;;  %v4036_v22 = vpop.permute.xlu1 %550 }
 0x184   : > { %1104 = vrot.lane.b32.xlu0 %v1062_v25, %s3534_s27  ;;  %1088 = vrot.lane.b32.xlu1 %v1054_v26, %s3534_s27  ;;  %v356_v25 = vsub.s32 1, %v3737_v12 }
 0x186   : > { %v4044_v30 = vpop.permute.xlu0 %562  ;;  %v4046_v31 = vpop.permute.xlu1 %560 }
 0x188   : > { %1207 = vrot.lane.b32.xlu0 %v1171_v32, %s3535_s29  ;;  %1205 = vrot.lane.b32.xlu1 %v1170_v34, %s3535_s29  ;;  %v952_v34 = vmul.f32 %v935_v18, %v3916_v19 }
 0x18a   : > { %v4054_v37 = vpop.permute.xlu0 %566  ;;  %v4056_v38 = vpop.permute.xlu1 %564 }
 0x18c   : > { %1211 = vrot.lane.b32.xlu0 %v1173_v42, %s3535_s29  ;;  %1209 = vrot.lane.b32.xlu1 %v1172_v43, %s3535_s29  ;;  %v944_v42 = vmul.f32 %v935_v18, %v3932_v29  ;;  %v4104_v43 = vrot.slane %v3744_v15, %v356_v25  ;;  %v1067_v25 = vmul.f32 %v3954_v40, %v935_v18 }
 0x18e   : > { %v4064_v47 = vpop.permute.xlu0 %558  ;;  %v4066_v48 = vpop.permute.xlu1 %544  ;;  %5155 = vst [vmem:[#allocation22_spill] sm:$0xff] %v4104_v43 }
 0x190   : > { %1223 = vrot.lane.b32.xlu0 %v1179_v49, %s3535_s29  ;;  %1221 = vrot.lane.b32.xlu1 %v1178_v50, %s3535_s29 }
 0x192   : > { %v4074_v56 = vpop.permute.xlu0 %653  ;;  %v4076_v57 = vpop.permute.xlu1 %651 }
 0x194   : > { %1227 = vrot.lane.b32.xlu0 %v1181_v61, %s3535_s29  ;;  %1225 = vrot.lane.b32.xlu1 %v1180_v62, %s3535_s29  ;;  %v415_v61 = vmul.f32 %v3772_v27, %v4104_v43  ;;  %v408_v62 = vmul.f32 %v3754_v20, %v4104_v43 }
 0x196   : > { %v4085_v3 = vpop.permute.xlu0 %657  ;;  %v4087_v7 = vpop.permute.xlu1 %655 }
 0x198   : > { %1219 = vrot.lane.b32.xlu0 %v1177_v8, %s3535_s29  ;;  %1203 = vrot.lane.b32.xlu1 %v1169_v14, %s3535_s29 }
 0x19a   : > { %v4097_v26 = vpop.permute.xlu0 %667  ;;  %v4099_v32 = vpop.permute.xlu1 %665 }
 0x19c   : > { %999 = vrot.lane.b32.xlu0 %v952_v34, %s3533_s17  ;;  %983 = vrot.lane.b32.xlu1 %v944_v42, %s3533_s17  ;;  %v1059_v34 = vmul.f32 %v3928_v28, %v935_v18  ;;  %v4126_v42 = vrot.slane %v3744_v15, %v352_v2 }
 0x19e   : > { %v4108_v49 = vpop.permute.xlu0 %671  ;;  %v4110_v50 = vpop.permute.xlu1 %669  ;;  %5156 = vst [vmem:[#allocation23_spill] sm:$0xff] %v4126_v42  ;;  %v407_v9 = vmul.f32 %v3754_v20, %v4126_v42 }
 0x1a0   : > { %451 = vrot.lane.b32.xlu0 %v415_v61, %s3528_s13  ;;  %437 = vrot.lane.b32.xlu1 %v408_v62, %s3528_s13  ;;  %v414_v62 = vmul.f32 %v3772_v27, %v4126_v42 }
 0x1a2   : > { %v4119_v8 = vpop.permute.xlu0 %663  ;;  %v4121_v14 = vpop.permute.xlu1 %649 }
 0x1a4   : > { %1114 = vrot.lane.b32.xlu0 %v1067_v25, %s3534_s27  ;;  %1098 = vrot.lane.b32.xlu1 %v1059_v34, %s3534_s27  ;;  %v520_v25 = vmul.f32 %v3810_v41, %v4104_v43  ;;  %v513_v34 = vmul.f32 %v3796_v36, %v4104_v43 }
 0x1a6   : > { %v4130_v12 = vpop.permute.xlu0 %758  ;;  %v4132_v61 = vpop.permute.xlu1 %756 }
 0x1a8   : > { %449 = vrot.lane.b32.xlu0 %v414_v62, %s3528_s13  ;;  %435 = vrot.lane.b32.xlu1 %v407_v9, %s3528_s13  ;;  %v1182_v9 = vmul.f32 %v3952_v39, %v935_v18  ;;  %v1174_v62 = vmul.f32 %v3944_v35, %v935_v18 }
 0x1aa   : > { %v4140_v15 = vpop.permute.xlu0 %762  ;;  %v4142_v2 = vpop.permute.xlu1 %760 }
 0x1ac   : > { %556 = vrot.lane.b32.xlu0 %v520_v25, %s3529_s14  ;;  %542 = vrot.lane.b32.xlu1 %v513_v34, %s3529_s14  ;;  %v519_v25 = vmul.f32 %v3810_v41, %v4126_v42  ;;  %v512_v34 = vmul.f32 %v3796_v36, %v4126_v42 }
 0x1ae   : > { %v4150_v27 = vpop.permute.xlu0 %772  ;;  %v4152_v20 = vpop.permute.xlu1 %770 }
 0x1b0   : > { %1229 = vrot.lane.b32.xlu0 %v1182_v9, %s3535_s29  ;;  %1213 = vrot.lane.b32.xlu1 %v1174_v62, %s3535_s29  ;;  %v625_v9 = vmul.f32 %v3840_v51, %v4104_v43  ;;  %v618_v62 = vmul.f32 %v3826_v46, %v4104_v43 }
 0x1b2   : > { %v4158_v40 = vpop.permute.xlu0 %776  ;;  %v4160_v28 = vpop.permute.xlu1 %774 }
 0x1b4   : > { %554 = vrot.lane.b32.xlu0 %v519_v25, %s3529_s14  ;;  %540 = vrot.lane.b32.xlu1 %v512_v34, %s3529_s14  ;;  %v617_v25 = vmul.f32 %v3826_v46, %v4126_v42  ;;  %v624_v34 = vmul.f32 %v3840_v51, %v4126_v42  ;;  %v729_v46 = vmul.f32 %v3874_v63, %v4126_v42 }
 0x1b5   : > { %v722_v51 = vmul.f32 %v3860_v58, %v4126_v42 }
 0x1b6   : > { %v4168_v39 = vpop.permute.xlu0 %768  ;;  %v4170_v18 = vpop.permute.xlu1 %754 }
 0x1b7   : > { %5157 = vst [vmem:[#allocation24_spill] sm:$0xff] %v4168_v39  ;;  %5158 = vst [vmem:[#allocation25_spill] sm:$0xff] %v4170_v18  ;;  %v835_v39 = vmul.f32 %v3906_v13, %v4104_v43 }
 0x1b8   : > { %661 = vrot.lane.b32.xlu0 %v625_v9, %s3530_s30  ;;  %647 = vrot.lane.b32.xlu1 %v618_v62, %s3530_s30  ;;  %v730_v9 = vmul.f32 %v3874_v63, %v4104_v43  ;;  %v723_v62 = vmul.f32 %v3860_v58, %v4104_v43 }
 0x1ba   : > { %v4178_v41 = vpop.permute.xlu0 %863  ;;  %v4180_v36 = vpop.permute.xlu1 %861 }
 0x1bc   : > { %645 = vrot.lane.b32.xlu0 %v617_v25, %s3530_s30  ;;  %659 = vrot.lane.b32.xlu1 %v624_v34, %s3530_s30 }
 0x1be   : > { %v4188_v35 = vpop.permute.xlu0 %867  ;;  %v4190_v18 = vpop.permute.xlu1 %865 }
 0x1c0   : > { %766 = vrot.lane.b32.xlu0 %v730_v9, %s3531_s15  ;;  %752 = vrot.lane.b32.xlu1 %v723_v62, %s3531_s15  ;;  %v828_v9 = vmul.f32 %v3894_v6, %v4104_v43  ;;  %v834_v62 = vmul.f32 %v3906_v13, %v4126_v42 }
 0x1c2   : > { %v4202_v25 = vpop.permute.xlu0 %877  ;;  %v4204_v34 = vpop.permute.xlu1 %875 }
 0x1c3   : > { %5159 = vst [vmem:[#allocation26_spill] sm:$0xff] %v4202_v25  ;;  %5160 = vst [vmem:[#allocation27_spill] sm:$0xff] %v4204_v34  ;;  %v474_v34 = vsel %vm463_vm0, %v3994_v59, %v4006_v1  ;;  %v394_v25 = vmul.f32 %v3788_v33, %v3964_v44 }
 0x1c4   : > { %764 = vrot.lane.b32.xlu0 %v729_v46, %s3531_s15  ;;  %750 = vrot.lane.b32.xlu1 %v722_v51, %s3531_s15  ;;  %v827_v46 = vmul.f32 %v3894_v6, %v4126_v42  ;;  %v946_v51 = vmul.f32 %v3916_v19, %v4104_v43  ;;  %v937_v6 = vmul.f32 %v3932_v29, %v4126_v42 }
 0x1c6   : > { %v4214_v63 = vpop.permute.xlu0 %881  ;;  %v4216_v58 = vpop.permute.xlu1 %879 }
 0x1c7   : > { %5161 = vst [vmem:[#allocation28_spill] sm:$0xff] %v4214_v63  ;;  %5162 = vst [vmem:[#allocation29_spill] sm:$0xff] %v4216_v58  ;;  %v388_v58 = vmul.f32 %v3750_v17, %v3966_v45 }
 0x1c8   : > { %871 = vrot.lane.b32.xlu0 %v835_v39, %s3532_s16  ;;  %857 = vrot.lane.b32.xlu1 %v828_v9, %s3532_s16  ;;  %v938_v39 = vmul.f32 %v3932_v29, %v4104_v43 }
 0x1ca   : > { %v4228_v9 = vpop.permute.xlu0 %873  ;;  %v4230_v63 = vpop.permute.xlu1 %859 }
 0x1cb   : > { %5163 = vst [vmem:[#allocation30_spill] sm:$0xff] %v4228_v9  ;;  %5164 = vst [vmem:[#allocation31_spill] sm:$0xff] %v4230_v63 }
 0x1cc   : > { %869 = vrot.lane.b32.xlu0 %v834_v62, %s3532_s16  ;;  %855 = vrot.lane.b32.xlu1 %v827_v46, %s3532_s16 }
 0x1ce   : > { %v4237_v13 = vpop.permute.xlu0 %977  ;;  %v4239_v62 = vpop.permute.xlu1 %975 }
 0x1d0   : > { %987 = vrot.lane.b32.xlu0 %v946_v51, %s3533_s17  ;;  %971 = vrot.lane.b32.xlu1 %v938_v39, %s3533_s17 }
 0x1d2   : > { %v4241_v46 = vpop.permute.xlu0 %981  ;;  %v4243_v19 = vpop.permute.xlu1 %979 }
 0x1d3   : > { %5165 = vst [vmem:[#allocation32_spill] sm:$0xff] %v4241_v46  ;;  %5166 = vst [vmem:[#allocation33_spill] sm:$0xff] %v4243_v19 }
 0x1d4   : > { %969 = vrot.lane.b32.xlu1 %v937_v6, %s3533_s17 }
 0x1d6   : > { %v4245_v43 = vpop.permute.xlu0 %993  ;;  %v4247_v63 = vpop.permute.xlu1 %991 }
 0x1d7   : > { %5167 = vst [vmem:[#allocation34_spill] sm:$0xff] %v4245_v43  ;;  %5168 = vst [vmem:[#allocation35_spill] sm:$0xff] %v4247_v63  ;;  %v4265_v63 = vmul.f32 %v3761_v23, %v3966_v45  ;;  %v468_v43 = vsel %vm463_vm0, %v3980_v52, %v3986_v55 }
 0x1d9   : > { %5175 = vst [vmem:[#allocation42_spill] sm:$0xff] %v4265_v63  ;;  %v467_v63 = vsel %vm463_vm0, %v3982_v53, %v3980_v52  ;;  %v475_v52 = vsel %vm463_vm0, %v4006_v1, %v4004_v0 }
 0x1da   : > { %v4249_v51 = vpop.permute.xlu0 %997  ;;  %v4251_v39 = vpop.permute.xlu1 %995 }
 0x1db   : > { %5169 = vst [vmem:[#allocation36_spill] sm:$0xff] %v4249_v51  ;;  %5170 = vst [vmem:[#allocation37_spill] sm:$0xff] %v4251_v39  ;;  %v389_v51 = vmul.f32 %v3747_v16, %v3966_v45 }
 0x1dd   : > { %v494_v46 = vadd.f32 %v468_v43, %v389_v51 }
 0x1eb   : > { %v4253_v9 = vpop.permute.xlu0 %1283  ;;  %v4255_v29 = vpop.permute.xlu1 %1278 }
 0x1ec   : > { %5171 = vst [vmem:[#allocation38_spill] sm:$0xff] %v4253_v9  ;;  %5172 = vst [vmem:[#allocation39_spill] sm:$0xff] %v4255_v29  ;;  %v390_v9 = vmul.f32 %v3764_v24, %v3966_v45  ;;  %v387_v29 = vmul.f32 %v3788_v33, %v3966_v45  ;;  %v473_v45 = vsel %vm463_vm0, %v3996_v60, %v3994_v59 }
 0x1ed   : > { %v572_v33 = vsel %vm568_vm1, %v4026_v11, %v4024_v10 }
 0x1ef   : > { %v4257_v6 = vpop.permute.xlu0 %989  ;;  %v4259_v42 = vpop.permute.xlu1 %973 }
 0x1f0   : > { %5173 = vst [vmem:[#allocation40_spill] sm:$0xff] %v4257_v6  ;;  %5174 = vst [vmem:[#allocation41_spill] sm:$0xff] %v4259_v42  ;;  %v395_v6 = vmul.f32 %v3750_v17, %v3964_v44  ;;  %v396_v42 = vmul.f32 %v3747_v16, %v3964_v44  ;;  %v469_v16 = vsel %vm463_vm0, %v3986_v55, %v3984_v54 }
 0x1f1   : > { %v397_v17 = vmul.f32 %v3764_v24, %v3964_v44  ;;  %v472_v24 = vsel %vm463_vm0, %v4014_v4, %v3996_v60  ;;  %v466_v55 = vsel %vm463_vm0, %v4016_v5, %v3982_v53  ;;  %v493_v54 = vadd.f32 %v467_v63, %v388_v58 }
 0x1f2   : > { %v495_v59 = vadd.f32 %v469_v16, %v390_v9  ;;  %v500_v0 = vadd.f32 %v473_v45, %v395_v6  ;;  %v501_v19 = vadd.f32 %v474_v34, %v396_v42  ;;  %v573_v60 = vsel %vm568_vm1, %v4024_v10, %v4036_v22 }
 0x1f3   : > { %v4277_v39 = vpop.permute.xlu0 %1092  ;;  %v4279_v23 = vpop.permute.xlu1 %1090  ;;  %v574_v53 = vsel %vm568_vm1, %v4036_v22, %v4034_v21  ;;  %v502_v43 = vadd.f32 %v475_v52, %v397_v17  ;;  %v499_v63 = vadd.f32 %v472_v24, %v394_v25  ;;  %v492_v58 = vadd.f32 %v466_v55, %v387_v29 }
 0x1f4   : > { %v578_v9 = vsel %vm568_vm1, %v4046_v31, %v4044_v30  ;;  %v598_v51 = vadd.f32 %v572_v33, %v493_v54  ;;  %v579_v45 = vsel %vm568_vm1, %v4044_v30, %v4056_v38  ;;  %v580_v10 = vsel %vm568_vm1, %v4056_v38, %v4054_v37 }
 0x1f5   : > { %v577_v22 = vsel %vm568_vm1, %v4064_v47, %v4046_v31  ;;  %v599_v42 = vadd.f32 %v573_v60, %v494_v46  ;;  %v600_v25 = vadd.f32 %v574_v53, %v495_v59  ;;  %v571_v34 = vsel %vm568_vm1, %v4066_v48, %v4026_v11 }
 0x1f6   : > { %v677_v54 = vsel %vm673_vm2, %v4076_v57, %v4074_v56  ;;  %v605_v6 = vadd.f32 %v578_v9, %v500_v0  ;;  %v678_v38 = vsel %vm673_vm2, %v4074_v56, %v4087_v7  ;;  %v679_v31 = vsel %vm673_vm2, %v4087_v7, %v4085_v3 }
 0x1f7   : > { %v4312_v44 = vpop.permute.xlu0 %1096  ;;  %v4314_v1 = vpop.permute.xlu1 %1094  ;;  %v683_v11 = vsel %vm673_vm2, %v4099_v32, %v4097_v26  ;;  %v606_v46 = vadd.f32 %v579_v45, %v501_v19  ;;  %v607_v16 = vadd.f32 %v580_v10, %v502_v43  ;;  %v604_v17 = vadd.f32 %v577_v22, %v499_v63 }
 0x1f8   : > { %v684_v52 = vsel %vm673_vm2, %v4097_v26, %v4110_v50  ;;  %v597_v0 = vadd.f32 %v571_v34, %v492_v58  ;;  %v703_v24 = vadd.f32 %v677_v54, %v598_v51  ;;  %v685_v56 = vsel %vm673_vm2, %v4110_v50, %v4108_v49 }
 0x1f9   : > { %v782_v7 = vsel %vm778_vm3, %v4132_v61, %v4130_v12  ;;  %v704_v55 = vadd.f32 %v678_v38, %v599_v42  ;;  %v705_v59 = vadd.f32 %v679_v31, %v600_v25  ;;  %v710_v19 = vadd.f32 %v683_v11, %v605_v6 }
 0x1fa   : > { %v682_v33 = vsel %vm673_vm2, %v4119_v8, %v4099_v32  ;;  %v711_v53 = vadd.f32 %v684_v52, %v606_v46  ;;  %v676_v50 = vsel %vm673_vm2, %v4121_v14, %v4076_v57  ;;  %v783_v43 = vsel %vm778_vm3, %v4130_v12, %v4142_v2  ;;  %v5176_v46 = vld [vmem:[#allocation24_spill] sm:$0xff] }
 0x1fb   : > { %v4340_v29 = vpop.permute.xlu0 %1108  ;;  %v4342_v30 = vpop.permute.xlu1 %1106  ;;  %v887_v63 = vsel %vm883_vm4, %v4180_v36, %v4178_v41  ;;  %v712_v58 = vadd.f32 %v685_v56, %v607_v16  ;;  %v808_v9 = vadd.f32 %v782_v7, %v703_v24  ;;  %v784_v32 = vsel %vm778_vm3, %v4142_v2, %v4140_v15  ;;  %v5178_v24 = vld [vmem:[#allocation33_spill] sm:$0xff]  ;;  %v5179_v56 = vld [vmem:[#allocation32_spill] sm:$0xff] }
 0x1fc   : > { %v788_v51 = vsel %vm778_vm3, %v4152_v20, %v4150_v27  ;;  %v709_v45 = vadd.f32 %v682_v33, %v604_v17  ;;  %v789_v57 = vsel %vm778_vm3, %v4150_v27, %v4160_v28  ;;  %v790_v12 = vsel %vm778_vm3, %v4160_v28, %v4158_v40  ;;  %v5177_v17 = vld [vmem:[#allocation25_spill] sm:$0xff] }
 0x1fd   : > { %v1005_v10 = vsel %vm1001_vm5, %v4239_v62, %v4237_v13  ;;  %v702_v22 = vadd.f32 %v676_v50, %v597_v0  ;;  %v809_v42 = vadd.f32 %v783_v43, %v704_v55  ;;  %v913_v2 = vadd.f32 %v887_v63, %v808_v9 }
 0x1fe   : > { %v888_v25 = vsel %vm883_vm4, %v4178_v41, %v4190_v18  ;;  %v810_v27 = vadd.f32 %v784_v32, %v705_v59  ;;  %v815_v6 = vadd.f32 %v788_v51, %v710_v19  ;;  %v889_v28 = vsel %vm883_vm4, %v4190_v18, %v4188_v35  ;;  %v5180_v59 = vld [vmem:[#allocation26_spill] sm:$0xff]  ;;  %v5181_v19 = vld [vmem:[#allocation27_spill] sm:$0xff] }
 0x1ff   : > { %v4365_v60 = vpop.permute.xlu0 %1112  ;;  %v4367_v26 = vpop.permute.xlu1 %1110  ;;  %v1120_v38 = vsel %vm1116_vm6, %v4279_v23, %v4277_v39  ;;  %v816_v31 = vadd.f32 %v789_v57, %v711_v53  ;;  %v817_v11 = vadd.f32 %v790_v12, %v712_v58  ;;  %v787_v41 = vsel %vm778_vm3, %v5176_v46, %v4152_v20  ;;  %v5182_v20 = vld [vmem:[#allocation29_spill] sm:$0xff]  ;;  %v5183_v57 = vld [vmem:[#allocation34_spill] sm:$0xff]  ;;  %v5184_v12 = vld [vmem:[#allocation35_spill] sm:$0xff] }
 0x200   : > { %v1033_v16 = vadd.f32 %v1005_v10, %v913_v2  ;;  %v781_v52 = vsel %vm778_vm3, %v5177_v17, %v4132_v61  ;;  %v914_v0 = vadd.f32 %v888_v25, %v809_v42  ;;  %v1006_v18 = vsel %vm1001_vm5, %v4237_v13, %v5178_v24  ;;  %v5185_v25 = vld [vmem:[#allocation28_spill] sm:$0xff] }
 0x201   : > { %v1007_v7 = vsel %vm1001_vm5, %v5178_v24, %v5179_v56  ;;  %v915_v55 = vadd.f32 %v889_v28, %v810_v27  ;;  %v893_v33 = vsel %vm883_vm4, %v5181_v19, %v5180_v59  ;;  %v894_v53 = vsel %vm883_vm4, %v5180_v59, %v5182_v20  ;;  %v5186_v28 = vld [vmem:[#allocation30_spill] sm:$0xff]  ;;  %v5189_v59 = vld [vmem:[#allocation39_spill] sm:$0xff] }
 0x202   : > { %v1148_v50 = vadd.f32 %v1120_v38, %v1033_v16  ;;  %v814_v63 = vadd.f32 %v787_v41, %v709_v45  ;;  %v1121_v13 = vsel %vm1116_vm6, %v4277_v39, %v4314_v1  ;;  %v1122_v58 = vsel %vm1116_vm6, %v4314_v1, %v4312_v44  ;;  %v5187_v38 = vld [vmem:[#allocation37_spill] sm:$0xff] }
 0x203   : > { %v4396_v34 = vpop.permute.xlu0 %1104  ;;  %v4398_v54 = vpop.permute.xlu1 %1088  ;;  %v1034_v32 = vadd.f32 %v1006_v18, %v914_v0  ;;  %v1035_v51 = vadd.f32 %v1007_v7, %v915_v55  ;;  %v1012_v10 = vsel %vm1001_vm5, %v5184_v12, %v5183_v57  ;;  %v807_v2 = vadd.f32 %v781_v52, %v702_v22  ;;  %v5188_v7 = vld [vmem:[#allocation36_spill] sm:$0xff] }
 0x204   : > { %v920_v45 = vadd.f32 %v893_v33, %v815_v6  ;;  %v895_v39 = vsel %vm883_vm4, %v5182_v20, %v5185_v25  ;;  %v921_v27 = vadd.f32 %v894_v53, %v816_v31  ;;  %v892_v1 = vsel %vm883_vm4, %v5186_v28, %v5181_v19 }
 0x205   : > { %v1013_v41 = vsel %vm1001_vm5, %v5183_v57, %v5187_v38  ;;  %v1149_v16 = vadd.f32 %v1121_v13, %v1034_v32  ;;  %v1150_v0 = vadd.f32 %v1122_v58, %v1035_v51  ;;  %v1127_v6 = vsel %vm1116_vm6, %v4342_v30, %v4340_v29  ;;  %v5190_v13 = vld [vmem:[#allocation31_spill] sm:$0xff] }
 0x206   : > { %v1040_v22 = vadd.f32 %v1012_v10, %v920_v45  ;;  %v1014_v55 = vsel %vm1001_vm5, %v5187_v38, %v5188_v7  ;;  %v922_v53 = vadd.f32 %v895_v39, %v817_v11  ;;  %v886_v58 = vsel %vm883_vm4, %v5190_v13, %v4180_v36  ;;  %v5192_v45 = vld [vmem:[#allocation41_spill] sm:$0xff] }
 0x207   : > { %v1208_v61 = vpop.permute.xlu0 %1207  ;;  %v4424_v43 = vpop.permute.xlu1 %1205  ;;  %v1128_v57 = vsel %vm1116_vm6, %v4340_v29, %v4367_v26  ;;  %v1004_v36 = vsel %vm1001_vm5, %v5192_v45, %v4239_v62  ;;  %v1129_v39 = vsel %vm1116_vm6, %v4367_v26, %v4365_v60  ;;  %v1126_v26 = vsel %vm1116_vm6, %v4396_v34, %v4342_v30 }
 0x208   : > { %v1235_v9 = vsel %vm1231_vm7, %v4424_v43, %v1208_v61  ;;  %v1155_v51 = vadd.f32 %v1127_v6, %v1040_v22 }
 0x209   : > { %v1263_v42 = vadd.f32 %v1235_v9, %v1148_v50  ;;  %v919_v50 = vadd.f32 %v892_v1, %v814_v63  ;;  %v1041_v9 = vadd.f32 %v1013_v41, %v921_v27  ;;  %v1042_v63 = vadd.f32 %v1014_v55, %v922_v53  ;;  %v5194_v41 = vld [vmem:[#allocation18_spill] sm:$0xff] }
 0x20b   : > { %v4446_v24 = vpop.permute.xlu0 %1211  ;;  %v1210_v18 = vpop.permute.xlu1 %1209  ;;  %v4458_v19 = vadd.f32 %v5189_v59, %v1263_v42  ;;  %v1156_v62 = vadd.f32 %v1128_v57, %v1041_v9  ;;  %v1157_v6 = vadd.f32 %v1129_v39, %v1042_v63 }
 0x20c   : > { %v1236_v31 = vsel %vm1231_vm7, %v1208_v61, %v1210_v18  ;;  %v1237_v52 = vsel %vm1231_vm7, %v1210_v18, %v4446_v24  ;;  %v5191_v61 = vld [vmem:[#allocation40_spill] sm:$0xff]  ;;  %v912_v18 = vadd.f32 %v886_v58, %v807_v2  ;;  %v1119_v2 = vsel %vm1116_vm6, %v4398_v54, %v4279_v23 }
 0x20d   : > { %v1264_v33 = vadd.f32 %v1236_v31, %v1149_v16  ;;  %v1265_v20 = vadd.f32 %v1237_v52, %v1150_v0  ;;  %v1011_v32 = vsel %vm1001_vm5, %v5191_v61, %v5184_v12  ;;  %v1303_v27 = vmax.f32 %v4458_v19, 0.0  ;;  %v5195_v16 = vld [vmem:[#allocation12_spill] sm:$0xff]  ;;  %v5196_v52 = vld [vmem:[#allocation38_spill] sm:$0xff] }
 0x20e   : > { %v398_v0 = vmul.f32 %v5195_v16, %v5194_v41  ;;  %v1039_v22 = vadd.f32 %v1011_v32, %v919_v50  ;;  %v1032_v53 = vadd.f32 %v1004_v36, %v912_v18  ;;  %v5200_v16 = vld [vmem:[#allocation20_spill] sm:$0xff] }
 0x20f   : > { %v4470_v10 = vadd.f32 %v5189_v59, %v1264_v33  ;;  %v1224_v42 = vpop.permute.xlu0 %1223  ;;  %v1222_v11 = vpop.permute.xlu1 %1221  ;;  %v4481_v29 = vadd.f32 %v5189_v59, %v1265_v20 }
 0x210   : > { %v1242_v12 = vsel %vm1231_vm7, %v1222_v11, %v1224_v42  ;;  %v1154_v57 = vadd.f32 %v1126_v26, %v1039_v22  ;;  %v1147_v63 = vadd.f32 %v1119_v2, %v1032_v53  ;;  %v5201_v22 = vld [vmem:[#allocation21_spill] sm:$0xff] }
 0x211   : > { %5193 = vst [vmem:[#allocation24_spill] sm:$0xff] %v4481_v29  ;;  %v5128_v1 = vmax.f32 %v4470_v10, 0.0  ;;  %v1270_v38 = vadd.f32 %v1242_v12, %v1155_v51  ;;  %v5122_v58 = vmax.f32 %v4481_v29, 0.0 }
 0x213   : > { %v3098_v31 = vpack.i.bf16 %v5128_v1, %v1303_v27  ;;  %v4494_v55 = vadd.f32 %v5196_v52, %v1270_v38  ;;  %v4496_v33 = vpop.permute.xlu0 %1227  ;;  %v1226_v20 = vpop.permute.xlu1 %1225  ;;  %v5199_v38 = vld [vmem:[#allocation42_spill] sm:$0xff] }
 0x214   : > { %v1243_v50 = vsel %vm1231_vm7, %v1224_v42, %v1226_v20  ;;  %v1244_v30 = vsel %vm1231_vm7, %v1226_v20, %v4496_v33  ;;  %v496_v18 = vadd.f32 %v5200_v16, %v5199_v38  ;;  %v5203_v38 = vld [vmem:[#allocation22_spill] sm:$0xff] }
 0x215   : > { %v5127_v9 = vmax.f32 %v4494_v55, 0.0  ;;  %v1271_v32 = vadd.f32 %v1243_v50, %v1156_v62  ;;  %v1272_v51 = vadd.f32 %v1244_v30, %v1157_v6  ;;  %3099 = vrot.lane.b32.xlu1 %v3098_v31, %s3528_s13  ;;  %v503_v62 = vadd.f32 %v5201_v22, %v398_v0 }
 0x216   : > { %v601_v50 = vadd.f32 %v4034_v21, %v496_v18  ;;  %v393_v19 = vmul.f32 %v5203_v38, %v5194_v41 }
 0x217   : > { %v3103_v23 = vpack.i.bf16 %v5127_v9, %v5122_v58  ;;  %v4512_v42 = vadd.f32 %v5196_v52, %v1271_v32  ;;  %v4515_v36 = vadd.f32 %v5196_v52, %v1272_v51  ;;  %v4517_v39 = vpop.permute.xlu0 %1219  ;;  %v4519_v12 = vpop.permute.xlu1 %1203  ;;  %v608_v30 = vadd.f32 %v4054_v37, %v503_v62  ;;  %v5206_v58 = vld [vmem:[#allocation13_spill] sm:$0xff] }
 0x218   : > { %5198 = vst [vmem:[#allocation33_spill] sm:$0xff] %v4517_v39  ;;  %v1241_v6 = vsel %vm1231_vm7, %v4517_v39, %v1222_v11  ;;  %v1234_v26 = vsel %vm1231_vm7, %v4519_v12, %v4424_v43 }
 0x219   : > { %5197 = vst [vmem:[#allocation25_spill] sm:$0xff] %v4515_v36  ;;  %v5126_v31 = vmax.f32 %v4512_v42, 0.0  ;;  %v5123_v20 = vmax.f32 %v4515_v36, 0.0  ;;  %v1269_v53 = vadd.f32 %v1241_v6, %v1154_v57  ;;  %v1262_v2 = vadd.f32 %v1234_v26, %v1147_v63  ;;  %3104 = vrot.lane.b32.xlu0 %v3103_v23, %s3528_s13  ;;  %v5202_v23 = vld [vmem:[#allocation19_spill] sm:$0xff]  ;;  %v5204_v6 = vld [vmem:[#allocation14_spill] sm:$0xff] }
 0x21a   : > { %v706_v57 = vadd.f32 %v4085_v3, %v601_v50  ;;  %v713_v63 = vadd.f32 %v4108_v49, %v608_v30  ;;  %v386_v16 = vmul.f32 %v5203_v38, %v5202_v23  ;;  %v1053_v26 = vmul.f32 %v5204_v6, %v5203_v38  ;;  %v3252_v36 = vld [vmem:[#allocation4 + $0x1e0] ss:$8 sps:$4 sm:$0xff]  }
 0x21b   : > { %v3108_v11 = vpack.i.bf16 %v5123_v20, %v5126_v31  ;;  %v4539_v0 = vadd.f32 %v5196_v52, %v1269_v53  ;;  %v4542_v43 = vadd.f32 %v5189_v59, %v1262_v2  ;;  %v1000_v32 = vpop.permute.xlu0 %999  ;;  %v984_v51 = vpop.permute.xlu1 %983  ;;  %v3249_v20 = vld [vmem:[#allocation4 + $0x1d0] ss:$8 sps:$4 sm:$0xff]  }
 0x21c   : > { %v811_v18 = vadd.f32 %v4140_v15, %v706_v57  ;;  %v818_v22 = vadd.f32 %v4158_v40, %v713_v63  ;;  %v1015_v53 = vsel %vm1001_vm5, %v5188_v7, %v1000_v32  ;;  %v1008_v2 = vsel %vm1001_vm5, %v5179_v56, %v984_v51  ;;  %v5205_v32 = vld [vmem:[#allocation23_spill] sm:$0xff] }
 0x21d   : > { %v5124_v21 = vmax.f32 %v4539_v0, 0.0  ;;  %v5125_v37 = vmax.f32 %v4542_v43, 0.0  ;;  %3109 = vrot.lane.b32.xlu1 %v3108_v11, %s3528_s13  ;;  %v945_v56 = vmul.f32 %v5206_v58, %v5205_v32 }
 0x21e   : > { %v916_v15 = vadd.f32 %v4188_v35, %v811_v18  ;;  %v923_v50 = vadd.f32 %v5185_v25, %v818_v22  ;;  %v392_v22 = vmul.f32 %v5205_v32, %v5194_v41 }
 0x21f   : > { %v3113_v3 = vpack.i.bf16 %v5124_v21, %v5125_v37  ;;  %v4557_v62 = vpop.permute.xlu0 %451  ;;  %v438_v49 = vpop.permute.xlu1 %437  ;;  %v3250_v21 = vld [vmem:[#allocation4 + $0x1e4] ss:$8 sps:$4 sm:$0xff]  }
 0x220   : > { %v465_v40 = vsel %vm463_vm0, %v438_v49, %v4016_v5  ;;  %v1043_v11 = vadd.f32 %v1015_v53, %v923_v50  ;;  %v1036_v57 = vadd.f32 %v1008_v2, %v916_v15  ;;  %v1052_v5 = vmul.f32 %v5204_v6, %v5205_v32  ;;  %v5207_v6 = vld [vmem:[#allocation17_spill] sm:$0xff] }
 0x221   : > { %v4569_v30 = vadd.f32 %v465_v40, %v386_v16  ;;  %3114 = vrot.lane.b32.xlu0 %v3113_v3, %s3528_s13  ;;  %1086 = vrot.lane.b32.xlu1 %v1053_v26, %s3534_s27  ;;  %v385_v3 = vmul.f32 %v5205_v32, %v5202_v23  ;;  %v5208_v26 = vld [vmem:[#allocation15_spill] sm:$0xff] }
 0x223   : > { %v1115_v63 = vpop.permute.xlu0 %1114  ;;  %v1099_v7 = vpop.permute.xlu1 %1098 }
 0x224   : > { %v1130_v35 = vsel %vm1116_vm6, %v4365_v60, %v1115_v63  ;;  %v1123_v25 = vsel %vm1116_vm6, %v4312_v44, %v1099_v7  ;;  %v1061_v60 = vmul.f32 %v5207_v6, %v5203_v38  ;;  %v1168_v44 = vmul.f32 %v5208_v26, %v5203_v38  ;;  %v5209_v7 = vld [vmem:[#allocation16_spill] sm:$0xff] }
 0x225   : > { %v1158_v51 = vadd.f32 %v1130_v35, %v1043_v11  ;;  %v1151_v16 = vadd.f32 %v1123_v25, %v1036_v57  ;;  %985 = vrot.lane.b32.xlu0 %v945_v56, %s3533_s17  ;;  %1084 = vrot.lane.b32.xlu1 %v1052_v5, %s3534_s27  ;;  %v1060_v11 = vmul.f32 %v5207_v6, %v5205_v32 }
 0x226   : > { %v1167_v57 = vmul.f32 %v5208_v26, %v5205_v32  ;;  %v1176_v56 = vmul.f32 %v5209_v7, %v5203_v38  ;;  %v1175_v6 = vmul.f32 %v5209_v7, %v5205_v32  ;;  %v3220_v26 = vld [vmem:[#allocation4 + $0x144] ss:$8 sps:$4 sm:$0xff]   ;;  %v3225_v32 = vld [vmem:[#allocation4 + $0x150] ss:$8 sps:$4 sm:$0xff]   ;;  %v3234_v7 = vld [vmem:[#allocation4 + $0x180] ss:$8 sps:$4 sm:$0xff]  }
 0x227   : > { %v450_v18 = vpop.permute.xlu0 %449  ;;  %v436_v58 = vpop.permute.xlu1 %435  ;;  %v3253_v38 = vld [vmem:[#allocation4 + $0x1f4] ss:$8 sps:$4 sm:$0xff]  }
 0x228   : > { %v470_v53 = vsel %vm463_vm0, %v450_v18, %v4557_v62  ;;  %v464_v2 = vsel %vm463_vm0, %v436_v58, %v438_v49  ;;  %v3210_v58 = vld [vmem:[#allocation4 + $0x100] ss:$8 sps:$4 sm:$0xff]  }
 0x229   : > { %v4594_v40 = vadd.f32 %v470_v53, %v392_v22  ;;  %v4596_v15 = vadd.f32 %v464_v2, %v385_v3  ;;  %1102 = vrot.lane.b32.xlu0 %v1061_v60, %s3534_s27  ;;  %1201 = vrot.lane.b32.xlu1 %v1168_v44, %s3535_s29  ;;  %v3208_v22 = vld [vmem:[#allocation4 + $0x104] ss:$8 sps:$4 sm:$0xff]   ;;  %v3211_v3 = vld [vmem:[#allocation4 + $0x114] ss:$8 sps:$4 sm:$0xff]   ;;  %v3213_v60 = vld [vmem:[#allocation4 + $0x110] ss:$8 sps:$4 sm:$0xff]  }
 0x22a   : > { %2148 = vmatprep.subr.bf16.mxu0 %v3208_v22  ;;  %v3222_v44 = vld [vmem:[#allocation4 + $0x140] ss:$8 sps:$4 sm:$0xff]   ;;  %v3223_v53 = vld [vmem:[#allocation4 + $0x154] ss:$8 sps:$4 sm:$0xff]   ;;  %v3226_v2 = vld [vmem:[#allocation4 + $0x164] ss:$8 sps:$4 sm:$0xff]  }
 0x22b   : > { %v4600_v23 = vpop.permute.xlu0 %556  ;;  %v4602_v50 = vpop.permute.xlu1 %542  ;;  %2149 = vmatpush1.bf16.msra.mxu0 %v3210_v58  ;;  %v3238_v22 = vld [vmem:[#allocation4 + $0x1a4] ss:$8 sps:$4 sm:$0xff]   ;;  %v3240_v58 = vld [vmem:[#allocation4 + $0x1a0] ss:$8 sps:$4 sm:$0xff]  }
 0x22c   : > { %2150 = vmatprep.subr.bf16.mxu0 %v3211_v3 }
 0x22d   : > { %1100 = vrot.lane.b32.xlu0 %v1060_v11, %s3534_s27  ;;  %1199 = vrot.lane.b32.xlu1 %v1167_v57, %s3535_s29  ;;  %v3228_v11 = vld [vmem:[#allocation4 + $0x160] ss:$8 sps:$4 sm:$0xff]   ;;  %v3229_v57 = vld [vmem:[#allocation4 + $0x174] ss:$8 sps:$4 sm:$0xff]  }
 0x22f   : > { %v1230_v49 = vpop.permute.xlu0 %1229  ;;  %v1214_v63 = vpop.permute.xlu1 %1213  ;;  %2151 = vmatpush1.bf16.msra.mxu0 %v3213_v60  ;;  %v3243_v60 = vld [vmem:[#allocation4 + $0x1b0] ss:$8 sps:$4 sm:$0xff]  }
 0x230   : > { %v1245_v5 = vsel %vm1231_vm7, %v4496_v33, %v1230_v49  ;;  %v1238_v35 = vsel %vm1231_vm7, %v4446_v24, %v1214_v63  ;;  %v3214_v33 = vld [vmem:[#allocation4 + $0x124] ss:$8 sps:$4 sm:$0xff]   ;;  %v3216_v24 = vld [vmem:[#allocation4 + $0x120] ss:$8 sps:$4 sm:$0xff]   ;;  %v3231_v49 = vld [vmem:[#allocation4 + $0x170] ss:$8 sps:$4 sm:$0xff]  }
 0x231   : > { %v4616_v25 = vadd.f32 %v1245_v5, %v1158_v51  ;;  %v4618_v18 = vadd.f32 %v1238_v35, %v1151_v16  ;;  %1217 = vrot.lane.b32.xlu0 %v1176_v56, %s3535_s29  ;;  %2152 = vmatprep.subr.bf16.mxu0 %v3214_v33  ;;  %v3217_v51 = vld [vmem:[#allocation4 + $0x134] ss:$8 sps:$4 sm:$0xff]   ;;  %v3219_v16 = vld [vmem:[#allocation4 + $0x130] ss:$8 sps:$4 sm:$0xff]   ;;  %v3232_v63 = vld [vmem:[#allocation4 + $0x184] ss:$8 sps:$4 sm:$0xff]  }
 0x232   : > { %v3235_v56 = vld [vmem:[#allocation4 + $0x194] ss:$8 sps:$4 sm:$0xff]   ;;  %v3237_v35 = vld [vmem:[#allocation4 + $0x190] ss:$8 sps:$4 sm:$0xff]  }
 0x233   : > { %2153 = vmatpush1.bf16.msra.mxu0 %v3216_v24  ;;  %v4624_v5 = vpop.permute.xlu1 %540  ;;  %v4628_v33 = vpop.permute.xlu0 %554  ;;  %v3244_v24 = vld [vmem:[#allocation4 + $0x1c4] ss:$8 sps:$4 sm:$0xff]  }
 0x234   : > { %2154 = vmatprep.subr.bf16.mxu0 %v3217_v51 }
 0x235   : > { %1215 = vrot.lane.b32.xlu0 %v1175_v6, %s3535_s29  ;;  %v3241_v6 = vld [vmem:[#allocation4 + $0x1b4] ss:$8 sps:$4 sm:$0xff]  }
 0x237   : > { %2155 = vmatpush1.bf16.msra.mxu0 %v3219_v16  ;;  %v4626_v3 = vpop.permute.xlu1 %647  ;;  %v4632_v16 = vpop.permute.xlu0 %661 }
 0x238   : > { %2156 = vmatprep.subr.bf16.mxu0 %v3220_v26 }
 0x23b   : > { %2157 = vmatpush1.bf16.msra.mxu0 %v3222_v44  ;;  %v4630_v51 = vpop.permute.xlu1 %659  ;;  %v4636_v44 = vpop.permute.xlu0 %645 }
 0x23c   : > { %2158 = vmatprep.subr.bf16.mxu0 %v3223_v53 }
 0x23f   : > { %2159 = vmatpush1.bf16.msra.mxu0 %v3225_v32  ;;  %v4634_v26 = vpop.permute.xlu1 %752  ;;  %v4640_v32 = vpop.permute.xlu0 %766 }
 0x240   : > { %2160 = vmatprep.subr.bf16.mxu0 %v3226_v2 }
 0x243   : > { %2161 = vmatpush1.bf16.msra.mxu0 %v3228_v11  ;;  %v4638_v53 = vpop.permute.xlu1 %750  ;;  %v4644_v11 = vpop.permute.xlu0 %764 }
 0x244   : > { %2162 = vmatprep.subr.bf16.mxu0 %v3229_v57 }
 0x247   : > { %2163 = vmatpush1.bf16.msra.mxu0 %v3231_v49  ;;  %v4642_v2 = vpop.permute.xlu1 %857  ;;  %v4648_v49 = vpop.permute.xlu0 %871 }
 0x248   : > { %2164 = vmatprep.subr.bf16.mxu0 %v3232_v63 }
 0x24b   : > { %2165 = vmatpush1.bf16.msra.mxu0 %v3234_v7  ;;  %v4646_v57 = vpop.permute.xlu1 %855  ;;  %v4652_v7 = vpop.permute.xlu0 %869 }
 0x24c   : > { %2166 = vmatprep.subr.bf16.mxu0 %v3235_v56 }
 0x24f   : > { %2167 = vmatpush1.bf16.msra.mxu0 %v3237_v35  ;;  %v4650_v63 = vpop.permute.xlu1 %971  ;;  %v3246_v35 = vld [vmem:[#allocation4 + $0x1c0] ss:$8 sps:$4 sm:$0xff]  }
 0x250   : > { %2168 = vmatprep.subr.bf16.mxu0 %v3238_v22  ;;  %v3247_v22 = vld [vmem:[#allocation4 + $0x1d4] ss:$8 sps:$4 sm:$0xff]  }
 0x253   : > { %2169 = vmatpush1.bf16.msra.mxu0 %v3240_v58  ;;  %v4654_v56 = vpop.permute.xlu1 %969  ;;  %v4656_v58 = vpop.permute.xlu0 %987 }
 0x254   : > { %2170 = vmatprep.subr.bf16.mxu0 %v3241_v6 }
 0x257   : > { %2171 = vmatpush1.bf16.msra.mxu0 %v3243_v60 }
 0x258   : > { %2172 = vmatprep.subr.bf16.mxu0 %v3244_v24 }
 0x25b   : > { %2173 = vmatpush1.bf16.msra.mxu0 %v3246_v35  ;;  %v5210_v35 = vmax.f32 %v4470_v10, 0.0  ;;  %v4685_v10 = vadd.f32 %v5196_v52, %v4616_v25  ;;  %v5212_v25 = vmax.f32 %v4494_v55, 0.0  ;;  %v675_v55 = vsel %vm673_vm2, %v4626_v3, %v4121_v14 }
 0x25c   : > { %2174 = vmatprep.subr.bf16.mxu0 %v3247_v22  ;;  %v780_v14 = vsel %vm778_vm3, %v4634_v26, %v5177_v17 }
 0x25f   : > { %2175 = vmatpush1.bf16.msra.mxu0 %v3249_v20  ;;  %v471_v20 = vsel %vm463_vm0, %v4557_v62, %v4014_v4 }
 0x260   : > { %2176 = vmatprep.subr.bf16.mxu0 %v3250_v21  ;;  %v498_v62 = vadd.f32 %v471_v20, %v393_v19 }
 0x263   : > { %2177 = vmatpush1.bf16.msra.mxu0 %v3252_v36 }
 0x264   : > { %2178 = vmatprep.subr.bf16.mxu0 %v3253_v38 }
 0x287   : > { %v3100_v6 = vpop.permute.xlu1 %3099 }
 0x288   : > { %v3102_v60 = vunpack.i.h.bf16 %v3100_v6  ;;  %v3101_v24 = vunpack.i.l.bf16 %v3100_v6 }
 0x28a   : > { %v1359_v31 = vsel %vm463_vm0, %v3101_v24, %v3102_v60 }
 0x28b   : > { %v4658_v37 = vpop.permute.xlu0 %3104  ;;  %v4667_v29 = vmax.f32 %v1303_v27, %v1359_v31  ;;  %v4689_v27 = vadd.f32 %v5189_v59, %v4618_v18 }
 0x28c   : > { %v5132_v9 = vunpack.i.l.bf16 %v4658_v37  ;;  %v3107_v21 = vunpack.i.h.bf16 %v4658_v37 }
 0x28e   : > { %v1360_v1 = vsel %vm463_vm0, %v3102_v60, %v5132_v9 }
 0x28f   : > { %v4671_v22 = vmax.f32 %v5210_v35, %v1360_v1  ;;  %v4673_v6 = vpop.permute.xlu1 %3109  ;;  %v570_v1 = vsel %vm568_vm1, %v4602_v50, %v4066_v48  ;;  %v5213_v35 = vmax.f32 %v4512_v42, 0.0  ;;  %v3255_v48 = vld [vmem:[#allocation4 + $0x1f0] ss:$8 sps:$4 sm:$0xff]  }
 0x290   : > { %v5134_v39 = vunpack.i.h.bf16 %v4673_v6  ;;  %v3111_v60 = vunpack.i.l.bf16 %v4673_v6  ;;  %v596_v19 = vadd.f32 %v570_v1, %v4569_v30  ;;  %2179 = vmatpush1.bf16.msra.mxu0 %v3255_v48  ;;  %v5215_v48 = vmax.f32 %v4539_v0, 0.0 }
 0x291   : > { %5211 = vst [vmem:[#allocation32_spill] sm:$0xff] %v4671_v22  ;;  %v3118_v4 = vpack.i.bf16 %v4671_v22, %v4667_v29 }
 0x292   : > { %v1365_v31 = vsel %vm463_vm0, %v3107_v21, %v3111_v60  ;;  %v1366_v41 = vsel %vm463_vm0, %v3111_v60, %v5134_v39  ;;  %v576_v60 = vsel %vm568_vm1, %v4600_v23, %v4064_v47  ;;  %v569_v47 = vsel %vm568_vm1, %v4624_v5, %v4602_v50 }
 0x293   : > { %v4702_v18 = vmax.f32 %v5212_v25, %v1365_v31  ;;  %v4706_v9 = vmax.f32 %v5213_v35, %v1366_v41  ;;  %v4708_v36 = vpop.permute.xlu0 %3114  ;;  %v1087_v22 = vpop.permute.xlu1 %1086  ;;  %3119 = vrot.lane.b32.xlu1 %v3118_v4, %s3530_s30  ;;  %v1313_v31 = vmax.f32 %v4685_v10, 0.0  ;;  %v1306_v4 = vmax.f32 %v4689_v27, 0.0  ;;  %v3340_v27 = vld [vmem:[#allocation4 + $0xb4] ss:$8 sps:$4 sm:$0xff]  }
 0x294   : > { %v3117_v20 = vunpack.i.h.bf16 %v4708_v36  ;;  %v3116_v42 = vunpack.i.l.bf16 %v4708_v36  ;;  %v701_v38 = vadd.f32 %v675_v55, %v596_v19  ;;  %v5214_v25 = vmax.f32 %v4542_v43, 0.0  ;;  %v3273_v36 = vld [vmem:[#allocation4 + $0x254] ss:$8 sps:$4 sm:$0xff]  }
 0x295   : > { %v3123_v41 = vpack.i.bf16 %v4706_v9, %v4702_v18  ;;  %v603_v17 = vadd.f32 %v576_v60, %v498_v62  ;;  %v885_v43 = vsel %vm883_vm4, %v4642_v2, %v5190_v13  ;;  %v3133_v0 = vpack.i.bf16 %v1313_v31, %v1306_v4 }
 0x296   : > { %v1358_v30 = vsel %vm463_vm0, %v3116_v42, %v3101_v24  ;;  %v1364_v1 = vsel %vm463_vm0, %v3117_v20, %v3107_v21  ;;  %v681_v24 = vsel %vm673_vm2, %v4632_v16, %v4119_v8  ;;  %v674_v21 = vsel %vm673_vm2, %v4636_v44, %v4626_v3 }
 0x297   : > { %v4738_v35 = vmax.f32 %v5214_v25, %v1358_v30  ;;  %v4742_v50 = vmax.f32 %v5215_v48, %v1364_v1  ;;  %v986_v5 = vpop.permute.xlu0 %985  ;;  %v1085_v39 = vpop.permute.xlu1 %1084  ;;  %3124 = vrot.lane.b32.xlu0 %v3123_v41, %s3530_s30  ;;  %v595_v55 = vadd.f32 %v569_v47, %v4596_v15  ;;  %v806_v62 = vadd.f32 %v780_v14, %v701_v38 }
 0x298   : > { %v575_v8 = vsel %vm568_vm1, %v4628_v33, %v4600_v23  ;;  %v786_v3 = vsel %vm778_vm3, %v4640_v32, %v5176_v46  ;;  %v779_v13 = vsel %vm778_vm3, %v4638_v53, %v4634_v26  ;;  %v1003_v15 = vsel %vm1001_vm5, %v4650_v63, %v5192_v45 }
 0x299   : > { %v3128_v60 = vpack.i.bf16 %v4742_v50, %v4738_v35  ;;  %v708_v44 = vadd.f32 %v681_v24, %v603_v17  ;;  %v700_v19 = vadd.f32 %v674_v21, %v595_v55  ;;  %v911_v41 = vadd.f32 %v885_v43, %v806_v62 }
 0x29a   : > { %v680_v46 = vsel %vm673_vm2, %v4630_v51, %v4632_v16  ;;  %v891_v23 = vsel %vm883_vm4, %v4648_v49, %v5186_v28  ;;  %v884_v45 = vsel %vm883_vm4, %v4646_v57, %v4642_v2  ;;  %v1118_v33 = vsel %vm1116_vm6, %v1087_v22, %v4398_v54 }
 0x29b   : > { %v1103_v47 = vpop.permute.xlu0 %1102  ;;  %v1202_v14 = vpop.permute.xlu1 %1201  ;;  %3134 = vrot.lane.b32.xlu0 %v3133_v0, %s3528_s13  ;;  %3129 = vrot.lane.b32.xlu1 %v3128_v60, %s3530_s30  ;;  %v602_v26 = vadd.f32 %v575_v8, %v4594_v40  ;;  %v813_v53 = vadd.f32 %v786_v3, %v708_v44  ;;  %v805_v30 = vadd.f32 %v779_v13, %v700_v19 }
 0x29c   : > { %v1031_v1 = vadd.f32 %v1003_v15, %v911_v41  ;;  %v785_v51 = vsel %vm778_vm3, %v4644_v11, %v4640_v32  ;;  %v1010_v28 = vsel %vm1001_vm5, %v4656_v58, %v5191_v61  ;;  %v1002_v16 = vsel %vm1001_vm5, %v4654_v56, %v4650_v63 }
 0x29d   : > { %v1233_v54 = vsel %vm1231_vm7, %v1202_v14, %v4519_v12  ;;  %v707_v2 = vadd.f32 %v680_v46, %v602_v26  ;;  %v918_v40 = vadd.f32 %v891_v23, %v813_v53  ;;  %v910_v57 = vadd.f32 %v884_v45, %v805_v30  ;;  %v3258_v46 = vld [vmem:[#allocation4 + $0x204] ss:$8 sps:$4 sm:$0xff]   ;;  %v3276_v26 = vld [vmem:[#allocation4] ss:$8 sps:$4 sm:$0xff]   ;;  %v3280_v53 = vld [vmem:[#allocation4 + $0x14] ss:$8 sps:$4 sm:$0xff]  }
 0x29e   : > { %v1146_v38 = vadd.f32 %v1118_v33, %v1031_v1  ;;  %v890_v32 = vsel %vm883_vm4, %v4652_v7, %v4648_v49  ;;  %v1117_v11 = vsel %vm1116_vm6, %v1085_v39, %v1087_v22  ;;  %v1125_v61 = vsel %vm1116_vm6, %v1103_v47, %v4396_v34  ;;  %v5216_v7 = vld [vmem:[#allocation33_spill] sm:$0xff]  ;;  %2191 = vmatprep.subr.bf16.mxu0 %v3258_v46  ;;  %v3274_v33 = vld [vmem:[#allocation4 + $0x4] ss:$8 sps:$4 sm:$0xff]   ;;  %v3288_v1 = vld [vmem:[#allocation4 + $0x20] ss:$8 sps:$4 sm:$0xff]  }
 0x29f   : > { %v1101_v25 = vpop.permute.xlu0 %1100  ;;  %v1200_v48 = vpop.permute.xlu1 %1199  ;;  %v812_v17 = vadd.f32 %v785_v51, %v707_v2  ;;  %v1038_v63 = vadd.f32 %v1010_v28, %v918_v40  ;;  %v1030_v56 = vadd.f32 %v1002_v16, %v910_v57  ;;  %v1009_v12 = vsel %vm1001_vm5, %v986_v5, %v4656_v58  ;;  %2105 = vmatprep.subr.bf16.mxu1 %v3274_v33  ;;  %v3286_v30 = vld [vmem:[#allocation4 + $0x24] ss:$8 sps:$4 sm:$0xff]   ;;  %v3292_v51 = vld [vmem:[#allocation4 + $0x34] ss:$8 sps:$4 sm:$0xff]   ;;  %v3294_v28 = vld [vmem:[#allocation4 + $0x30] ss:$8 sps:$4 sm:$0xff]  }
 0x2a0   : > { %v1261_v24 = vadd.f32 %v1233_v54, %v1146_v38  ;;  %v1232_v21 = vsel %vm1231_vm7, %v1200_v48, %v1202_v14  ;;  %v1124_v49 = vsel %vm1116_vm6, %v1101_v25, %v1103_v47  ;;  %2106 = vmatpush1.bf16.msra.mxu1 %v3276_v26  ;;  %v3298_v16 = vld [vmem:[#allocation4 + $0x44] ss:$8 sps:$4 sm:$0xff]   ;;  %v3300_v54 = vld [vmem:[#allocation4 + $0x40] ss:$8 sps:$4 sm:$0xff]   ;;  %v3304_v2 = vld [vmem:[#allocation4 + $0x54] ss:$8 sps:$4 sm:$0xff]  }
 0x2a1   : > { %v917_v43 = vadd.f32 %v890_v32, %v812_v17  ;;  %v1145_v0 = vadd.f32 %v1117_v11, %v1030_v56  ;;  %v1153_v55 = vadd.f32 %v1125_v61, %v1038_v63  ;;  %2107 = vmatprep.subr.bf16.mxu1 %v3280_v53  ;;  %v3306_v40 = vld [vmem:[#allocation4 + $0x50] ss:$8 sps:$4 sm:$0xff]   ;;  %v3310_v57 = vld [vmem:[#allocation4 + $0x64] ss:$8 sps:$4 sm:$0xff]   ;;  %v3312_v38 = vld [vmem:[#allocation4 + $0x60] ss:$8 sps:$4 sm:$0xff]  }
 0x2a2   : > { %v4811_v34 = vadd.f32 %v5189_v59, %v1261_v24  ;;  %v3316_v25 = vld [vmem:[#allocation4 + $0x74] ss:$8 sps:$4 sm:$0xff]   ;;  %v3318_v48 = vld [vmem:[#allocation4 + $0x70] ss:$8 sps:$4 sm:$0xff]   ;;  %v3322_v32 = vld [vmem:[#allocation4 + $0x84] ss:$8 sps:$4 sm:$0xff]  }
 0x2a3   : > { %v1218_v62 = vpop.permute.xlu0 %1217  ;;  %v1037_v22 = vadd.f32 %v1009_v12, %v917_v43  ;;  %v1260_v60 = vadd.f32 %v1232_v21, %v1145_v0  ;;  %v3324_v11 = vld [vmem:[#allocation4 + $0x80] ss:$8 sps:$4 sm:$0xff]   ;;  %v3328_v43 = vld [vmem:[#allocation4 + $0x94] ss:$8 sps:$4 sm:$0xff]   ;;  %v3330_v0 = vld [vmem:[#allocation4 + $0x90] ss:$8 sps:$4 sm:$0xff]  }
 0x2a4   : > { %v1240_v39 = vsel %vm1231_vm7, %v1218_v62, %v5216_v7  ;;  %v1301_v15 = vmax.f32 %v4811_v34, 0.0  ;;  %v5219_v26 = vld [vmem:[#allocation25_spill] sm:$0xff]  ;;  %vm2663_vm3 = vcmask 1046528  }
 0x2a5   : > { %v1268_v8 = vadd.f32 %v1240_v39, %v1153_v55  ;;  %v1152_v3 = vadd.f32 %v1124_v49, %v1037_v22  ;;  %v4819_v44 = vadd.f32 %v5189_v59, %v1260_v60  ;;  %v5220_v53 = vmax.f32 %v5219_v26, 0.0 }
 0x2a7   : > { %v4814_v58 = vadd.f32 %v5196_v52, %v1268_v8  ;;  %v1216_v5 = vpop.permute.xlu0 %1215  ;;  %v1300_v23 = vmax.f32 %v4819_v44, 0.0  ;;  %v3291_v44 = vld [vmem:[#allocation4 + $0x284] ss:$8 sps:$4 sm:$0xff]  }
 0x2a8   : > { %v1239_v13 = vsel %vm1231_vm7, %v1216_v5, %v1218_v62  ;;  %v3334_v62 = vld [vmem:[#allocation4 + $0xa4] ss:$8 sps:$4 sm:$0xff]  }
 0x2a9   : > { %v1308_v19 = vmax.f32 %v4814_v58, 0.0  ;;  %v1267_v41 = vadd.f32 %v1239_v13, %v1152_v3  ;;  %v3336_v13 = vld [vmem:[#allocation4 + $0xa0] ss:$8 sps:$4 sm:$0xff]  }
 0x2ab   : > { %v3138_v47 = vpack.i.bf16 %v1308_v19, %v1301_v15  ;;  %v4827_v14 = vadd.f32 %v5196_v52, %v1267_v41  ;;  %v3282_v52 = vld [vmem:[#allocation4 + $0x10] ss:$8 sps:$4 sm:$0xff]  }
 0x2ac   : > { %2108 = vmatpush1.bf16.msra.mxu1 %v3282_v52 }
 0x2ad   : > { %v1307_v45 = vmax.f32 %v4827_v14, 0.0  ;;  %3139 = vrot.lane.b32.xlu1 %v3138_v47, %s3528_s13  ;;  %2109 = vmatprep.subr.bf16.mxu1 %v3286_v30  ;;  %v5217_v47 = vunpack.i.h.bf16 %v4673_v6  ;;  %v5221_v30 = vld [vmem:[#allocation24_spill] sm:$0xff] }
 0x2ae   : > { %v5222_v6 = vmax.f32 %v5221_v30, 0.0  ;;  %v3285_v14 = vld [vmem:[#allocation4 + $0x274] ss:$8 sps:$4 sm:$0xff]  }
 0x2af   : > { %v3143_v59 = vpack.i.bf16 %v1307_v45, %v1300_v23  ;;  %v3297_v30 = vld [vmem:[#allocation4 + $0x294] ss:$8 sps:$4 sm:$0xff]  }
 0x2b0   : > { %2110 = vmatpush1.bf16.msra.mxu1 %v3288_v1 }
 0x2b1   : > { %3144 = vrot.lane.b32.xlu0 %v3143_v59, %s3528_s13  ;;  %2111 = vmatprep.subr.bf16.mxu1 %v3292_v51  ;;  %v3342_v51 = vld [vmem:[#allocation4 + $0xb0] ss:$8 sps:$4 sm:$0xff]  }
 0x2b4   : > { %2112 = vmatpush1.bf16.msra.mxu1 %v3294_v28 }
 0x2b5   : > { %2113 = vmatprep.subr.bf16.mxu1 %v3298_v16 }
 0x2b8   : > { %2114 = vmatpush1.bf16.msra.mxu1 %v3300_v54  ;;  %v3256_v54 = vld [vmem:[#allocation4 + $0x200] ss:$8 sps:$4 sm:$0xff]  }
 0x2b9   : > { %2115 = vmatprep.subr.bf16.mxu1 %v3304_v2  ;;  %v3346_v2 = vld [vmem:[#allocation4 + $0xc4] ss:$8 sps:$4 sm:$0xff]  }
 0x2bc   : > { %2116 = vmatpush1.bf16.msra.mxu1 %v3306_v40 }
 0x2bd   : > { %2117 = vmatprep.subr.bf16.mxu1 %v3310_v57  ;;  %v3261_v57 = vld [vmem:[#allocation4 + $0x214] ss:$8 sps:$4 sm:$0xff]  }
 0x2c0   : > { %2118 = vmatpush1.bf16.msra.mxu1 %v3312_v38  ;;  %v3351_v38 = vld [vmem:[#allocation4 + $0xd4] ss:$8 sps:$4 sm:$0xff]  }
 0x2c1   : > { %2119 = vmatprep.subr.bf16.mxu1 %v3316_v25  ;;  %v3264_v25 = vld [vmem:[#allocation4 + $0x224] ss:$8 sps:$4 sm:$0xff]  }
 0x2c4   : > { %2120 = vmatpush1.bf16.msra.mxu1 %v3318_v48  ;;  %v3353_v48 = vld [vmem:[#allocation4 + $0xd0] ss:$8 sps:$4 sm:$0xff]  }
 0x2c5   : > { %2121 = vmatprep.subr.bf16.mxu1 %v3322_v32  ;;  %v3262_v32 = vld [vmem:[#allocation4 + $0x220] ss:$8 sps:$4 sm:$0xff]  }
 0x2c8   : > { %2122 = vmatpush1.bf16.msra.mxu1 %v3324_v11  ;;  %v3267_v11 = vld [vmem:[#allocation4 + $0x234] ss:$8 sps:$4 sm:$0xff]  }
 0x2c9   : > { %2123 = vmatprep.subr.bf16.mxu1 %v3328_v43  ;;  %v3356_v43 = vld [vmem:[#allocation4 + $0xe0] ss:$8 sps:$4 sm:$0xff]  }
 0x2cc   : > { %2124 = vmatpush1.bf16.msra.mxu1 %v3330_v0 }
 0x2cd   : > { %2125 = vmatprep.subr.bf16.mxu1 %v3334_v62  ;;  %v3270_v62 = vld [vmem:[#allocation4 + $0x244] ss:$8 sps:$4 sm:$0xff]  }
 0x2d0   : > { %2126 = vmatpush1.bf16.msra.mxu1 %v3336_v13 }
 0x2d1   : > { %2127 = vmatprep.subr.bf16.mxu1 %v3340_v27  ;;  %v3309_v27 = vld [vmem:[#allocation4 + $0x2b4] ss:$8 sps:$4 sm:$0xff]  }
 0x2d4   : > { %2128 = vmatpush1.bf16.msra.mxu1 %v3342_v51  ;;  %v3313_v51 = vld [vmem:[#allocation4 + $0x2c0] ss:$8 sps:$4 sm:$0xff]  }
 0x2d5   : > { %2129 = vmatprep.subr.bf16.mxu1 %v3346_v2  ;;  %v3325_v2 = vld [vmem:[#allocation4 + $0x2e0] ss:$8 sps:$4 sm:$0xff]  }
 0x305   : > { %v4837_v61 = vpop.permute.xlu1 %3119 }
 0x306   : > { %v3122_v17 = vunpack.i.h.bf16 %v4837_v61  ;;  %v3121_v63 = vunpack.i.l.bf16 %v4837_v61  ;;  %v1585_v61 = vld [vmem:[#allocation4 + $0x320] sm:$0xff] }
 0x308   : > { %v1441_v21 = vsel %vm673_vm2, %v3121_v63, %v3122_v17 }
 0x309   : > { %v4841_v56 = vpop.permute.xlu0 %3124  ;;  %v1467_v39 = vmax.f32 %v4667_v29, %v1441_v21  ;;  %v5218_v29 = vunpack.i.l.bf16 %v4658_v37  ;;  %v3265_v21 = vld [vmem:[#allocation4 + $0x230] ss:$8 sps:$4 sm:$0xff]  }
 0x30a   : > { %v3127_v24 = vunpack.i.h.bf16 %v4841_v56  ;;  %v3126_v12 = vunpack.i.l.bf16 %v4841_v56  ;;  %v2951_v56 = vcombine.high %v1585_v61, %v1585_v61 }
 0x30c   : > { %v1447_v55 = vsel %vm673_vm2, %v3126_v12, %v3127_v24 }
 0x30d   : > { %v3135_v49 = vpop.permute.xlu0 %3134  ;;  %v4851_v7 = vpop.permute.xlu1 %3129  ;;  %v1474_v22 = vmax.f32 %v4702_v18, %v1447_v55 }
 0x30e   : > { %v3137_v60 = vunpack.i.h.bf16 %v3135_v49  ;;  %v3136_v8 = vunpack.i.l.bf16 %v3135_v49  ;;  %v3132_v3 = vunpack.i.h.bf16 %v4851_v7  ;;  %v3131_v5 = vunpack.i.l.bf16 %v4851_v7  ;;  %v3357_v49 = vld [vmem:[#allocation4 + $0xf4] ss:$8 sps:$4 sm:$0xff]  }
 0x30f   : > { %v1481_v41 = vpack.c.bf16 %v1474_v22, %v1467_v39 }
 0x310   : > { %v1367_v46 = vsel %vm463_vm0, %v5217_v47, %v3137_v60  ;;  %v4862_v59 = vmax.f32 %v1313_v31, %v3137_v60  ;;  %v1361_v18 = vsel %vm463_vm0, %v5218_v29, %v3136_v8  ;;  %v4869_v33 = vmax.f32 %v1306_v4, %v3136_v8  ;;  %v3359_v60 = vld [vmem:[#allocation4 + $0xf0] ss:$8 sps:$4 sm:$0xff]   ;;  %v3268_v47 = vld [vmem:[#allocation4 + $0x240] ss:$8 sps:$4 sm:$0xff]  }
 0x311   : > { %v4873_v52 = vmax.f32 %v5220_v53, %v1367_v46  ;;  %v4877_v1 = vmax.f32 %v5222_v6, %v1361_v18  ;;  %v1446_v10 = vsel %vm673_vm2, %v3132_v3, %v3126_v12  ;;  %v1440_v37 = vsel %vm673_vm2, %v3131_v5, %v3121_v63  ;;  %2180 = vmatprep.mubr.bf16.mxu0 %v1481_v41  ;;  %v3354_v63 = vld [vmem:[#allocation4 + $0xe4] ss:$8 sps:$4 sm:$0xff]   ;;  %v3277_v53 = vld [vmem:[#allocation4 + $0x260] ss:$8 sps:$4 sm:$0xff]   ;;  %v3295_v6 = vld [vmem:[#allocation4 + $0x290] ss:$8 sps:$4 sm:$0xff]  }
 0x312   : > { %v1466_v31 = vmax.f32 %v4738_v35, %v1440_v37  ;;  %v1473_v4 = vmax.f32 %v4742_v50, %v1446_v10  ;;  %v3348_v35 = vld [vmem:[#allocation4 + $0xc0] ss:$8 sps:$4 sm:$0xff]   ;;  %v3259_v50 = vld [vmem:[#allocation4 + $0x210] ss:$8 sps:$4 sm:$0xff]   ;;  %v3279_v18 = vld [vmem:[#allocation4 + $0x264] ss:$8 sps:$4 sm:$0xff]  }
 0x313   : > { %v3153_v28 = vpack.i.bf16 %v4862_v59, %v4873_v52  ;;  %v3148_v16 = vpack.i.bf16 %v4869_v33, %v4877_v1  ;;  %2130 = vmatpush1.bf16.msra.mxu1 %v3348_v35  ;;  %v3303_v10 = vld [vmem:[#allocation4 + $0x2a4] ss:$8 sps:$4 sm:$0xff]   ;;  %v3301_v37 = vld [vmem:[#allocation4 + $0x2a0] ss:$8 sps:$4 sm:$0xff]  }
 0x314   : > { %v1480_v40 = vpack.c.bf16 %v1473_v4, %v1466_v31  ;;  %2131 = vmatprep.subr.bf16.mxu1 %v3351_v38  ;;  %v3307_v31 = vld [vmem:[#allocation4 + $0x2b0] ss:$8 sps:$4 sm:$0xff]   ;;  %v3315_v4 = vld [vmem:[#allocation4 + $0x2c4] ss:$8 sps:$4 sm:$0xff]  }
 0x315   : > { %3149 = vrot.lane.b32.xlu1 %v3148_v16, %s3530_s30  ;;  %3154 = vrot.lane.b32.xlu0 %v3153_v28, %s3530_s30  ;;  %v3321_v28 = vld [vmem:[#allocation4 + $0x2d4] ss:$8 sps:$4 sm:$0xff]   ;;  %v3319_v16 = vld [vmem:[#allocation4 + $0x2d0] ss:$8 sps:$4 sm:$0xff]   ;;  %v3339_v35 = vld [vmem:[#allocation4 + $0x304] ss:$8 sps:$4 sm:$0xff]  }
 0x316   : > { %2181 = vmatmul.mubr.bf16.vlgmr.msra.gmra.mrb[0].mxu0 %v1480_v40  ;;  %v3333_v40 = vld [vmem:[#allocation4 + $0x2f4] ss:$8 sps:$4 sm:$0xff]  }
 0x317   : > { %2192 = vmatpush1.bf16.msra.mxu0 %v3256_v54  ;;  %2132 = vmatpush1.bf16.msra.mxu1 %v3353_v48  ;;  %v3327_v54 = vld [vmem:[#allocation4 + $0x2e4] ss:$8 sps:$4 sm:$0xff]  }
 0x318   : > { %2193 = vmatprep.subr.bf16.mxu0 %v3261_v57  ;;  %2133 = vmatprep.subr.bf16.mxu1 %v3354_v63  ;;  %v3331_v57 = vld [vmem:[#allocation4 + $0x2f0] ss:$8 sps:$4 sm:$0xff]  }
 0x31b   : > { %2194 = vmatpush1.bf16.msra.mxu0 %v3259_v50  ;;  %2134 = vmatpush1.bf16.msra.mxu1 %v3356_v43 }
 0x31c   : > { %2195 = vmatprep.subr.bf16.mxu0 %v3264_v25  ;;  %2135 = vmatprep.subr.bf16.mxu1 %v3357_v49 }
 0x31f   : > { %v3140_v12 = vpop.permute.xlu1 %3139  ;;  %2196 = vmatpush1.bf16.msra.mxu0 %v3262_v32  ;;  %2136 = vmatpush1.bf16.msra.mxu1 %v3359_v60 }
 0x320   : > { %v3142_v0 = vunpack.i.h.bf16 %v3140_v12  ;;  %v3141_v55 = vunpack.i.l.bf16 %v3140_v12  ;;  %2197 = vmatprep.subr.bf16.mxu0 %v3267_v11 }
 0x322   : > { %v1363_v39 = vsel %vm463_vm0, %v3142_v0, %v3117_v20  ;;  %v1357_v22 = vsel %vm463_vm0, %v3141_v55, %v3116_v42 }
 0x323   : > { %v4901_v8 = vmax.f32 %v1308_v19, %v1363_v39  ;;  %v4905_v13 = vmax.f32 %v1301_v15, %v1357_v22  ;;  %v3145_v41 = vpop.permute.xlu0 %3144  ;;  %2198 = vmatpush1.bf16.msra.mxu0 %v3265_v21  ;;  %v3271_v19 = vld [vmem:[#allocation4 + $0x250] ss:$8 sps:$4 sm:$0xff]  }
 0x324   : > { %v3147_v46 = vunpack.i.h.bf16 %v3145_v41  ;;  %v3146_v20 = vunpack.i.l.bf16 %v3145_v41  ;;  %2199 = vmatprep.subr.bf16.mxu0 %v3270_v62  ;;  %v5223_v21 = vld [vmem:[#allocation32_spill] sm:$0xff] }
 0x325   : > { %v3158_v42 = vpack.i.bf16 %v4901_v8, %v4905_v13 }
 0x326   : > { %v1362_v29 = vsel %vm463_vm0, %v3147_v46, %v3142_v0  ;;  %v1356_v58 = vsel %vm463_vm0, %v3146_v20, %v3141_v55  ;;  %v3345_v46 = vld [vmem:[#allocation4 + $0x314] ss:$8 sps:$4 sm:$0xff]   ;;  %v3343_v20 = vld [vmem:[#allocation4 + $0x310] ss:$8 sps:$4 sm:$0xff]  }
 0x327   : > { %v4913_v34 = vmax.f32 %v1307_v45, %v1362_v29  ;;  %v4917_v15 = vmax.f32 %v1300_v23, %v1356_v58  ;;  %3159 = vrot.lane.b32.xlu1 %v3158_v42, %s3530_s30  ;;  %2200 = vmatpush1.bf16.msra.mxu0 %v3268_v47  ;;  %v3283_v45 = vld [vmem:[#allocation4 + $0x270] ss:$8 sps:$4 sm:$0xff]   ;;  %v3289_v23 = vld [vmem:[#allocation4 + $0x280] ss:$8 sps:$4 sm:$0xff]  }
 0x328   : > { %2201 = vmatprep.subr.bf16.mxu0 %v3273_v36  ;;  %v3337_v47 = vld [vmem:[#allocation4 + $0x300] ss:$8 sps:$4 sm:$0xff]   ;;  %v5224_v36 = vmov 0  }
 0x329   : > { %v3163_v26 = vpack.i.bf16 %v4913_v34, %v4917_v15 }
 0x32b   : > { %3164 = vrot.lane.b32.xlu0 %v3163_v26, %s3530_s30  ;;  %2202 = vmatpush1.bf16.msra.mxu0 %v3271_v19 }
 0x32c   : > { %2203 = vmatprep.subr.bf16.mxu0 %v3279_v18 }
 0x32f   : > { %2204 = vmatpush1.bf16.msra.mxu0 %v3277_v53 }
 0x330   : > { %2205 = vmatprep.subr.bf16.mxu0 %v3285_v14 }
 0x333   : > { %2206 = vmatpush1.bf16.msra.mxu0 %v3283_v45 }
 0x334   : > { %2207 = vmatprep.subr.bf16.mxu0 %v3291_v44 }
 0x337   : > { %2208 = vmatpush1.bf16.msra.mxu0 %v3289_v23 }
 0x338   : > { %2209 = vmatprep.subr.bf16.mxu0 %v3297_v30 }
 0x33b   : > { %2210 = vmatpush1.bf16.msra.mxu0 %v3295_v6 }
 0x33c   : > { %2211 = vmatprep.subr.bf16.mxu0 %v3303_v10 }
 0x33f   : > { %2212 = vmatpush1.bf16.msra.mxu0 %v3301_v37 }
 0x340   : > { %2213 = vmatprep.subr.bf16.mxu0 %v3309_v27 }
 0x343   : > { %2214 = vmatpush1.bf16.msra.mxu0 %v3307_v31 }
 0x344   : > { %2215 = vmatprep.subr.bf16.mxu0 %v3315_v4 }
 0x347   : > { %2216 = vmatpush1.bf16.msra.mxu0 %v3313_v51 }
 0x348   : > { %2217 = vmatprep.subr.bf16.mxu0 %v3321_v28 }
 0x34b   : > { %2218 = vmatpush1.bf16.msra.mxu0 %v3319_v16 }
 0x34c   : > { %2219 = vmatprep.subr.bf16.mxu0 %v3327_v54 }
 0x34f   : > { %2220 = vmatpush1.bf16.msra.mxu0 %v3325_v2 }
 0x350   : > { %2221 = vmatprep.subr.bf16.mxu0 %v3333_v40 }
 0x353   : > { %2222 = vmatpush1.bf16.msra.mxu0 %v3331_v57 }
 0x354   : > { %2234 = vmatprep.subr.bf16.mxu0 %v3339_v35 }
 0x387   : > { %v3150_v50 = vpop.permute.xlu1 %3149  ;;  %v3155_v38 = vpop.permute.xlu0 %3154 }
 0x388   : > { %v3152_v25 = vunpack.i.h.bf16 %v3150_v50  ;;  %v3151_v48 = vunpack.i.l.bf16 %v3150_v50  ;;  %v3157_v32 = vunpack.i.h.bf16 %v3155_v38  ;;  %v3156_v11 = vunpack.i.l.bf16 %v3155_v38  ;;  %v2350_v50 = vld [vmem:[%s5077_s5 + $0x8] sm:$0xff]  ;;  %v2351_v38 = vld [vmem:[%s5077_s5 + $0x10] sm:$0xff] }
 0x38a   : > { %v1442_v63 = vsel %vm673_vm2, %v3122_v17, %v3151_v48  ;;  %v1443_v12 = vsel %vm673_vm2, %v3151_v48, %v3152_v25  ;;  %v1448_v0 = vsel %vm673_vm2, %v3127_v24, %v3156_v11  ;;  %v1449_v55 = vsel %vm673_vm2, %v3156_v11, %v3157_v32 }
 0x38b   : > { %v1468_v43 = vmax.f32 %v5223_v21, %v1442_v63  ;;  %v1469_v62 = vmax.f32 %v4877_v1, %v1443_v12  ;;  %v1475_v49 = vmax.f32 %v4706_v9, %v1448_v0  ;;  %v1476_v39 = vmax.f32 %v4873_v52, %v1449_v55 }
 0x38c   : > { %v3536_v17 = vmov 65535   ;;  %v2950_v1 = vcombine.low %v1585_v61, %v1585_v61  ;;  %v1470_v42 = vmax.f32 %v4869_v33, %v3152_v25  ;;  %v1477_v29 = vmax.f32 %v4862_v59, %v3157_v32  ;;  %v2352_v25 = vld [vmem:[%s5077_s5 + $0x18] sm:$0xff] }
 0x38d   : > { %v2097_v22 = vsel %vm2095_vm8, 4294967295, %v3536_v17  ;;  %v1483_v60 = vpack.c.bf16 %v1476_v39, %v1469_v62  ;;  %v1482_v41 = vpack.c.bf16 %v1475_v49, %v1468_v43 }
 0x38e   : > { %v2098_v24 = vsel %vm2096_vm9, %v2097_v22, 0  ;;  %v1484_v26 = vpack.c.bf16 %v1477_v29, %v1470_v42  ;;  %v3362_v42 = vld [vmem:[#allocation6] ss:$8 sps:$4 sm:$0xff]   ;;  %v3363_v29 = vld [vmem:[#allocation6 + $0x14] ss:$8 sps:$4 sm:$0xff]  }
 0x38f   : > { %2223 = vmatprep.mubr.bf16.mxu0 %v1483_v60  ;;  %v2103_v9 = vand.u32 %v2951_v56, %v2098_v24  ;;  %v2100_v52 = vand.u32 %v2950_v1, %v2098_v24 }
 0x390   : > { %2224 = vmatmul.mubr.bf16.vlgmr.msra.gmra.mrb[0].mxu0 %v1482_v41 }
 0x391   : > { %2235 = vmatpush1.bf16.msra.mxu0 %v3337_v47  ;;  %2266 = vmatprep.mubr.bf16.mxu0 %v5224_v36 }
 0x392   : > { %2236 = vmatprep.subr.bf16.mxu0 %v3345_v46 }
 0x395   : > { %2237 = vmatpush1.bf16.msra.mxu0 %v3343_v20 }
 0x396   : > { %2238 = vmatprep.subr.bf16.mxu0 %v2103_v9 }
 0x399   : > { %v3160_v58 = vpop.permute.xlu1 %3159  ;;  %2239 = vmatpush1.bf16.msra.mxu0 %v2100_v52 }
 0x39a   : > { %v3162_v19 = vunpack.i.h.bf16 %v3160_v58  ;;  %v3161_v18 = vunpack.i.l.bf16 %v3160_v58  ;;  %v3365_v58 = vld [vmem:[#allocation6 + $0x10] ss:$8 sps:$4 sm:$0xff]  }
 0x39c   : > { %v1439_v53 = vsel %vm673_vm2, %v3161_v18, %v3131_v5  ;;  %v1445_v14 = vsel %vm673_vm2, %v3162_v19, %v3132_v3  ;;  %2952 = vmatmul.mubr.msk.bf16.vlgmr.msra.gmra.mrb[0].mxu0 %vm2091_vm10, %v1484_v26 }
 0x39d   : > { %v3165_v45 = vpop.permute.xlu0 %3164  ;;  %v1465_v33 = vmax.f32 %v4905_v13, %v1439_v53  ;;  %v1472_v59 = vmax.f32 %v4901_v8, %v1445_v14 }
 0x39e   : > { %v3167_v44 = vunpack.i.h.bf16 %v3165_v45  ;;  %v3166_v23 = vunpack.i.l.bf16 %v3165_v45 }
 0x39f   : > { %v1479_v30 = vpack.c.bf16 %v1472_v59, %v1465_v33 }
 0x3a0   : > { %v1444_v6 = vsel %vm673_vm2, %v3167_v44, %v3162_v19  ;;  %v1438_v10 = vsel %vm673_vm2, %v3166_v23, %v3161_v18  ;;  %vm2662_vm2 = vcmask 1045504  }
 0x3a1   : > { %2137 = vmatprep.mubr.bf16.mxu1 %v1479_v30  ;;  %v1464_v5 = vmax.f32 %v4917_v15, %v1438_v10  ;;  %v1471_v7 = vmax.f32 %v4913_v34, %v1444_v6  ;;  %v3360_v34 = vld [vmem:[#allocation6 + $0x4] ss:$8 sps:$4 sm:$0xff]  }
 0x3a2   : > { %v2349_v15 = vld [vmem:[%s5077_s5] sm:$0xff] }
 0x3a3   : > { %v1478_v37 = vpack.c.bf16 %v1471_v7, %v1464_v5 }
 0x3a5   : > { %2138 = vmatmul.mubr.bf16.vlgmr.msra.gmra.mrb[0].mxu1 %v1478_v37 }
 0x3a6   : > { %2957 = vmatprep.mubr.msk.bf16.mxu1 %vm2391_vm11, %v3360_v34 }
 0x46f   : > { %v2268_v3 = vpop.f32.mrb[0].mxu0 }
 0x470   : > { %v2270_v27 = vpop.f32.mrb[1].mxu0 }
 0x471   : > { %v2272_v31 = vpop.f32.mrb[2].mxu0 }
 0x472   : > { %v2274_v13 = vpop.f32.mrb[3].mxu0 }
 0x478   : > { %v2139_v4 = vpop.f32.mrb[0].mxu1 }
 0x479   : > { %v2996_v8 = vadd.f32 %v2268_v3, %v2139_v4  ;;  %v2141_v51 = vpop.f32.mrb[1].mxu1 }
 0x47a   : > { %v2997_v28 = vadd.f32 %v2270_v27, %v2141_v51  ;;  %v2143_v16 = vpop.f32.mrb[2].mxu1 }
 0x47b   : > { %v2998_v54 = vadd.f32 %v2272_v31, %v2143_v16  ;;  %v2145_v2 = vpop.f32.mrb[3].mxu1 }
 0x47c   : > { %v2999_v40 = vadd.f32 %v2274_v13, %v2145_v2 }
 0x47d   : > { %v2277_v57 = vpack.c.bf16 %v2998_v54, %v2996_v8 }
 0x47e   : > { %v2278_v35 = vpack.c.bf16 %v2999_v40, %v2997_v28 }
 0x47f   : > { %2281 = vrot.lane.b32.xlu1 %v2277_v57, %s3528_s13 }
 0x480   : > { %2283 = vrot.lane.b32.xlu0 %v2278_v35, %s3528_s13  ;;  %2398 = vmatprep.subr.bf16.mxu1 %v2278_v35 }
 0x481   : > { %2399 = vmatpush1.bf16.msra.mxu1 %v2277_v57 }
 0x483   : > { %2289 = vrot.lane.b32.xlu1 %v2277_v57, %s3529_s14 }
 0x484   : > { %2291 = vrot.lane.b32.xlu0 %v2278_v35, %s3529_s14 }
 0x487   : > { %2297 = vrot.lane.b32.xlu1 %v2277_v57, %s3537_s9 }
 0x488   : > { %2299 = vrot.lane.b32.xlu0 %v2278_v35, %s3537_s9 }
 0x48b   : > { %2305 = vrot.lane.b32.xlu1 %v2277_v57, %s3538_s10 }
 0x48c   : > { %2307 = vrot.lane.b32.xlu0 %v2278_v35, %s3538_s10 }
 0x48f   : > { %2313 = vrot.lane.b32.xlu1 %v2277_v57, %s3539_s22 }
 0x490   : > { %2315 = vrot.lane.b32.xlu0 %v2278_v35, %s3539_s22 }
 0x493   : > { %2321 = vrot.lane.b32.xlu1 %v2277_v57, %s3532_s16 }
 0x494   : > { %2323 = vrot.lane.b32.xlu0 %v2278_v35, %s3532_s16 }
 0x497   : > { %2329 = vrot.lane.b32.xlu1 %v2277_v57, %s3540_s23 }
 0x498   : > { %2331 = vrot.lane.b32.xlu0 %v2278_v35, %s3540_s23 }
 0x49b   : > { %2337 = vrot.lane.b32.xlu1 %v2277_v57, %s3541_s11  ;;  %v3366_v57 = vld [vmem:[#allocation7] sm:$0xff]  }
 0x49c   : > { %2339 = vrot.lane.b32.xlu0 %v2278_v35, %s3541_s11 }
 0x49f   : > { %2355 = vperm.xlu1 %3097, %v2349_v15  }
 0x4a0   : > { %2360 = vperm.xlu0 %3096, %v2350_v50   ;;  %v3367_v50 = vld [vmem:[#allocation7 + $0x8] sm:$0xff]  }
 0x4a3   : > { %2365 = vperm.xlu1 %3097, %v2351_v38  }
 0x4a4   : > { %2370 = vperm.xlu0 %3096, %v2352_v25   ;;  %v3368_v25 = vld [vmem:[#allocation7 + $0x10] sm:$0xff]  }
 0x4f1   : > { %v2282_v48 = vpop.permute.xlu1 %2281 }
 0x4f2   : > { %v2284_v32 = vpop.permute.xlu0 %2283 }
 0x4f3   : > { %v2286_v11 = vsel %vm463_vm0, %v2282_v48, %v2284_v32  ;;  %2400 = vmatprep.subr.bf16.mxu1 %v2284_v32  ;;  %v3369_v48 = vld [vmem:[#allocation7 + $0x18] sm:$0xff]   ;;  %v3370_v32 = vld [vmem:[#allocation7 + $0x20] sm:$0xff]  }
 0x4f4   : > { %2401 = vmatpush1.bf16.msra.mxu1 %v2286_v11  ;;  %v3371_v11 = vld [vmem:[#allocation7 + $0x28] sm:$0xff]  }
 0x4f5   : > { %v2290_v63 = vpop.permute.xlu1 %2289 }
 0x4f6   : > { %v2292_v12 = vpop.permute.xlu0 %2291 }
 0x4f7   : > { %v2294_v21 = vsel %vm568_vm1, %v2290_v63, %v2292_v12  ;;  %2402 = vmatprep.subr.bf16.mxu1 %v2292_v12  ;;  %vm2341_vm1 = vcmask 769024   ;;  %v3372_v63 = vld [vmem:[#allocation7 + $0x30] sm:$0xff]   ;;  %v3373_v12 = vld [vmem:[#allocation7 + $0x38] sm:$0xff]  }
 0x4f8   : > { %2403 = vmatpush1.bf16.msra.mxu1 %v2294_v21  ;;  %v3374_v21 = vld [vmem:[#allocation7 + $0x40] sm:$0xff]  }
 0x4f9   : > { %v2298_v43 = vpop.permute.xlu1 %2297 }
 0x4fa   : > { %v2300_v0 = vpop.permute.xlu0 %2299 }
 0x4fb   : > { %v2302_v55 = vsel %vm2301_vm12, %v2298_v43, %v2300_v0  ;;  %2404 = vmatprep.subr.bf16.mxu1 %v2300_v0  ;;  %v3375_v43 = vld [vmem:[#allocation7 + $0x48] sm:$0xff]   ;;  %v3376_v0 = vld [vmem:[#allocation7 + $0x50] sm:$0xff]  }
 0x4fc   : > { %2405 = vmatpush1.bf16.msra.mxu1 %v2302_v55  ;;  %v2664_v55 = vsel %vm2662_vm2, 4294967295, %v3536_v17 }
 0x4fd   : > { %v2306_v62 = vpop.permute.xlu1 %2305 }
 0x4fe   : > { %v2308_v49 = vpop.permute.xlu0 %2307 }
 0x4ff   : > { %v2310_v39 = vsel %vm2309_vm13, %v2306_v62, %v2308_v49  ;;  %2406 = vmatprep.subr.bf16.mxu1 %v2308_v49  ;;  %v3377_v62 = vld [vmem:[#allocation7 + $0x58] sm:$0xff]  }
 0x500   : > { %2407 = vmatpush1.bf16.msra.mxu1 %v2310_v39  ;;  %v3378_v39 = vld [vmem:[#allocation7 + $0x60] sm:$0x7f]  }
 0x501   : > { %v2314_v61 = vpop.permute.xlu1 %2313 }
 0x502   : > { %v2316_v22 = vpop.permute.xlu0 %2315 }
 0x503   : > { %v2318_v60 = vsel %vm2317_vm14, %v2314_v61, %v2316_v22  ;;  %2408 = vmatprep.subr.bf16.mxu1 %v2316_v22 }
 0x504   : > { %2409 = vmatpush1.bf16.msra.mxu1 %v2318_v60  ;;  %v2665_v60 = vsel %vm2663_vm3, %v2664_v55, 0 }
 0x505   : > { %v2322_v41 = vpop.permute.xlu1 %2321 }
 0x506   : > { %v2324_v47 = vpop.permute.xlu0 %2323 }
 0x507   : > { %v2326_v46 = vsel %vm883_vm4, %v2322_v41, %v2324_v47  ;;  %2410 = vmatprep.subr.bf16.mxu1 %v2324_v47  ;;  %v2667_v47 = vand.u32 %v3378_v39, %v2665_v60 }
 0x508   : > { %2411 = vmatpush1.bf16.msra.mxu1 %v2326_v46 }
 0x509   : > { %v2330_v56 = vpop.permute.xlu1 %2329 }
 0x50a   : > { %v2332_v24 = vpop.permute.xlu0 %2331 }
 0x50b   : > { %v2334_v20 = vsel %vm2333_vm15, %v2330_v56, %v2332_v24  ;;  %2412 = vmatprep.subr.bf16.mxu1 %v2332_v24 }
 0x50c   : > { %2413 = vmatpush1.bf16.msra.mxu1 %v2334_v20 }
 0x50d   : > { %v2338_v1 = vpop.permute.xlu1 %2337 }
 0x50e   : > { %v2340_v9 = vpop.permute.xlu0 %2339 }
 0x50f   : > { %v2342_v52 = vsel %vm2341_vm1, %v2338_v1, %v2340_v9  ;;  %2414 = vmatprep.subr.bf16.mxu1 %v2340_v9 }
 0x510   : > { %2415 = vmatpush1.bf16.msra.mxu1 %v2342_v52 }
 0x511   : > { %2669 = vmatprep.subr.bf16.mxu1 %v5224_v36 }
 0x513   : > { %2431 = vmatmul.mubr.bf16.vlgmr.msra.gmra.mrb[4].mxu1 %v3362_v42 }
 0x514   : > { %2958 = vmatprep.mubr.msk.bf16.mxu1 %vm2391_vm11, %v3363_v29  ;;  %2670 = vmatpush1.bf16.msra.mxu1 %v3366_v57 }
 0x515   : > { %2671 = vmatprep.subr.bf16.mxu1 %v5224_v36 }
 0x518   : > { %2672 = vmatpush1.bf16.msra.mxu1 %v3367_v50 }
 0x519   : > { %2673 = vmatprep.subr.bf16.mxu1 %v5224_v36 }
 0x51b   : > { %2441 = vmatmul.mubr.bf16.gmra.mrb[8].mxu1 %v3365_v58 }
 0x51c   : > { %2674 = vmatpush1.bf16.msra.mxu1 %v3368_v25 }
 0x51d   : > { %2675 = vmatprep.subr.bf16.mxu1 %v5224_v36 }
 0x51e   : > { %v2356_v19 = vpop.permute.xlu1 %2355 }
 0x51f   : > { %v2361_v14 = vpop.permute.xlu0 %2360 }
 0x520   : > { %2676 = vmatpush1.bf16.msra.mxu1 %v3369_v48 }
 0x521   : > { %2677 = vmatprep.subr.bf16.mxu1 %v5224_v36 }
 0x522   : > { %v2366_v37 = vpop.permute.xlu1 %2365 }
 0x523   : > { %v2371_v4 = vpop.permute.xlu0 %2370 }
 0x524   : > { %2678 = vmatpush1.bf16.msra.mxu1 %v3370_v32 }
 0x525   : > { %2679 = vmatprep.subr.bf16.mxu1 %v5224_v36 }
 0x528   : > { %2680 = vmatpush1.bf16.msra.mxu1 %v3371_v11 }
 0x529   : > { %2681 = vmatprep.subr.bf16.mxu1 %v5224_v36 }
 0x52c   : > { %2682 = vmatpush1.bf16.msra.mxu1 %v3372_v63 }
 0x52d   : > { %2683 = vmatprep.subr.bf16.mxu1 %v5224_v36 }
 0x530   : > { %2684 = vmatpush1.bf16.msra.mxu1 %v3373_v12 }
 0x531   : > { %2685 = vmatprep.subr.bf16.mxu1 %v5224_v36 }
 0x534   : > { %2686 = vmatpush1.bf16.msra.mxu1 %v3374_v21 }
 0x535   : > { %2687 = vmatprep.subr.bf16.mxu1 %v5224_v36 }
 0x538   : > { %2688 = vmatpush1.bf16.msra.mxu1 %v3375_v43 }
 0x539   : > { %2689 = vmatprep.subr.bf16.mxu1 %v5224_v36 }
 0x53c   : > { %2690 = vmatpush1.bf16.msra.mxu1 %v3376_v0 }
 0x53d   : > { %2691 = vmatprep.subr.bf16.mxu1 %v5224_v36 }
 0x540   : > { %2692 = vmatpush1.bf16.msra.mxu1 %v3377_v62 }
 0x541   : > { %2693 = vmatprep.subr.bf16.mxu1 %v5224_v36 }
 0x544   : > { %2694 = vmatpush1.bf16.msra.mxu1 %v2667_v47 }
 0x5e6   : > { %v2432_v18 = vpop.f32.mrb[4].mxu1 }
 0x5e7   : > { %v4978_v26 = vadd.f32 %v2432_v18, %v2356_v19  ;;  %v2434_v53 = vpop.f32.mrb[5].mxu1 }
 0x5e8   : > { %v4980_v45 = vadd.f32 %v2434_v53, %v2356_v19  ;;  %v2436_v33 = vpop.f32.mrb[6].mxu1 }
 0x5e9   : > { %v2451_v59 = vmax.f32 %v4978_v26, 0.0  ;;  %v4983_v44 = vadd.f32 %v2436_v33, %v2361_v14  ;;  %v2438_v23 = vpop.f32.mrb[7].mxu1 }
 0x5ea   : > { %v2452_v30 = vmax.f32 %v4980_v45, 0.0  ;;  %v4986_v6 = vadd.f32 %v2438_v23, %v2361_v14 }
 0x5eb   : > { %v2453_v10 = vmax.f32 %v4983_v44, 0.0 }
 0x5ec   : > { %v3168_v5 = vpack.i.bf16 %v2452_v30, %v2451_v59  ;;  %v2454_v7 = vmax.f32 %v4986_v6, 0.0 }
 0x5ee   : > { %v3173_v3 = vpack.i.bf16 %v2454_v7, %v2453_v10  ;;  %v2442_v27 = vpop.f32.mrb[8].mxu1  ;;  %3169 = vrot.lane.b32.xlu1 %v3168_v5, %s3528_s13 }
 0x5ef   : > { %v4999_v31 = vadd.f32 %v2442_v27, %v2366_v37  ;;  %v2444_v13 = vpop.f32.mrb[9].mxu1 }
 0x5f0   : > { %v5001_v8 = vadd.f32 %v2444_v13, %v2366_v37  ;;  %v2446_v51 = vpop.f32.mrb[10].mxu1  ;;  %3174 = vrot.lane.b32.xlu0 %v3173_v3, %s3528_s13 }
 0x5f1   : > { %v2455_v28 = vmax.f32 %v4999_v31, 0.0  ;;  %v5005_v16 = vadd.f32 %v2446_v51, %v2371_v4  ;;  %v2448_v54 = vpop.f32.mrb[11].mxu1 }
 0x5f2   : > { %v2456_v2 = vmax.f32 %v5001_v8, 0.0  ;;  %v5008_v40 = vadd.f32 %v2448_v54, %v2371_v4 }
 0x5f3   : > { %v2457_v35 = vmax.f32 %v5005_v16, 0.0 }
 0x5f4   : > { %v3178_v34 = vpack.i.bf16 %v2456_v2, %v2455_v28  ;;  %v2458_v15 = vmax.f32 %v5008_v40, 0.0 }
 0x5f6   : > { %v3183_v38 = vpack.i.bf16 %v2458_v15, %v2457_v35  ;;  %3179 = vrot.lane.b32.xlu1 %v3178_v34, %s3528_s13 }
 0x5f8   : > { %3184 = vrot.lane.b32.xlu0 %v3183_v38, %s3528_s13  ;;  %s2980_s13 = sshll.u32 %s5226_s25, 4 }
 0x5f9   : > { %s334_s19 = scalar_lea.vmem %s5079_s7, %s2980_s13 }
 0x660   : > { %v3170_v49 = vpop.permute.xlu1 %3169 }
 0x661   : > { %v3172_v61 = vunpack.i.h.bf16 %v3170_v49  ;;  %v3171_v22 = vunpack.i.l.bf16 %v3170_v49 }
 0x662   : > { %v3175_v41 = vpop.permute.xlu0 %3174 }
 0x663   : > { %v2496_v46 = vmax.f32 %v2452_v30, %v3172_v61  ;;  %v2483_v56 = vsel %vm463_vm0, %v3171_v22, %v3172_v61  ;;  %v3177_v24 = vunpack.i.h.bf16 %v3175_v41  ;;  %v3176_v20 = vunpack.i.l.bf16 %v3175_v41 }
 0x664   : > { %v2495_v17 = vmax.f32 %v2451_v59, %v2483_v56 }
 0x665   : > { %v2498_v1 = vmax.f32 %v2454_v7, %v3177_v24  ;;  %v2484_v9 = vsel %vm463_vm0, %v3176_v20, %v3177_v24 }
 0x666   : > { %v3188_v36 = vpack.i.bf16 %v2496_v46, %v2495_v17  ;;  %v2497_v52 = vmax.f32 %v2453_v10, %v2484_v9 }
 0x668   : > { %v3193_v42 = vpack.i.bf16 %v2498_v1, %v2497_v52  ;;  %v3180_v29 = vpop.permute.xlu1 %3179  ;;  %3189 = vrot.lane.b32.xlu1 %v3188_v36, %s3537_s9 }
 0x669   : > { %v3182_v58 = vunpack.i.h.bf16 %v3180_v29  ;;  %v3181_v19 = vunpack.i.l.bf16 %v3180_v29 }
 0x66a   : > { %v3185_v18 = vpop.permute.xlu0 %3184  ;;  %3194 = vrot.lane.b32.xlu0 %v3193_v42, %s3537_s9 }
 0x66b   : > { %v2500_v26 = vmax.f32 %v2456_v2, %v3182_v58  ;;  %v2485_v53 = vsel %vm463_vm0, %v3181_v19, %v3182_v58  ;;  %v3187_v14 = vunpack.i.h.bf16 %v3185_v18  ;;  %v3186_v45 = vunpack.i.l.bf16 %v3185_v18 }
 0x66c   : > { %v2499_v33 = vmax.f32 %v2455_v28, %v2485_v53 }
 0x66d   : > { %v2502_v59 = vmax.f32 %v2458_v15, %v3187_v14  ;;  %v2486_v44 = vsel %vm463_vm0, %v3186_v45, %v3187_v14  ;;  %vm2655_vm0 = vcmask 629760  }
 0x66e   : > { %v3198_v23 = vpack.i.bf16 %v2500_v26, %v2499_v33  ;;  %v2501_v30 = vmax.f32 %v2457_v35, %v2486_v44 }
 0x670   : > { %v3203_v6 = vpack.i.bf16 %v2502_v59, %v2501_v30  ;;  %3199 = vrot.lane.b32.xlu1 %v3198_v23, %s3537_s9 }
 0x672   : > { %3204 = vrot.lane.b32.xlu0 %v3203_v6, %s3537_s9 }
 0x6da   : > { %v3190_v10 = vpop.permute.xlu1 %3189 }
 0x6db   : > { %v3192_v5 = vunpack.i.h.bf16 %v3190_v10  ;;  %v3191_v7 = vunpack.i.l.bf16 %v3190_v10 }
 0x6dc   : > { %v3195_v37 = vpop.permute.xlu0 %3194 }
 0x6dd   : > { %v2528_v3 = vsel %vm2301_vm12, %v3191_v7, %v3192_v5  ;;  %v3197_v27 = vunpack.i.h.bf16 %v3195_v37  ;;  %v3196_v31 = vunpack.i.l.bf16 %v3195_v37  ;;  %v2541_v13 = vmax.f32 %v2496_v46, %v3192_v5 }
 0x6de   : > { %v2540_v51 = vmax.f32 %v2495_v17, %v2528_v3 }
 0x6df   : > { %v2543_v4 = vmax.f32 %v2498_v1, %v3197_v27  ;;  %v2529_v8 = vsel %vm2301_vm12, %v3196_v31, %v3197_v27 }
 0x6e0   : > { %v2542_v28 = vmax.f32 %v2497_v52, %v2529_v8 }
 0x6e1   : > { %v2549_v16 = vpack.c.bf16 %v2543_v4, %v2541_v13 }
 0x6e2   : > { %v2548_v54 = vpack.c.bf16 %v2542_v28, %v2540_v51  ;;  %v3200_v2 = vpop.permute.xlu1 %3199 }
 0x6e3   : > { %v3202_v40 = vunpack.i.h.bf16 %v3200_v2  ;;  %v3201_v57 = vunpack.i.l.bf16 %v3200_v2  ;;  %2972 = vmatprep.mubr.msk.bf16.mxu1 %vm2655_vm0, %v2549_v16 }
 0x6e4   : > { %v3205_v35 = vpop.permute.xlu0 %3204  ;;  %2702 = vmatmul.mubr.bf16.vlgmr.msra.gmra.mrb[12].mxu1 %v2548_v54 }
 0x6e5   : > { %v2530_v34 = vsel %vm2301_vm12, %v3201_v57, %v3202_v40  ;;  %v3207_v15 = vunpack.i.h.bf16 %v3205_v35  ;;  %v3206_v50 = vunpack.i.l.bf16 %v3205_v35  ;;  %v2545_v38 = vmax.f32 %v2500_v26, %v3202_v40 }
 0x6e6   : > { %v2544_v32 = vmax.f32 %v2499_v33, %v2530_v34 }
 0x6e7   : > { %v2547_v25 = vmax.f32 %v2502_v59, %v3207_v15  ;;  %v2531_v48 = vsel %vm2301_vm12, %v3206_v50, %v3207_v15 }
 0x6e8   : > { %v2546_v11 = vmax.f32 %v2501_v30, %v2531_v48 }
 0x6e9   : > { %v2551_v63 = vpack.c.bf16 %v2547_v25, %v2545_v38 }
 0x6ea   : > { %v2550_v12 = vpack.c.bf16 %v2546_v11, %v2544_v32 }
 0x6eb   : > { %2973 = vmatprep.mubr.msk.bf16.mxu1 %vm2655_vm0, %v2551_v63 }
 0x6ec   : > { %2710 = vmatmul.mubr.bf16.gmra.mrb[16].mxu1 %v2550_v12 }
 0x7b7   : > { %v2703_v21 = vpop.f32.mrb[12].mxu1 }
 0x7b8   : > { %v2705_v43 = vpop.f32.mrb[13].mxu1 }
 0x7b9   : > { %v2706_v0 = vpop.f32.mrb[14].mxu1 }
 0x7ba   : > { %v2988_v55 = vpack.c.bf16 %v2706_v0, %v2703_v21  ;;  %v2708_v62 = vpop.f32.mrb[15].mxu1 }
 0x7bc   : > { %2989 = vst [vmem:[%s334_s19] sm:$0xff] %v2988_v55  }
 0x7bf   : > { %v2711_v49 = vpop.f32.mrb[16].mxu1 }
 0x7c0   : > { %v2713_v39 = vpop.f32.mrb[17].mxu1 }
 0x7c1   : > { %v2714_v61 = vpop.f32.mrb[18].mxu1 }
 0x7c2   : > { %v2993_v22 = vpack.c.bf16 %v2714_v61, %v2711_v49  ;;  %v2716_v60 = vpop.f32.mrb[19].mxu1 }
 0x7c4   : > { %2995 = vst [vmem:[%s334_s19 + $0x8] sm:$0xff] %v2993_v22  }
 0x7c5 PF: > { %s20_s24 = sadd.s32 1, %s3509_s24  }
 0x7c6   : > { %p17_p6 = scmp.ge.s32.totalorder %s20_s24, 4  }
 0x7c8   :  { %19 = sbr.rel (!%p17_p6) target bundleno = 3 (0x3), region = 95 }
 0x7cf   :  { %2759 = vsyncpa [#allocation3], 1 }
 0x7d0   :  { %2761 = vsyncpa [#allocation3 + $0x1], 1 }
 0x7d1   :  { %2762 = vsyncpa [#allocation5], 1 }
 0x7d2   :  { %2763 = vsyncpa [#allocation8], 1 }

// kernel: net_forward.3
= control target key start
LH: loop header
LB: loop body
LE: loop exit
PB: predicated region body
PF: predicated region fallthrough
CT: control target
= control target key end

     0   :  { %10 = vsyncpa [#allocation3], 0  ;;  %s6043_s0 = inlined_call_operand.vmem [shape: bf16[2,4096], index: 0, kind: input, shape index: {}]   ;;  %s6044_s1 = inlined_call_operand.hbm [shape: bf16[4096,256], index: 1, kind: input, shape index: {}]   ;;  %s6045_s2 = inlined_call_operand.hbm [shape: f32[1,256], index: 2, kind: input, shape index: {}]   ;;  %s6046_s3 = inlined_call_operand.hbm [shape: bf16[256,128], index: 3, kind: input, shape index: {}]   ;;  %s6047_s4 = inlined_call_operand.hbm [shape: f32[1,128], index: 4, kind: input, shape index: {}]   ;;  %s6048_s5 = inlined_call_operand.hbm [shape: f32[2,128], index: 5, kind: output, shape index: {}]  }
   0x1   :  { %11 = vsyncpa [#allocation6], 0 }
   0x2   :  { %12 = vsyncpa [#allocation9], 0 }
   0x3   :  { %13 = vsyncpa [#allocation4], 0  ;;  %s5773_s18 = smov [#allocation5]   ;;  %s5774_s20 = smov [#allocation2]  }
   0x4   :  { %s34_s19 = sshll.u32 %s5773_s18, 4  ;;  %s21_s21 = sshll.u32 %s5774_s20, 4  ;;  %s35_s19 = int_to_ptr.vmem [resolvable:$true] %s34_s19  ;;  %s5813_s21 = int_to_ptr.vmem [resolvable:$true] %s21_s21 }
   0x5   :  { %s5655_s24 = scalar_lea.hbm %s6045_s2, 32 }
   0x6   :  { %p5656_p0 = scmp.ne.s32.totalorder %s6045_s2, %s5655_s24  ;;  %p5659_p1 = scmp.lt.u32.totalorder %s5655_s24, %s6045_s2 }
   0x8   :  { %p5661_p2 = pnand %p5659_p1, %p5656_p0 }
   0xa   :  { %5664 = shalt.err (!%p5661_p2)
}
   0xb   :  { %s5665_s29 = scalar_lea.vmem %s35_s19, 32  ;;  %p5670_p4 = scmp.lt.s32.totalorder %s35_s19, %s35_s19 }
   0xc   :  { %p5666_p3 = scmp.ne.s32.totalorder %s35_s19, %s5665_s29  ;;  %p5671_p5 = scmp.lt.s32.totalorder %s5665_s29, %s5665_s29 }
   0xe   :  { %p5672_p6 = por %p5671_p5, %p5670_p4 }
  0x10   :  { %p5673_p7 = pnand %p5672_p6, %p5666_p3 }
  0x12   :  { %5676 = shalt.err (!%p5673_p7)
}
  0x13   :  { %37 = dma.hbm_to_vmem [thread:$0]  %s6045_s2, 32, %s35_s19, [#allocation6]  }
  0x14   :  { %s5677_s9 = scalar_lea.hbm %s6044_s1, 65536 }
  0x15   :  { %p5678_p8 = scmp.ne.s32.totalorder %s6044_s1, %s5677_s9  ;;  %p5681_p9 = scmp.lt.u32.totalorder %s5677_s9, %s6044_s1 }
  0x17   :  { %p5683_p10 = pnand %p5681_p9, %p5678_p8 }
  0x19   :  { %5686 = shalt.err (!%p5683_p10)
}
  0x1a   :  { %s5687_s14 = scalar_lea.vmem %s5813_s21, 65536  ;;  %p5692_p12 = scmp.lt.s32.totalorder %s5813_s21, %s5813_s21 }
  0x1b   :  { %p5688_p11 = scmp.ne.s32.totalorder %s5813_s21, %s5687_s14  ;;  %p5693_p13 = scmp.lt.s32.totalorder %s5687_s14, %s5687_s14 }
  0x1d   :  { %p5694_p0 = por %p5693_p13, %p5692_p12 }
  0x1f   :  { %p5695_p1 = pnand %p5694_p0, %p5688_p11 }
  0x21   :  { %5698 = shalt.err (!%p5695_p1)
}
  0x22   :  { %s5775_s2 = smov 128   ;;  %s5776_s15 = smov 8  }
  0x23   :  { %27 = dma.hbm_to_vmem [thread:$0]  %s6044_s1, 65536, %s5813_s21, [#allocation3], %s5775_s2, %s5775_s2, %s5776_s15  }
  0x24   :  { %s5777_s18 = smov [#allocation7]   ;;  %s5699_s23 = scalar_lea.hbm %s6046_s3, 2048 }
  0x25   :  { %s43_s19 = sshll.u32 %s5777_s18, 4  ;;  %p5700_p2 = scmp.ne.s32.totalorder %s6046_s3, %s5699_s23  ;;  %s44_s19 = int_to_ptr.vmem [resolvable:$true] %s43_s19 }
  0x26   :  { %p5703_p3 = scmp.lt.u32.totalorder %s5699_s23, %s6046_s3 }
  0x28   :  { %p5705_p4 = pnand %p5703_p3, %p5700_p2 }
  0x2a   :  { %5708 = shalt.err (!%p5705_p4)
}
  0x2b   :  { %s5709_s28 = scalar_lea.vmem %s44_s19, 2048  ;;  %p5714_p6 = scmp.lt.s32.totalorder %s44_s19, %s44_s19 }
  0x2c   :  { %p5710_p5 = scmp.ne.s32.totalorder %s44_s19, %s5709_s28  ;;  %p5715_p7 = scmp.lt.s32.totalorder %s5709_s28, %s5709_s28 }
  0x2e   :  { %p5716_p8 = por %p5715_p7, %p5714_p6 }
  0x30   :  { %p5717_p9 = pnand %p5716_p8, %p5710_p5 }
  0x32   :  { %5720 = shalt.err (!%p5717_p9)
}
  0x33   :  { %s5778_s1 = smov 64   ;;  %s5779_s21 = smov 4  }
  0x34   :  { %49 = dma.hbm_to_vmem [thread:$0]  %s6046_s3, 2048, %s44_s19, [#allocation6], %s5778_s1, %s5778_s1, %s5779_s21  }
  0x35   :  { %s5780_s6 = smov [#allocation8]   ;;  %s5721_s10 = scalar_lea.hbm %s6047_s4, 16 }
  0x36   :  { %s56_s7 = sshll.u32 %s5780_s6, 4  ;;  %p5722_p10 = scmp.ne.s32.totalorder %s6047_s4, %s5721_s10  ;;  %s57_s7 = int_to_ptr.vmem [resolvable:$true] %s56_s7 }
  0x37   :  { %p5725_p11 = scmp.lt.u32.totalorder %s5721_s10, %s6047_s4 }
  0x39   :  { %p5727_p12 = pnand %p5725_p11, %p5722_p10 }
  0x3b   :  { %5730 = shalt.err (!%p5727_p12)
}
  0x3c   :  { %s5731_s2 = scalar_lea.vmem %s57_s7, 16  ;;  %s5735_s3 = scalar_lea.vmem %s57_s7, 32 }
  0x3d   :  { %p5732_p13 = scmp.ne.s32.totalorder %s57_s7, %s5731_s2  ;;  %p5736_p0 = scmp.lt.s32.totalorder %s57_s7, %s57_s7 }
  0x3e   :  { %p5737_p1 = scmp.lt.s32.totalorder %s5735_s3, %s5731_s2 }
  0x40   :  { %p5738_p2 = por %p5737_p1, %p5736_p0 }
  0x42   :  { %p5739_p3 = pnand %p5738_p2, %p5732_p13 }
  0x44   :  { %5742 = shalt.err (!%p5739_p3)
}
  0x45   :  { %59 = dma.hbm_to_vmem [thread:$0]  %s6047_s4, 16, %s57_s7, [#allocation9]  }
  0x46   :  { %5765 = dma.done.wait [#allocation3], 65536  }
  0x47   :  { %5766 = vsyncadd [#allocation3], 4294901760 }
  0x48   :  { %5767 = dma.done.wait [#allocation6], 2080  }
  0x49   :  { %5768 = vsyncadd [#allocation6], 4294965216 }
  0x4a   :  { %5769 = dma.done.wait [#allocation9], 16  }
  0x4b   :  { %5770 = vsyncadd [#allocation9], 4294967280  ;;  %v4867_v0 = vld [vmem:[#allocation2 + $0x4] ss:$8 sps:$4 sm:$0xff]   ;;  %v4871_v2 = vld [vmem:[#allocation2] ss:$8 sps:$4 sm:$0xff]   ;;  %v591_v36 = vlaneseq }
  0x4c   :  { %v4869_v1 = vld [vmem:[#allocation2 + $0x804] ss:$8 sps:$4 sm:$0xff]   ;;  %3393 = vmatprep.subr.bf16.mxu1 %v4867_v0  ;;  %v4872_v3 = vld [vmem:[#allocation2 + $0x800] ss:$8 sps:$4 sm:$0xff]   ;;  %v4873_v4 = vld [vmem:[#allocation2 + $0x14] ss:$8 sps:$4 sm:$0xff]  }
  0x4d   :  { %3721 = vmatprep.subr.bf16.mxu0 %v4869_v1  ;;  %3394 = vmatpush1.bf16.msra.mxu1 %v4871_v2  ;;  %v4875_v5 = vld [vmem:[#allocation2 + $0x814] ss:$8 sps:$4 sm:$0xff]   ;;  %v4877_v6 = vld [vmem:[#allocation2 + $0x10] ss:$8 sps:$4 sm:$0xff]   ;;  %v4879_v8 = vld [vmem:[#allocation2 + $0x24] ss:$8 sps:$4 sm:$0xff]  }
  0x4e   :  { %3722 = vmatpush1.bf16.msra.mxu0 %v4872_v3  ;;  %3395 = vmatprep.subr.bf16.mxu1 %v4873_v4  ;;  %v4878_v7 = vld [vmem:[#allocation2 + $0x810] ss:$8 sps:$4 sm:$0xff]   ;;  %v4881_v9 = vld [vmem:[#allocation2 + $0x824] ss:$8 sps:$4 sm:$0xff]   ;;  %v4883_v10 = vld [vmem:[#allocation2 + $0x20] ss:$8 sps:$4 sm:$0xff]  }
  0x4f   :  { %3723 = vmatprep.subr.bf16.mxu0 %v4875_v5  ;;  %v4884_v11 = vld [vmem:[#allocation2 + $0x820] ss:$8 sps:$4 sm:$0xff]   ;;  %v4885_v12 = vld [vmem:[#allocation2 + $0x34] ss:$8 sps:$4 sm:$0xff]   ;;  %v4889_v14 = vld [vmem:[#allocation2 + $0x30] ss:$8 sps:$4 sm:$0xff]  }
  0x50   :  { %v4887_v13 = vld [vmem:[#allocation2 + $0x834] ss:$8 sps:$4 sm:$0xff]   ;;  %v4890_v15 = vld [vmem:[#allocation2 + $0x830] ss:$8 sps:$4 sm:$0xff]   ;;  %v4891_v16 = vld [vmem:[#allocation2 + $0x44] ss:$8 sps:$4 sm:$0xff]  }
  0x51   :  { %3396 = vmatpush1.bf16.msra.mxu1 %v4877_v6  ;;  %v4893_v17 = vld [vmem:[#allocation2 + $0x844] ss:$8 sps:$4 sm:$0xff]   ;;  %v4895_v18 = vld [vmem:[#allocation2 + $0x40] ss:$8 sps:$4 sm:$0xff]   ;;  %v4897_v20 = vld [vmem:[#allocation2 + $0x54] ss:$8 sps:$4 sm:$0xff]  }
  0x52   :  { %3724 = vmatpush1.bf16.msra.mxu0 %v4878_v7  ;;  %3397 = vmatprep.subr.bf16.mxu1 %v4879_v8  ;;  %v4896_v19 = vld [vmem:[#allocation2 + $0x840] ss:$8 sps:$4 sm:$0xff]   ;;  %v4899_v21 = vld [vmem:[#allocation2 + $0x854] ss:$8 sps:$4 sm:$0xff]   ;;  %v4901_v22 = vld [vmem:[#allocation2 + $0x50] ss:$8 sps:$4 sm:$0xff]  }
  0x53   :  { %3725 = vmatprep.subr.bf16.mxu0 %v4881_v9  ;;  %v4902_v23 = vld [vmem:[#allocation2 + $0x850] ss:$8 sps:$4 sm:$0xff]   ;;  %v4903_v24 = vld [vmem:[#allocation2 + $0x64] ss:$8 sps:$4 sm:$0xff]   ;;  %v4907_v26 = vld [vmem:[#allocation2 + $0x60] ss:$8 sps:$4 sm:$0xff]  }
  0x54   :  { %v4905_v25 = vld [vmem:[#allocation2 + $0x864] ss:$8 sps:$4 sm:$0xff]   ;;  %v4908_v27 = vld [vmem:[#allocation2 + $0x860] ss:$8 sps:$4 sm:$0xff]   ;;  %v4909_v28 = vld [vmem:[#allocation2 + $0x74] ss:$8 sps:$4 sm:$0xff]  }
  0x55   :  { %3398 = vmatpush1.bf16.msra.mxu1 %v4883_v10  ;;  %v4911_v29 = vld [vmem:[#allocation2 + $0x874] ss:$8 sps:$4 sm:$0xff]   ;;  %v4913_v30 = vld [vmem:[#allocation2 + $0x70] ss:$8 sps:$4 sm:$0xff]   ;;  %v4915_v32 = vld [vmem:[#allocation2 + $0x84] ss:$8 sps:$4 sm:$0xff]  }
  0x56   :  { %3726 = vmatpush1.bf16.msra.mxu0 %v4884_v11  ;;  %3399 = vmatprep.subr.bf16.mxu1 %v4885_v12  ;;  %v4914_v31 = vld [vmem:[#allocation2 + $0x870] ss:$8 sps:$4 sm:$0xff]   ;;  %v4917_v33 = vld [vmem:[#allocation2 + $0x884] ss:$8 sps:$4 sm:$0xff]   ;;  %v4919_v34 = vld [vmem:[#allocation2 + $0x80] ss:$8 sps:$4 sm:$0xff]  }
  0x57   :  { %3727 = vmatprep.subr.bf16.mxu0 %v4887_v13  ;;  %v4920_v35 = vld [vmem:[#allocation2 + $0x880] ss:$8 sps:$4 sm:$0xff]   ;;  %v5781_v37 = vmov 1966171168   ;;  %v4921_v39 = vld [vmem:[#allocation2 + $0x94] ss:$8 sps:$4 sm:$0xff]  }
  0x58   :  { %v607_v38 = vunpack.c.l.s4 %v5781_v37  ;;  %v4923_v40 = vld [vmem:[#allocation2 + $0x894] ss:$8 sps:$4 sm:$0xff]   ;;  %v4925_v41 = vld [vmem:[#allocation2 + $0x90] ss:$8 sps:$4 sm:$0xff]   ;;  %v5868_v42 = vshrl.u32 %v591_v36, 7  ;;  %v5876_v52 = vld [vmem:[%s6043_s0] sm:$0xff] }
  0x59   :  { %3400 = vmatpush1.bf16.msra.mxu1 %v4889_v14  ;;  %v4926_v44 = vld [vmem:[#allocation2 + $0x890] ss:$8 sps:$4 sm:$0xff]   ;;  %v4927_v45 = vld [vmem:[#allocation2 + $0xa4] ss:$8 sps:$4 sm:$0xff]   ;;  %v4931_v47 = vld [vmem:[#allocation2 + $0xa0] ss:$8 sps:$4 sm:$0xff]  }
  0x5a   :  { %3728 = vmatpush1.bf16.msra.mxu0 %v4890_v15  ;;  %3401 = vmatprep.subr.bf16.mxu1 %v4891_v16  ;;  %v608_v43 = vunpack.c.0.s8 %v607_v38  ;;  %v4929_v46 = vld [vmem:[#allocation2 + $0x8a4] ss:$8 sps:$4 sm:$0xff]   ;;  %v4932_v48 = vld [vmem:[#allocation2 + $0x8a0] ss:$8 sps:$4 sm:$0xff]   ;;  %v4933_v50 = vld [vmem:[#allocation2 + $0xb4] ss:$8 sps:$4 sm:$0xff]  }
  0x5b   :  { %3729 = vmatprep.subr.bf16.mxu0 %v4893_v17  ;;  %v4935_v51 = vld [vmem:[#allocation2 + $0x8b4] ss:$8 sps:$4 sm:$0xff]   ;;  %v4937_v53 = vld [vmem:[#allocation2 + $0xb0] ss:$8 sps:$4 sm:$0xff]   ;;  %v4939_v57 = vld [vmem:[#allocation2 + $0xc4] ss:$8 sps:$4 sm:$0xff]  }
  0x5c   :  { %v5871_v49 = vsub.s32 %v608_v43, %v5868_v42  ;;  %v4938_v55 = vld [vmem:[#allocation2 + $0x8b0] ss:$8 sps:$4 sm:$0xff]   ;;  %v4941_v58 = vld [vmem:[#allocation2 + $0x8c4] ss:$8 sps:$4 sm:$0xff]   ;;  %v4943_v63 = vld [vmem:[#allocation2 + $0xc0] ss:$8 sps:$4 sm:$0xff]  }
  0x5d   :  { %3402 = vmatpush1.bf16.msra.mxu1 %v4895_v18  ;;  %v5883_v56 = vld [vmem:[%s6043_s0 + $0x10] sm:$0xff]  ;;  %v4944_v0 = vld [vmem:[#allocation2 + $0x8c0] ss:$8 sps:$4 sm:$0xff]   ;;  %v4951_v6 = vld [vmem:[#allocation2 + $0xe4] ss:$8 sps:$4 sm:$0xff]  }
  0x5e   :  { %3730 = vmatpush1.bf16.msra.mxu0 %v4896_v19  ;;  %3403 = vmatprep.subr.bf16.mxu1 %v4897_v20  ;;  %v612_v54 = vrot.slane %v5876_v52, %v5871_v49  ;;  %v710_v60 = vrot.slane %v5883_v56, %v5871_v49  ;;  %v4945_v1 = vld [vmem:[#allocation2 + $0xd4] ss:$8 sps:$4 sm:$0xff]   ;;  %v4949_v4 = vld [vmem:[#allocation2 + $0xd0] ss:$8 sps:$4 sm:$0xff]   ;;  %v4953_v7 = vld [vmem:[#allocation2 + $0x8e4] ss:$8 sps:$4 sm:$0xff]  }
  0x5f   :  { %3731 = vmatprep.subr.bf16.mxu0 %v4899_v21  ;;  %v4947_v2 = vld [vmem:[#allocation2 + $0x8d4] ss:$8 sps:$4 sm:$0xff]   ;;  %v4950_v5 = vld [vmem:[#allocation2 + $0x8d0] ss:$8 sps:$4 sm:$0xff]   ;;  %v4955_v8 = vld [vmem:[#allocation2 + $0xe0] ss:$8 sps:$4 sm:$0xff]  }
  0x60   :  { %v620_v59 = vcombine.high %v612_v54, %v612_v54  ;;  %v718_v62 = vcombine.high %v710_v60, %v710_v60  ;;  %v4956_v9 = vld [vmem:[#allocation2 + $0x8e0] ss:$8 sps:$4 sm:$0xff]   ;;  %v4957_v10 = vld [vmem:[#allocation2 + $0xf4] ss:$8 sps:$4 sm:$0xff]   ;;  %v4961_v12 = vld [vmem:[#allocation2 + $0xf0] ss:$8 sps:$4 sm:$0xff]   ;;  %v5890_v16 = vrot.slane %v612_v54, %v5871_v49  ;;  %v5893_v17 = vrot.slane %v710_v60, %v5871_v49 }
  0x61   :  { %3404 = vmatpush1.bf16.msra.mxu1 %v4901_v22  ;;  %v4959_v11 = vld [vmem:[#allocation2 + $0x8f4] ss:$8 sps:$4 sm:$0xff]   ;;  %v4962_v13 = vld [vmem:[#allocation2 + $0x8f0] ss:$8 sps:$4 sm:$0xff]   ;;  %v4966_v14 = vld [vmem:[#allocation2 + $0x104] ss:$8 sps:$4 sm:$0xff]  }
  0x62   :  { %3732 = vmatpush1.bf16.msra.mxu0 %v4902_v23  ;;  %3405 = vmatprep.subr.bf16.mxu1 %v4903_v24  ;;  %v642_v61 = vrot.slane %v620_v59, %v5871_v49  ;;  %v740_v3 = vrot.slane %v718_v62, %v5871_v49  ;;  %v4970_v15 = vld [vmem:[#allocation2 + $0x904] ss:$8 sps:$4 sm:$0xff]   ;;  %v4964_v18 = vld [vmem:[#allocation2 + $0x100] ss:$8 sps:$4 sm:$0xff]   ;;  %v4973_v20 = vld [vmem:[#allocation2 + $0x114] ss:$8 sps:$4 sm:$0xff]  }
  0x63   :  { %3733 = vmatprep.subr.bf16.mxu0 %v4905_v25  ;;  %v4968_v19 = vld [vmem:[#allocation2 + $0x900] ss:$8 sps:$4 sm:$0xff]   ;;  %v4976_v21 = vld [vmem:[#allocation2 + $0x914] ss:$8 sps:$4 sm:$0xff]   ;;  %v4971_v24 = vld [vmem:[#allocation2 + $0x110] ss:$8 sps:$4 sm:$0xff]  }
  0x64   :  { %3425 = vmatprep.mubr.bf16.mxu1 %v642_v61  ;;  %3753 = vmatprep.mubr.bf16.mxu0 %v740_v3  ;;  %v652_v22 = vcombine.high %v642_v61, %v642_v61  ;;  %v750_v23 = vcombine.high %v740_v3, %v740_v3  ;;  %v4974_v25 = vld [vmem:[#allocation2 + $0x910] ss:$8 sps:$4 sm:$0xff]   ;;  %v4989_v36 = vld [vmem:[#allocation2 + $0x140] ss:$8 sps:$4 sm:$0xff]   ;;  %v4997_v38 = vld [vmem:[#allocation2 + $0x154] ss:$8 sps:$4 sm:$0xff]  }
  0x65   :  { %3406 = vmatpush1.bf16.msra.mxu1 %v4907_v26  ;;  %v4979_v26 = vld [vmem:[#allocation2 + $0x124] ss:$8 sps:$4 sm:$0xff]   ;;  %v4992_v37 = vld [vmem:[#allocation2 + $0x940] ss:$8 sps:$4 sm:$0xff]   ;;  %v5024_v59 = vld [vmem:[#allocation2 + $0x994] ss:$8 sps:$4 sm:$0xff]  }
  0x66   :  { %3734 = vmatpush1.bf16.msra.mxu0 %v4908_v27  ;;  %3407 = vmatprep.subr.bf16.mxu1 %v4909_v28  ;;  %v4982_v27 = vld [vmem:[#allocation2 + $0x924] ss:$8 sps:$4 sm:$0xff]   ;;  %v4977_v28 = vld [vmem:[#allocation2 + $0x120] ss:$8 sps:$4 sm:$0xff]   ;;  %v5019_v60 = vld [vmem:[#allocation2 + $0x190] ss:$8 sps:$4 sm:$0xff]  }
  0x67   :  { %3735 = vmatprep.subr.bf16.mxu0 %v4911_v29  ;;  %v4980_v29 = vld [vmem:[#allocation2 + $0x920] ss:$8 sps:$4 sm:$0xff]   ;;  %v5003_v43 = vld [vmem:[#allocation2 + $0x164] ss:$8 sps:$4 sm:$0xff]   ;;  %v5022_v61 = vld [vmem:[#allocation2 + $0x990] ss:$8 sps:$4 sm:$0xff]  }
  0x68   :  { %v5018_v54 = vld [vmem:[#allocation2 + $0x984] ss:$8 sps:$4 sm:$0xff]   ;;  %v5036_v3 = vld [vmem:[#allocation2 + $0x9b4] ss:$8 sps:$4 sm:$0xff]  }
  0x69   :  { %3408 = vmatpush1.bf16.msra.mxu1 %v4913_v30  ;;  %v4985_v30 = vld [vmem:[#allocation2 + $0x134] ss:$8 sps:$4 sm:$0xff]   ;;  %v5027_v62 = vld [vmem:[#allocation2 + $0x1a4] ss:$8 sps:$4 sm:$0xff]  }
  0x6a   :  { %3736 = vmatpush1.bf16.msra.mxu0 %v4914_v31  ;;  %3409 = vmatprep.subr.bf16.mxu1 %v4915_v32  ;;  %v4988_v31 = vld [vmem:[#allocation2 + $0x934] ss:$8 sps:$4 sm:$0xff]   ;;  %v4983_v32 = vld [vmem:[#allocation2 + $0x130] ss:$8 sps:$4 sm:$0xff]  }
  0x6b   :  { %3737 = vmatprep.subr.bf16.mxu0 %v4917_v33  ;;  %v4986_v33 = vld [vmem:[#allocation2 + $0x930] ss:$8 sps:$4 sm:$0xff]  }
  0x6d   :  { %3410 = vmatpush1.bf16.msra.mxu1 %v4919_v34  ;;  %v4991_v34 = vld [vmem:[#allocation2 + $0x144] ss:$8 sps:$4 sm:$0xff]  }
  0x6e   :  { %3738 = vmatpush1.bf16.msra.mxu0 %v4920_v35  ;;  %3411 = vmatprep.subr.bf16.mxu1 %v4921_v39  ;;  %v4994_v35 = vld [vmem:[#allocation2 + $0x944] ss:$8 sps:$4 sm:$0xff]   ;;  %v5000_v39 = vld [vmem:[#allocation2 + $0x954] ss:$8 sps:$4 sm:$0xff]  }
  0x6f   :  { %3739 = vmatprep.subr.bf16.mxu0 %v4923_v40  ;;  %v4995_v40 = vld [vmem:[#allocation2 + $0x150] ss:$8 sps:$4 sm:$0xff]  }
  0x71   :  { %3412 = vmatpush1.bf16.msra.mxu1 %v4925_v41  ;;  %v4998_v41 = vld [vmem:[#allocation2 + $0x950] ss:$8 sps:$4 sm:$0xff]  }
  0x72   :  { %3740 = vmatpush1.bf16.msra.mxu0 %v4926_v44  ;;  %3413 = vmatprep.subr.bf16.mxu1 %v4927_v45  ;;  %v5006_v44 = vld [vmem:[#allocation2 + $0x964] ss:$8 sps:$4 sm:$0xff]   ;;  %v5001_v45 = vld [vmem:[#allocation2 + $0x160] ss:$8 sps:$4 sm:$0xff]  }
  0x73   :  { %3741 = vmatprep.subr.bf16.mxu0 %v4929_v46  ;;  %v5004_v46 = vld [vmem:[#allocation2 + $0x960] ss:$8 sps:$4 sm:$0xff]  }
  0x75   :  { %3414 = vmatpush1.bf16.msra.mxu1 %v4931_v47  ;;  %v5009_v47 = vld [vmem:[#allocation2 + $0x174] ss:$8 sps:$4 sm:$0xff]  }
  0x76   :  { %3742 = vmatpush1.bf16.msra.mxu0 %v4932_v48  ;;  %3415 = vmatprep.subr.bf16.mxu1 %v4933_v50  ;;  %v5012_v48 = vld [vmem:[#allocation2 + $0x974] ss:$8 sps:$4 sm:$0xff]   ;;  %v5007_v50 = vld [vmem:[#allocation2 + $0x170] ss:$8 sps:$4 sm:$0xff]  }
  0x77   :  { %3743 = vmatprep.subr.bf16.mxu0 %v4935_v51  ;;  %v5010_v51 = vld [vmem:[#allocation2 + $0x970] ss:$8 sps:$4 sm:$0xff]  }
  0x79   :  { %3416 = vmatpush1.bf16.msra.mxu1 %v4937_v53  ;;  %v5015_v53 = vld [vmem:[#allocation2 + $0x184] ss:$8 sps:$4 sm:$0xff]  }
  0x7a   :  { %3744 = vmatpush1.bf16.msra.mxu0 %v4938_v55  ;;  %3417 = vmatprep.subr.bf16.mxu1 %v4939_v57  ;;  %v5013_v55 = vld [vmem:[#allocation2 + $0x180] ss:$8 sps:$4 sm:$0xff]  }
  0x7b   :  { %3745 = vmatprep.subr.bf16.mxu0 %v4941_v58  ;;  %v5016_v57 = vld [vmem:[#allocation2 + $0x980] ss:$8 sps:$4 sm:$0xff]   ;;  %v5021_v58 = vld [vmem:[#allocation2 + $0x194] ss:$8 sps:$4 sm:$0xff]  }
  0x7d   :  { %3418 = vmatpush1.bf16.msra.mxu1 %v4943_v63  ;;  %v5030_v63 = vld [vmem:[#allocation2 + $0x9a4] ss:$8 sps:$4 sm:$0xff]  }
  0x7e   :  { %3746 = vmatpush1.bf16.msra.mxu0 %v4944_v0  ;;  %3419 = vmatprep.subr.bf16.mxu1 %v4945_v1  ;;  %v5025_v0 = vld [vmem:[#allocation2 + $0x1a0] ss:$8 sps:$4 sm:$0xff]  }
  0x7f   :  { %3747 = vmatprep.subr.bf16.mxu0 %v4947_v2  ;;  %v5028_v1 = vld [vmem:[#allocation2 + $0x9a0] ss:$8 sps:$4 sm:$0xff]   ;;  %v5033_v2 = vld [vmem:[#allocation2 + $0x1b4] ss:$8 sps:$4 sm:$0xff]  }
  0x81   :  { %3420 = vmatpush1.bf16.msra.mxu1 %v4949_v4  ;;  %v5031_v4 = vld [vmem:[#allocation2 + $0x1b0] ss:$8 sps:$4 sm:$0xff]  }
  0x82   :  { %3748 = vmatpush1.bf16.msra.mxu0 %v4950_v5  ;;  %3421 = vmatprep.subr.bf16.mxu1 %v4951_v6  ;;  %v5034_v5 = vld [vmem:[#allocation2 + $0x9b0] ss:$8 sps:$4 sm:$0xff]   ;;  %v5039_v6 = vld [vmem:[#allocation2 + $0x1c4] ss:$8 sps:$4 sm:$0xff]  }
  0x83   :  { %3749 = vmatprep.subr.bf16.mxu0 %v4953_v7  ;;  %v5042_v7 = vld [vmem:[#allocation2 + $0x9c4] ss:$8 sps:$4 sm:$0xff]  }
  0x85   :  { %3422 = vmatpush1.bf16.msra.mxu1 %v4955_v8  ;;  %v5037_v8 = vld [vmem:[#allocation2 + $0x1c0] ss:$8 sps:$4 sm:$0xff]  }
  0x86   :  { %3750 = vmatpush1.bf16.msra.mxu0 %v4956_v9  ;;  %3423 = vmatprep.subr.bf16.mxu1 %v4957_v10  ;;  %v5040_v9 = vld [vmem:[#allocation2 + $0x9c0] ss:$8 sps:$4 sm:$0xff]   ;;  %v5045_v10 = vld [vmem:[#allocation2 + $0x1d4] ss:$8 sps:$4 sm:$0xff]  }
  0x87   :  { %3751 = vmatprep.subr.bf16.mxu0 %v4959_v11  ;;  %v5048_v11 = vld [vmem:[#allocation2 + $0x9d4] ss:$8 sps:$4 sm:$0xff]  }
  0x89   :  { %3424 = vmatpush1.bf16.msra.mxu1 %v4961_v12  ;;  %v5043_v12 = vld [vmem:[#allocation2 + $0x1d0] ss:$8 sps:$4 sm:$0xff]  }
  0x8a   :  { %3752 = vmatpush1.bf16.msra.mxu0 %v4962_v13  ;;  %3434 = vmatprep.subr.bf16.mxu1 %v4966_v14  ;;  %v5046_v13 = vld [vmem:[#allocation2 + $0x9d0] ss:$8 sps:$4 sm:$0xff]   ;;  %v5051_v14 = vld [vmem:[#allocation2 + $0x1e4] ss:$8 sps:$4 sm:$0xff]  }
  0x8b   :  { %3762 = vmatprep.subr.bf16.mxu0 %v4970_v15  ;;  %v5054_v15 = vld [vmem:[#allocation2 + $0x9e4] ss:$8 sps:$4 sm:$0xff]  }
  0x8c   :  { %3426 = vmatmul.mubr.bf16.vlgmr.msra.gmra.mrb[0].mxu1 %v5890_v16 }
  0x8d   :  { %3754 = vmatmul.mubr.bf16.vlgmr.msra.gmra.mrb[0].mxu0 %v5893_v17  ;;  %3435 = vmatpush1.bf16.msra.mxu1 %v4964_v18  ;;  %v605_v18 = vcombine.high %v5876_v52, %v5876_v52  ;;  %v5055_v52 = vld [vmem:[#allocation2 + $0x1f0] ss:$8 sps:$4 sm:$0xff]  }
  0x8e   :  { %3763 = vmatpush1.bf16.msra.mxu0 %v4968_v19  ;;  %3436 = vmatprep.subr.bf16.mxu1 %v4973_v20  ;;  %v703_v19 = vcombine.high %v5883_v56, %v5883_v56  ;;  %v5049_v20 = vld [vmem:[#allocation2 + $0x1e0] ss:$8 sps:$4 sm:$0xff]   ;;  %v5063_v56 = vld [vmem:[#allocation2 + $0x204] ss:$8 sps:$4 sm:$0xff]  }
  0x8f   :  { %3764 = vmatprep.subr.bf16.mxu0 %v4976_v21  ;;  %3466 = vmatprep.mubr.bf16.mxu1 %v652_v22  ;;  %v5052_v21 = vld [vmem:[#allocation2 + $0x9e0] ss:$8 sps:$4 sm:$0xff]   ;;  %v5057_v22 = vld [vmem:[#allocation2 + $0x1f4] ss:$8 sps:$4 sm:$0xff]  }
  0x90   :  { %3794 = vmatprep.mubr.bf16.mxu0 %v750_v23  ;;  %v5060_v23 = vld [vmem:[#allocation2 + $0x9f4] ss:$8 sps:$4 sm:$0xff]  }
  0x91   :  { %3437 = vmatpush1.bf16.msra.mxu1 %v4971_v24  ;;  %v5902_v24 = vrot.slane %v605_v18, %v5871_v49  ;;  %v5127_v18 = vld [vmem:[#allocation2 + $0x2b0] ss:$8 sps:$4 sm:$0xff]  }
  0x92   :  { %3765 = vmatpush1.bf16.msra.mxu0 %v4974_v25  ;;  %3438 = vmatprep.subr.bf16.mxu1 %v4979_v26  ;;  %v5905_v25 = vrot.slane %v703_v19, %v5871_v49  ;;  %v5058_v26 = vld [vmem:[#allocation2 + $0x9f0] ss:$8 sps:$4 sm:$0xff]  }
  0x93   :  { %3766 = vmatprep.subr.bf16.mxu0 %v4982_v27  ;;  %v5066_v27 = vld [vmem:[#allocation2 + $0xa04] ss:$8 sps:$4 sm:$0xff]   ;;  %v5130_v19 = vld [vmem:[#allocation2 + $0xab0] ss:$8 sps:$4 sm:$0xff]  }
  0x95   :  { %3439 = vmatpush1.bf16.msra.mxu1 %v4977_v28  ;;  %v621_v28 = vcombine.high %v5902_v24, %v5902_v24 }
  0x96   :  { %3767 = vmatpush1.bf16.msra.mxu0 %v4980_v29  ;;  %3440 = vmatprep.subr.bf16.mxu1 %v4985_v30  ;;  %v719_v29 = vcombine.high %v5905_v25, %v5905_v25  ;;  %v650_v30 = vcombine.high %v5890_v16, %v5890_v16  ;;  %v5067_v16 = vld [vmem:[#allocation2 + $0x210] ss:$8 sps:$4 sm:$0xff]  }
  0x97   :  { %3768 = vmatprep.subr.bf16.mxu0 %v4988_v31  ;;  %v748_v31 = vcombine.high %v5893_v17, %v5893_v17  ;;  %v5070_v17 = vld [vmem:[#allocation2 + $0xa10] ss:$8 sps:$4 sm:$0xff]  }
  0x99   :  { %3441 = vmatpush1.bf16.msra.mxu1 %v4983_v32  ;;  %v5061_v32 = vld [vmem:[#allocation2 + $0x200] ss:$8 sps:$4 sm:$0xff]  }
  0x9a   :  { %3769 = vmatpush1.bf16.msra.mxu0 %v4986_v33  ;;  %3442 = vmatprep.subr.bf16.mxu1 %v4991_v34  ;;  %v5064_v33 = vld [vmem:[#allocation2 + $0xa00] ss:$8 sps:$4 sm:$0xff]   ;;  %v5069_v34 = vld [vmem:[#allocation2 + $0x214] ss:$8 sps:$4 sm:$0xff]  }
  0x9b   :  { %3770 = vmatprep.subr.bf16.mxu0 %v4994_v35  ;;  %v5072_v35 = vld [vmem:[#allocation2 + $0xa14] ss:$8 sps:$4 sm:$0xff]  }
  0x9d   :  { %3443 = vmatpush1.bf16.msra.mxu1 %v4989_v36  ;;  %v5916_v36 = vrot.slane %v621_v28, %v5871_v49  ;;  %v5147_v28 = vld [vmem:[#allocation2 + $0x2e4] ss:$8 sps:$4 sm:$0xff]  }
  0x9e   :  { %3771 = vmatpush1.bf16.msra.mxu0 %v4992_v37  ;;  %3444 = vmatprep.subr.bf16.mxu1 %v4997_v38  ;;  %v5919_v37 = vrot.slane %v719_v29, %v5871_v49  ;;  %v5075_v38 = vld [vmem:[#allocation2 + $0x224] ss:$8 sps:$4 sm:$0xff]  }
  0x9f   :  { %3772 = vmatprep.subr.bf16.mxu0 %v5000_v39  ;;  %v5078_v39 = vld [vmem:[#allocation2 + $0xa24] ss:$8 sps:$4 sm:$0xff]  }
  0xa0   :  { %v5150_v29 = vld [vmem:[#allocation2 + $0xae4] ss:$8 sps:$4 sm:$0xff]  }
  0xa1   :  { %3445 = vmatpush1.bf16.msra.mxu1 %v4995_v40  ;;  %v5073_v40 = vld [vmem:[#allocation2 + $0x220] ss:$8 sps:$4 sm:$0xff]  }
  0xa2   :  { %3773 = vmatpush1.bf16.msra.mxu0 %v4998_v41  ;;  %3446 = vmatprep.subr.bf16.mxu1 %v5003_v43  ;;  %v5076_v41 = vld [vmem:[#allocation2 + $0xa20] ss:$8 sps:$4 sm:$0xff]   ;;  %v5081_v43 = vld [vmem:[#allocation2 + $0x234] ss:$8 sps:$4 sm:$0xff]  }
  0xa3   :  { %3774 = vmatprep.subr.bf16.mxu0 %v5006_v44  ;;  %v5084_v44 = vld [vmem:[#allocation2 + $0xa34] ss:$8 sps:$4 sm:$0xff]  }
  0xa5   :  { %3447 = vmatpush1.bf16.msra.mxu1 %v5001_v45  ;;  %v5079_v45 = vld [vmem:[#allocation2 + $0x230] ss:$8 sps:$4 sm:$0xff]  }
  0xa6   :  { %3775 = vmatpush1.bf16.msra.mxu0 %v5004_v46  ;;  %3448 = vmatprep.subr.bf16.mxu1 %v5009_v47  ;;  %v5082_v46 = vld [vmem:[#allocation2 + $0xa30] ss:$8 sps:$4 sm:$0xff]   ;;  %v5087_v47 = vld [vmem:[#allocation2 + $0x244] ss:$8 sps:$4 sm:$0xff]  }
  0xa7   :  { %3776 = vmatprep.subr.bf16.mxu0 %v5012_v48  ;;  %v5090_v48 = vld [vmem:[#allocation2 + $0xa44] ss:$8 sps:$4 sm:$0xff]  }
  0xa9   :  { %3449 = vmatpush1.bf16.msra.mxu1 %v5007_v50  ;;  %v5085_v50 = vld [vmem:[#allocation2 + $0x240] ss:$8 sps:$4 sm:$0xff]  }
  0xaa   :  { %3777 = vmatpush1.bf16.msra.mxu0 %v5010_v51  ;;  %3450 = vmatprep.subr.bf16.mxu1 %v5015_v53  ;;  %v5088_v51 = vld [vmem:[#allocation2 + $0xa40] ss:$8 sps:$4 sm:$0xff]   ;;  %v5093_v53 = vld [vmem:[#allocation2 + $0x254] ss:$8 sps:$4 sm:$0xff]  }
  0xab   :  { %3778 = vmatprep.subr.bf16.mxu0 %v5018_v54  ;;  %v5096_v54 = vld [vmem:[#allocation2 + $0xa54] ss:$8 sps:$4 sm:$0xff]  }
  0xad   :  { %3451 = vmatpush1.bf16.msra.mxu1 %v5013_v55  ;;  %v5091_v55 = vld [vmem:[#allocation2 + $0x250] ss:$8 sps:$4 sm:$0xff]  }
  0xae   :  { %3779 = vmatpush1.bf16.msra.mxu0 %v5016_v57  ;;  %3452 = vmatprep.subr.bf16.mxu1 %v5021_v58  ;;  %v5094_v57 = vld [vmem:[#allocation2 + $0xa50] ss:$8 sps:$4 sm:$0xff]   ;;  %v5099_v58 = vld [vmem:[#allocation2 + $0x264] ss:$8 sps:$4 sm:$0xff]  }
  0xaf   :  { %3780 = vmatprep.subr.bf16.mxu0 %v5024_v59  ;;  %v5102_v59 = vld [vmem:[#allocation2 + $0xa64] ss:$8 sps:$4 sm:$0xff]  }
  0xb1   :  { %3453 = vmatpush1.bf16.msra.mxu1 %v5019_v60  ;;  %v5097_v60 = vld [vmem:[#allocation2 + $0x260] ss:$8 sps:$4 sm:$0xff]  }
  0xb2   :  { %3781 = vmatpush1.bf16.msra.mxu0 %v5022_v61  ;;  %3454 = vmatprep.subr.bf16.mxu1 %v5027_v62  ;;  %v5100_v61 = vld [vmem:[#allocation2 + $0xa60] ss:$8 sps:$4 sm:$0xff]   ;;  %v5105_v62 = vld [vmem:[#allocation2 + $0x274] ss:$8 sps:$4 sm:$0xff]  }
  0xb3   :  { %3782 = vmatprep.subr.bf16.mxu0 %v5030_v63  ;;  %v5108_v63 = vld [vmem:[#allocation2 + $0xa74] ss:$8 sps:$4 sm:$0xff]  }
  0xb5   :  { %3455 = vmatpush1.bf16.msra.mxu1 %v5025_v0  ;;  %v5103_v0 = vld [vmem:[#allocation2 + $0x270] ss:$8 sps:$4 sm:$0xff]  }
  0xb6   :  { %3783 = vmatpush1.bf16.msra.mxu0 %v5028_v1  ;;  %3456 = vmatprep.subr.bf16.mxu1 %v5033_v2  ;;  %v5106_v1 = vld [vmem:[#allocation2 + $0xa70] ss:$8 sps:$4 sm:$0xff]   ;;  %v5111_v2 = vld [vmem:[#allocation2 + $0x284] ss:$8 sps:$4 sm:$0xff]  }
  0xb7   :  { %3784 = vmatprep.subr.bf16.mxu0 %v5036_v3  ;;  %v5114_v3 = vld [vmem:[#allocation2 + $0xa84] ss:$8 sps:$4 sm:$0xff]  }
  0xb9   :  { %3457 = vmatpush1.bf16.msra.mxu1 %v5031_v4  ;;  %v5109_v4 = vld [vmem:[#allocation2 + $0x280] ss:$8 sps:$4 sm:$0xff]  }
  0xba   :  { %3785 = vmatpush1.bf16.msra.mxu0 %v5034_v5  ;;  %3458 = vmatprep.subr.bf16.mxu1 %v5039_v6  ;;  %v5112_v5 = vld [vmem:[#allocation2 + $0xa80] ss:$8 sps:$4 sm:$0xff]   ;;  %v5117_v6 = vld [vmem:[#allocation2 + $0x294] ss:$8 sps:$4 sm:$0xff]  }
  0xbb   :  { %3786 = vmatprep.subr.bf16.mxu0 %v5042_v7  ;;  %v5120_v7 = vld [vmem:[#allocation2 + $0xa94] ss:$8 sps:$4 sm:$0xff]  }
  0xbd   :  { %3459 = vmatpush1.bf16.msra.mxu1 %v5037_v8  ;;  %v5115_v8 = vld [vmem:[#allocation2 + $0x290] ss:$8 sps:$4 sm:$0xff]  }
  0xbe   :  { %3787 = vmatpush1.bf16.msra.mxu0 %v5040_v9  ;;  %3460 = vmatprep.subr.bf16.mxu1 %v5045_v10  ;;  %v5118_v9 = vld [vmem:[#allocation2 + $0xa90] ss:$8 sps:$4 sm:$0xff]   ;;  %v5123_v10 = vld [vmem:[#allocation2 + $0x2a4] ss:$8 sps:$4 sm:$0xff]  }
  0xbf   :  { %3788 = vmatprep.subr.bf16.mxu0 %v5048_v11  ;;  %v5126_v11 = vld [vmem:[#allocation2 + $0xaa4] ss:$8 sps:$4 sm:$0xff]  }
  0xc1   :  { %3461 = vmatpush1.bf16.msra.mxu1 %v5043_v12  ;;  %v5121_v12 = vld [vmem:[#allocation2 + $0x2a0] ss:$8 sps:$4 sm:$0xff]  }
  0xc2   :  { %3789 = vmatpush1.bf16.msra.mxu0 %v5046_v13  ;;  %3462 = vmatprep.subr.bf16.mxu1 %v5051_v14  ;;  %v5124_v13 = vld [vmem:[#allocation2 + $0xaa0] ss:$8 sps:$4 sm:$0xff]   ;;  %v5129_v14 = vld [vmem:[#allocation2 + $0x2b4] ss:$8 sps:$4 sm:$0xff]  }
  0xc3   :  { %3790 = vmatprep.subr.bf16.mxu0 %v5054_v15  ;;  %v5132_v15 = vld [vmem:[#allocation2 + $0xab4] ss:$8 sps:$4 sm:$0xff]  }
  0xc5   :  { %3463 = vmatpush1.bf16.msra.mxu1 %v5049_v20  ;;  %v5135_v20 = vld [vmem:[#allocation2 + $0x2c4] ss:$8 sps:$4 sm:$0xff]  }
  0xc6   :  { %3791 = vmatpush1.bf16.msra.mxu0 %v5052_v21  ;;  %3464 = vmatprep.subr.bf16.mxu1 %v5057_v22  ;;  %v5138_v21 = vld [vmem:[#allocation2 + $0xac4] ss:$8 sps:$4 sm:$0xff]   ;;  %v5133_v22 = vld [vmem:[#allocation2 + $0x2c0] ss:$8 sps:$4 sm:$0xff]  }
  0xc7   :  { %3792 = vmatprep.subr.bf16.mxu0 %v5060_v23  ;;  %v5136_v23 = vld [vmem:[#allocation2 + $0xac0] ss:$8 sps:$4 sm:$0xff]  }
  0xc9   :  { %3465 = vmatpush1.bf16.msra.mxu1 %v5055_v52  ;;  %v5141_v52 = vld [vmem:[#allocation2 + $0x2d4] ss:$8 sps:$4 sm:$0xff]  }
  0xca   :  { %3793 = vmatpush1.bf16.msra.mxu0 %v5058_v26  ;;  %3475 = vmatprep.subr.bf16.mxu1 %v5063_v56  ;;  %v5144_v26 = vld [vmem:[#allocation2 + $0xad4] ss:$8 sps:$4 sm:$0xff]   ;;  %v5139_v56 = vld [vmem:[#allocation2 + $0x2d0] ss:$8 sps:$4 sm:$0xff]  }
  0xcb   :  { %3803 = vmatprep.subr.bf16.mxu0 %v5066_v27  ;;  %v5142_v27 = vld [vmem:[#allocation2 + $0xad0] ss:$8 sps:$4 sm:$0xff]  }
  0xcc   :  { %3467 = vmatmul.mubr.bf16.vlgmr.msra.gmra.mrb[0].mxu1 %v650_v30  ;;  %v5145_v30 = vld [vmem:[#allocation2 + $0x2e0] ss:$8 sps:$4 sm:$0xff]  }
  0xcd   :  { %3795 = vmatmul.mubr.bf16.vlgmr.msra.gmra.mrb[0].mxu0 %v748_v31  ;;  %3476 = vmatpush1.bf16.msra.mxu1 %v5061_v32  ;;  %v5148_v31 = vld [vmem:[#allocation2 + $0xae0] ss:$8 sps:$4 sm:$0xff]   ;;  %v5153_v32 = vld [vmem:[#allocation2 + $0x2f4] ss:$8 sps:$4 sm:$0xff]  }
  0xce   :  { %3804 = vmatpush1.bf16.msra.mxu0 %v5064_v33  ;;  %3477 = vmatprep.subr.bf16.mxu1 %v5069_v34  ;;  %v5156_v33 = vld [vmem:[#allocation2 + $0xaf4] ss:$8 sps:$4 sm:$0xff]   ;;  %v5151_v34 = vld [vmem:[#allocation2 + $0x2f0] ss:$8 sps:$4 sm:$0xff]  }
  0xcf   :  { %3805 = vmatprep.subr.bf16.mxu0 %v5072_v35  ;;  %3507 = vmatprep.mubr.bf16.mxu1 %v5916_v36  ;;  %v5154_v35 = vld [vmem:[#allocation2 + $0xaf0] ss:$8 sps:$4 sm:$0xff]  }
  0xd0   :  { %3835 = vmatprep.mubr.bf16.mxu0 %v5919_v37 }
  0xd1   :  { %3478 = vmatpush1.bf16.msra.mxu1 %v5067_v16  ;;  %v5159_v16 = vld [vmem:[#allocation2 + $0x304] ss:$8 sps:$4 sm:$0xff]  }
  0xd2   :  { %3806 = vmatpush1.bf16.msra.mxu0 %v5070_v17  ;;  %3479 = vmatprep.subr.bf16.mxu1 %v5075_v38  ;;  %v5162_v17 = vld [vmem:[#allocation2 + $0xb04] ss:$8 sps:$4 sm:$0xff]   ;;  %v5925_v38 = vrot.slane %v5902_v24, %v5871_v49  ;;  %v5163_v24 = vld [vmem:[#allocation2 + $0x310] ss:$8 sps:$4 sm:$0xff]  }
  0xd3   :  { %3807 = vmatprep.subr.bf16.mxu0 %v5078_v39  ;;  %v5929_v39 = vrot.slane %v5905_v25, %v5871_v49  ;;  %v5166_v25 = vld [vmem:[#allocation2 + $0xb10] ss:$8 sps:$4 sm:$0xff]  }
  0xd5   :  { %3480 = vmatpush1.bf16.msra.mxu1 %v5073_v40  ;;  %v5157_v40 = vld [vmem:[#allocation2 + $0x300] ss:$8 sps:$4 sm:$0xff]  }
  0xd6   :  { %3808 = vmatpush1.bf16.msra.mxu0 %v5076_v41  ;;  %3481 = vmatprep.subr.bf16.mxu1 %v5081_v43  ;;  %v5160_v41 = vld [vmem:[#allocation2 + $0xb00] ss:$8 sps:$4 sm:$0xff]   ;;  %v5165_v43 = vld [vmem:[#allocation2 + $0x314] ss:$8 sps:$4 sm:$0xff]  }
  0xd7   :  { %3809 = vmatprep.subr.bf16.mxu0 %v5084_v44  ;;  %v5168_v44 = vld [vmem:[#allocation2 + $0xb14] ss:$8 sps:$4 sm:$0xff]  }
  0xd9   :  { %3482 = vmatpush1.bf16.msra.mxu1 %v5079_v45  ;;  %v653_v45 = vcombine.high %v5916_v36, %v5916_v36  ;;  %v5169_v36 = vld [vmem:[#allocation2 + $0x320] ss:$8 sps:$4 sm:$0xff]  }
  0xda   :  { %3810 = vmatpush1.bf16.msra.mxu0 %v5082_v46  ;;  %3483 = vmatprep.subr.bf16.mxu1 %v5087_v47  ;;  %v751_v46 = vcombine.high %v5919_v37, %v5919_v37  ;;  %v5171_v47 = vld [vmem:[#allocation2 + $0x324] ss:$8 sps:$4 sm:$0xff]   ;;  %v5177_v37 = vld [vmem:[#allocation2 + $0x334] ss:$8 sps:$4 sm:$0xff]  }
  0xdb   :  { %3811 = vmatprep.subr.bf16.mxu0 %v5090_v48  ;;  %v5174_v48 = vld [vmem:[#allocation2 + $0xb24] ss:$8 sps:$4 sm:$0xff]  }
  0xdd   :  { %3484 = vmatpush1.bf16.msra.mxu1 %v5085_v50  ;;  %v5172_v50 = vld [vmem:[#allocation2 + $0xb20] ss:$8 sps:$4 sm:$0xff]  }
  0xde   :  { %3812 = vmatpush1.bf16.msra.mxu0 %v5088_v51  ;;  %3485 = vmatprep.subr.bf16.mxu1 %v5093_v53  ;;  %v5180_v51 = vld [vmem:[#allocation2 + $0xb34] ss:$8 sps:$4 sm:$0xff]   ;;  %v5175_v53 = vld [vmem:[#allocation2 + $0x330] ss:$8 sps:$4 sm:$0xff]  }
  0xdf   :  { %3813 = vmatprep.subr.bf16.mxu0 %v5096_v54  ;;  %v5178_v54 = vld [vmem:[#allocation2 + $0xb30] ss:$8 sps:$4 sm:$0xff]  }
  0xe1   :  { %3486 = vmatpush1.bf16.msra.mxu1 %v5091_v55  ;;  %v5183_v55 = vld [vmem:[#allocation2 + $0x344] ss:$8 sps:$4 sm:$0xff]  }
  0xe2   :  { %3814 = vmatpush1.bf16.msra.mxu0 %v5094_v57  ;;  %3487 = vmatprep.subr.bf16.mxu1 %v5099_v58  ;;  %v5186_v57 = vld [vmem:[#allocation2 + $0xb44] ss:$8 sps:$4 sm:$0xff]   ;;  %v5181_v58 = vld [vmem:[#allocation2 + $0x340] ss:$8 sps:$4 sm:$0xff]  }
  0xe3   :  { %3815 = vmatprep.subr.bf16.mxu0 %v5102_v59  ;;  %v5184_v59 = vld [vmem:[#allocation2 + $0xb40] ss:$8 sps:$4 sm:$0xff]  }
  0xe5   :  { %3488 = vmatpush1.bf16.msra.mxu1 %v5097_v60  ;;  %v5189_v60 = vld [vmem:[#allocation2 + $0x354] ss:$8 sps:$4 sm:$0xff]  }
  0xe6   :  { %3816 = vmatpush1.bf16.msra.mxu0 %v5100_v61  ;;  %3489 = vmatprep.subr.bf16.mxu1 %v5105_v62  ;;  %v5192_v61 = vld [vmem:[#allocation2 + $0xb54] ss:$8 sps:$4 sm:$0xff]   ;;  %v5187_v62 = vld [vmem:[#allocation2 + $0x350] ss:$8 sps:$4 sm:$0xff]  }
  0xe7   :  { %3817 = vmatprep.subr.bf16.mxu0 %v5108_v63  ;;  %v5190_v63 = vld [vmem:[#allocation2 + $0xb50] ss:$8 sps:$4 sm:$0xff]  }
  0xe9   :  { %3490 = vmatpush1.bf16.msra.mxu1 %v5103_v0  ;;  %v5195_v0 = vld [vmem:[#allocation2 + $0x364] ss:$8 sps:$4 sm:$0xff]  }
  0xea   :  { %3818 = vmatpush1.bf16.msra.mxu0 %v5106_v1  ;;  %3491 = vmatprep.subr.bf16.mxu1 %v5111_v2  ;;  %v5198_v1 = vld [vmem:[#allocation2 + $0xb64] ss:$8 sps:$4 sm:$0xff]   ;;  %v5193_v2 = vld [vmem:[#allocation2 + $0x360] ss:$8 sps:$4 sm:$0xff]  }
  0xeb   :  { %3819 = vmatprep.subr.bf16.mxu0 %v5114_v3  ;;  %v5196_v3 = vld [vmem:[#allocation2 + $0xb60] ss:$8 sps:$4 sm:$0xff]  }
  0xed   :  { %3492 = vmatpush1.bf16.msra.mxu1 %v5109_v4  ;;  %v5201_v4 = vld [vmem:[#allocation2 + $0x374] ss:$8 sps:$4 sm:$0xff]  }
  0xee   :  { %3820 = vmatpush1.bf16.msra.mxu0 %v5112_v5  ;;  %3493 = vmatprep.subr.bf16.mxu1 %v5117_v6  ;;  %v5204_v5 = vld [vmem:[#allocation2 + $0xb74] ss:$8 sps:$4 sm:$0xff]   ;;  %v5199_v6 = vld [vmem:[#allocation2 + $0x370] ss:$8 sps:$4 sm:$0xff]  }
  0xef   :  { %3821 = vmatprep.subr.bf16.mxu0 %v5120_v7  ;;  %v5202_v7 = vld [vmem:[#allocation2 + $0xb70] ss:$8 sps:$4 sm:$0xff]  }
  0xf1   :  { %3494 = vmatpush1.bf16.msra.mxu1 %v5115_v8  ;;  %v5207_v8 = vld [vmem:[#allocation2 + $0x384] ss:$8 sps:$4 sm:$0xff]  }
  0xf2   :  { %3822 = vmatpush1.bf16.msra.mxu0 %v5118_v9  ;;  %3495 = vmatprep.subr.bf16.mxu1 %v5123_v10  ;;  %v5210_v9 = vld [vmem:[#allocation2 + $0xb84] ss:$8 sps:$4 sm:$0xff]   ;;  %v5205_v10 = vld [vmem:[#allocation2 + $0x380] ss:$8 sps:$4 sm:$0xff]  }
  0xf3   :  { %3823 = vmatprep.subr.bf16.mxu0 %v5126_v11  ;;  %v5208_v11 = vld [vmem:[#allocation2 + $0xb80] ss:$8 sps:$4 sm:$0xff]  }
  0xf5   :  { %3496 = vmatpush1.bf16.msra.mxu1 %v5121_v12  ;;  %v5213_v12 = vld [vmem:[#allocation2 + $0x394] ss:$8 sps:$4 sm:$0xff]  }
  0xf6   :  { %3824 = vmatpush1.bf16.msra.mxu0 %v5124_v13  ;;  %3497 = vmatprep.subr.bf16.mxu1 %v5129_v14  ;;  %v5216_v13 = vld [vmem:[#allocation2 + $0xb94] ss:$8 sps:$4 sm:$0xff]   ;;  %v5211_v14 = vld [vmem:[#allocation2 + $0x390] ss:$8 sps:$4 sm:$0xff]  }
  0xf7   :  { %3825 = vmatprep.subr.bf16.mxu0 %v5132_v15  ;;  %v5214_v15 = vld [vmem:[#allocation2 + $0xb90] ss:$8 sps:$4 sm:$0xff]  }
  0xf9   :  { %3498 = vmatpush1.bf16.msra.mxu1 %v5127_v18  ;;  %v5219_v18 = vld [vmem:[#allocation2 + $0x3a4] ss:$8 sps:$4 sm:$0xff]  }
  0xfa   :  { %3826 = vmatpush1.bf16.msra.mxu0 %v5130_v19  ;;  %3499 = vmatprep.subr.bf16.mxu1 %v5135_v20  ;;  %v5222_v19 = vld [vmem:[#allocation2 + $0xba4] ss:$8 sps:$4 sm:$0xff]   ;;  %v5217_v20 = vld [vmem:[#allocation2 + $0x3a0] ss:$8 sps:$4 sm:$0xff]  }
  0xfb   :  { %3827 = vmatprep.subr.bf16.mxu0 %v5138_v21  ;;  %v5220_v21 = vld [vmem:[#allocation2 + $0xba0] ss:$8 sps:$4 sm:$0xff]  }
  0xfd   :  { %3500 = vmatpush1.bf16.msra.mxu1 %v5133_v22  ;;  %v5225_v22 = vld [vmem:[#allocation2 + $0x3b4] ss:$8 sps:$4 sm:$0xff]  }
  0xfe   :  { %3828 = vmatpush1.bf16.msra.mxu0 %v5136_v23  ;;  %3501 = vmatprep.subr.bf16.mxu1 %v5141_v52  ;;  %v5228_v23 = vld [vmem:[#allocation2 + $0xbb4] ss:$8 sps:$4 sm:$0xff]   ;;  %v5223_v52 = vld [vmem:[#allocation2 + $0x3b0] ss:$8 sps:$4 sm:$0xff]  }
  0xff   :  { %3829 = vmatprep.subr.bf16.mxu0 %v5144_v26  ;;  %v5226_v26 = vld [vmem:[#allocation2 + $0xbb0] ss:$8 sps:$4 sm:$0xff]  }
 0x101   :  { %3502 = vmatpush1.bf16.msra.mxu1 %v5139_v56  ;;  %v5231_v56 = vld [vmem:[#allocation2 + $0x3c4] ss:$8 sps:$4 sm:$0xff]  }
 0x102   :  { %3830 = vmatpush1.bf16.msra.mxu0 %v5142_v27  ;;  %3503 = vmatprep.subr.bf16.mxu1 %v5147_v28  ;;  %v5234_v27 = vld [vmem:[#allocation2 + $0xbc4] ss:$8 sps:$4 sm:$0xff]   ;;  %v5229_v28 = vld [vmem:[#allocation2 + $0x3c0] ss:$8 sps:$4 sm:$0xff]  }
 0x103   :  { %3831 = vmatprep.subr.bf16.mxu0 %v5150_v29  ;;  %v5232_v29 = vld [vmem:[#allocation2 + $0xbc0] ss:$8 sps:$4 sm:$0xff]  }
 0x105   :  { %3504 = vmatpush1.bf16.msra.mxu1 %v5145_v30  ;;  %v5237_v30 = vld [vmem:[#allocation2 + $0x3d4] ss:$8 sps:$4 sm:$0xff]  }
 0x106   :  { %3832 = vmatpush1.bf16.msra.mxu0 %v5148_v31  ;;  %3505 = vmatprep.subr.bf16.mxu1 %v5153_v32  ;;  %v5240_v31 = vld [vmem:[#allocation2 + $0xbd4] ss:$8 sps:$4 sm:$0xff]   ;;  %v5235_v32 = vld [vmem:[#allocation2 + $0x3d0] ss:$8 sps:$4 sm:$0xff]  }
 0x107   :  { %3833 = vmatprep.subr.bf16.mxu0 %v5156_v33  ;;  %v5238_v33 = vld [vmem:[#allocation2 + $0xbd0] ss:$8 sps:$4 sm:$0xff]  }
 0x109   :  { %3506 = vmatpush1.bf16.msra.mxu1 %v5151_v34  ;;  %v5243_v34 = vld [vmem:[#allocation2 + $0x3e4] ss:$8 sps:$4 sm:$0xff]  }
 0x10a   :  { %3834 = vmatpush1.bf16.msra.mxu0 %v5154_v35  ;;  %3516 = vmatprep.subr.bf16.mxu1 %v5159_v16  ;;  %v5246_v35 = vld [vmem:[#allocation2 + $0xbe4] ss:$8 sps:$4 sm:$0xff]   ;;  %v5241_v16 = vld [vmem:[#allocation2 + $0x3e0] ss:$8 sps:$4 sm:$0xff]  }
 0x10b   :  { %3844 = vmatprep.subr.bf16.mxu0 %v5162_v17  ;;  %v5244_v17 = vld [vmem:[#allocation2 + $0xbe0] ss:$8 sps:$4 sm:$0xff]  }
 0x10c   :  { %3508 = vmatmul.mubr.bf16.vlgmr.msra.gmra.mrb[0].mxu1 %v5925_v38 }
 0x10d   :  { %3836 = vmatmul.mubr.bf16.vlgmr.msra.gmra.mrb[0].mxu0 %v5929_v39  ;;  %3517 = vmatpush1.bf16.msra.mxu1 %v5157_v40  ;;  %v5940_v40 = vld [vmem:[%s6043_s0 + $0x8] sm:$0xff] }
 0x10e   :  { %3845 = vmatpush1.bf16.msra.mxu0 %v5160_v41  ;;  %3518 = vmatprep.subr.bf16.mxu1 %v5165_v43  ;;  %v5945_v41 = vld [vmem:[%s6043_s0 + $0x18] sm:$0xff]  ;;  %s5782_s0 = smov [#allocation10]  }
 0x10f   :  { %3846 = vmatprep.subr.bf16.mxu0 %v5168_v44  ;;  %3548 = vmatprep.mubr.bf16.mxu1 %v653_v45  ;;  %v5249_v43 = vld [vmem:[#allocation2 + $0x3f4] ss:$8 sps:$4 sm:$0xff]   ;;  %v5949_v45 = vrot.slane %v5940_v40, %v5871_v49  ;;  %s4235_s25 = sshll.u32 %s5782_s0, 4  ;;  %s4236_s25 = int_to_ptr.vmem [resolvable:$true] %s4235_s25 }
 0x110   :  { %3876 = vmatprep.mubr.bf16.mxu0 %v751_v46  ;;  %v5252_v44 = vld [vmem:[#allocation2 + $0xbf4] ss:$8 sps:$4 sm:$0xff]   ;;  %v5953_v46 = vrot.slane %v5945_v41, %v5871_v49  ;;  %s5743_s26 = scalar_lea.vmem %s4236_s25, 32  ;;  %p5748_p5 = scmp.lt.s32.totalorder %s4236_s25, %s4236_s25 }
 0x111   :  { %3519 = vmatpush1.bf16.msra.mxu1 %v5163_v24  ;;  %v5247_v24 = vld [vmem:[#allocation2 + $0x3f0] ss:$8 sps:$4 sm:$0xff]   ;;  %p5744_p4 = scmp.ne.s32.totalorder %s4236_s25, %s5743_s26  ;;  %p5749_p6 = scmp.lt.s32.totalorder %s5743_s26, %s5743_s26 }
 0x112   :  { %3847 = vmatpush1.bf16.msra.mxu0 %v5166_v25  ;;  %3520 = vmatprep.subr.bf16.mxu1 %v5171_v47  ;;  %v5250_v25 = vld [vmem:[#allocation2 + $0xbf0] ss:$8 sps:$4 sm:$0xff]   ;;  %v5255_v47 = vld [vmem:[#allocation2 + $0x404] ss:$8 sps:$4 sm:$0xff]  }
 0x113   :  { %3848 = vmatprep.subr.bf16.mxu0 %v5174_v48  ;;  %v5258_v48 = vld [vmem:[#allocation2 + $0xc04] ss:$8 sps:$4 sm:$0xff]   ;;  %p5750_p7 = por %p5749_p6, %p5748_p5 }
 0x115   :  { %3521 = vmatpush1.bf16.msra.mxu1 %v5169_v36  ;;  %v669_v36 = vcombine.high %v5949_v45, %v5949_v45  ;;  %p5751_p8 = pnand %p5750_p7, %p5744_p4 }
 0x116   :  { %3849 = vmatpush1.bf16.msra.mxu0 %v5172_v50  ;;  %3522 = vmatprep.subr.bf16.mxu1 %v5177_v37  ;;  %v767_v50 = vcombine.high %v5953_v46, %v5953_v46  ;;  %v5253_v37 = vld [vmem:[#allocation2 + $0x400] ss:$8 sps:$4 sm:$0xff]  }
 0x117   :  { %3850 = vmatprep.subr.bf16.mxu0 %v5180_v51  ;;  %v5256_v51 = vld [vmem:[#allocation2 + $0xc00] ss:$8 sps:$4 sm:$0xff]  }
 0x119   :  { %3523 = vmatpush1.bf16.msra.mxu1 %v5175_v53  ;;  %v651_v53 = vcombine.high %v5925_v38, %v5925_v38  ;;  %v5267_v38 = vld [vmem:[#allocation2 + $0x424] ss:$8 sps:$4 sm:$0xff]  }
 0x11a   :  { %3851 = vmatpush1.bf16.msra.mxu0 %v5178_v54  ;;  %3524 = vmatprep.subr.bf16.mxu1 %v5183_v55  ;;  %v749_v54 = vcombine.high %v5929_v39, %v5929_v39  ;;  %v5261_v55 = vld [vmem:[#allocation2 + $0x414] ss:$8 sps:$4 sm:$0xff]   ;;  %v5270_v39 = vld [vmem:[#allocation2 + $0xc24] ss:$8 sps:$4 sm:$0xff]  }
 0x11b   :  { %3852 = vmatprep.subr.bf16.mxu0 %v5186_v57  ;;  %v5264_v57 = vld [vmem:[#allocation2 + $0xc14] ss:$8 sps:$4 sm:$0xff]  }
 0x11d   :  { %3525 = vmatpush1.bf16.msra.mxu1 %v5181_v58  ;;  %v5964_v58 = vrot.slane %v669_v36, %v5871_v49  ;;  %v5331_v36 = vld [vmem:[#allocation2 + $0x4d0] ss:$8 sps:$4 sm:$0xff]  }
 0x11e   :  { %3853 = vmatpush1.bf16.msra.mxu0 %v5184_v59  ;;  %3526 = vmatprep.subr.bf16.mxu1 %v5189_v60  ;;  %v5967_v59 = vrot.slane %v767_v50, %v5871_v49  ;;  %v5259_v60 = vld [vmem:[#allocation2 + $0x410] ss:$8 sps:$4 sm:$0xff]  }
 0x11f   :  { %3854 = vmatprep.subr.bf16.mxu0 %v5192_v61  ;;  %v5262_v61 = vld [vmem:[#allocation2 + $0xc10] ss:$8 sps:$4 sm:$0xff]  }
 0x120   :  { %v5334_v50 = vld [vmem:[#allocation2 + $0xcd0] ss:$8 sps:$4 sm:$0xff]  }
 0x121   :  { %3527 = vmatpush1.bf16.msra.mxu1 %v5187_v62  ;;  %v5265_v62 = vld [vmem:[#allocation2 + $0x420] ss:$8 sps:$4 sm:$0xff]  }
 0x122   :  { %3855 = vmatpush1.bf16.msra.mxu0 %v5190_v63  ;;  %3528 = vmatprep.subr.bf16.mxu1 %v5195_v0  ;;  %v5268_v63 = vld [vmem:[#allocation2 + $0xc20] ss:$8 sps:$4 sm:$0xff]   ;;  %v5273_v0 = vld [vmem:[#allocation2 + $0x434] ss:$8 sps:$4 sm:$0xff]  }
 0x123   :  { %3856 = vmatprep.subr.bf16.mxu0 %v5198_v1  ;;  %v5276_v1 = vld [vmem:[#allocation2 + $0xc34] ss:$8 sps:$4 sm:$0xff]  }
 0x125   :  { %3529 = vmatpush1.bf16.msra.mxu1 %v5193_v2  ;;  %v5271_v2 = vld [vmem:[#allocation2 + $0x430] ss:$8 sps:$4 sm:$0xff]  }
 0x126   :  { %3857 = vmatpush1.bf16.msra.mxu0 %v5196_v3  ;;  %3530 = vmatprep.subr.bf16.mxu1 %v5201_v4  ;;  %v5274_v3 = vld [vmem:[#allocation2 + $0xc30] ss:$8 sps:$4 sm:$0xff]   ;;  %v5279_v4 = vld [vmem:[#allocation2 + $0x444] ss:$8 sps:$4 sm:$0xff]  }
 0x127   :  { %3858 = vmatprep.subr.bf16.mxu0 %v5204_v5  ;;  %v5282_v5 = vld [vmem:[#allocation2 + $0xc44] ss:$8 sps:$4 sm:$0xff]  }
 0x129   :  { %3531 = vmatpush1.bf16.msra.mxu1 %v5199_v6  ;;  %v5277_v6 = vld [vmem:[#allocation2 + $0x440] ss:$8 sps:$4 sm:$0xff]  }
 0x12a   :  { %3859 = vmatpush1.bf16.msra.mxu0 %v5202_v7  ;;  %3532 = vmatprep.subr.bf16.mxu1 %v5207_v8  ;;  %v5280_v7 = vld [vmem:[#allocation2 + $0xc40] ss:$8 sps:$4 sm:$0xff]   ;;  %v5285_v8 = vld [vmem:[#allocation2 + $0x454] ss:$8 sps:$4 sm:$0xff]  }
 0x12b   :  { %3860 = vmatprep.subr.bf16.mxu0 %v5210_v9  ;;  %v5288_v9 = vld [vmem:[#allocation2 + $0xc54] ss:$8 sps:$4 sm:$0xff]  }
 0x12d   :  { %3533 = vmatpush1.bf16.msra.mxu1 %v5205_v10  ;;  %v5283_v10 = vld [vmem:[#allocation2 + $0x450] ss:$8 sps:$4 sm:$0xff]  }
 0x12e   :  { %3861 = vmatpush1.bf16.msra.mxu0 %v5208_v11  ;;  %3534 = vmatprep.subr.bf16.mxu1 %v5213_v12  ;;  %v5286_v11 = vld [vmem:[#allocation2 + $0xc50] ss:$8 sps:$4 sm:$0xff]   ;;  %v5291_v12 = vld [vmem:[#allocation2 + $0x464] ss:$8 sps:$4 sm:$0xff]  }
 0x12f   :  { %3862 = vmatprep.subr.bf16.mxu0 %v5216_v13  ;;  %v5294_v13 = vld [vmem:[#allocation2 + $0xc64] ss:$8 sps:$4 sm:$0xff]  }
 0x131   :  { %3535 = vmatpush1.bf16.msra.mxu1 %v5211_v14  ;;  %v5289_v14 = vld [vmem:[#allocation2 + $0x460] ss:$8 sps:$4 sm:$0xff]  }
 0x132   :  { %3863 = vmatpush1.bf16.msra.mxu0 %v5214_v15  ;;  %3536 = vmatprep.subr.bf16.mxu1 %v5219_v18  ;;  %v5292_v15 = vld [vmem:[#allocation2 + $0xc60] ss:$8 sps:$4 sm:$0xff]   ;;  %v5297_v18 = vld [vmem:[#allocation2 + $0x474] ss:$8 sps:$4 sm:$0xff]  }
 0x133   :  { %3864 = vmatprep.subr.bf16.mxu0 %v5222_v19  ;;  %v5300_v19 = vld [vmem:[#allocation2 + $0xc74] ss:$8 sps:$4 sm:$0xff]  }
 0x135   :  { %3537 = vmatpush1.bf16.msra.mxu1 %v5217_v20  ;;  %v5295_v20 = vld [vmem:[#allocation2 + $0x470] ss:$8 sps:$4 sm:$0xff]  }
 0x136   :  { %3865 = vmatpush1.bf16.msra.mxu0 %v5220_v21  ;;  %3538 = vmatprep.subr.bf16.mxu1 %v5225_v22  ;;  %v5298_v21 = vld [vmem:[#allocation2 + $0xc70] ss:$8 sps:$4 sm:$0xff]   ;;  %v5303_v22 = vld [vmem:[#allocation2 + $0x484] ss:$8 sps:$4 sm:$0xff]  }
 0x137   :  { %3866 = vmatprep.subr.bf16.mxu0 %v5228_v23  ;;  %v5306_v23 = vld [vmem:[#allocation2 + $0xc84] ss:$8 sps:$4 sm:$0xff]  }
 0x139   :  { %3539 = vmatpush1.bf16.msra.mxu1 %v5223_v52  ;;  %v5301_v52 = vld [vmem:[#allocation2 + $0x480] ss:$8 sps:$4 sm:$0xff]  }
 0x13a   :  { %3867 = vmatpush1.bf16.msra.mxu0 %v5226_v26  ;;  %3540 = vmatprep.subr.bf16.mxu1 %v5231_v56  ;;  %v5304_v26 = vld [vmem:[#allocation2 + $0xc80] ss:$8 sps:$4 sm:$0xff]   ;;  %v5309_v56 = vld [vmem:[#allocation2 + $0x494] ss:$8 sps:$4 sm:$0xff]  }
 0x13b   :  { %3868 = vmatprep.subr.bf16.mxu0 %v5234_v27  ;;  %v5312_v27 = vld [vmem:[#allocation2 + $0xc94] ss:$8 sps:$4 sm:$0xff]  }
 0x13d   :  { %3541 = vmatpush1.bf16.msra.mxu1 %v5229_v28  ;;  %v5307_v28 = vld [vmem:[#allocation2 + $0x490] ss:$8 sps:$4 sm:$0xff]  }
 0x13e   :  { %3869 = vmatpush1.bf16.msra.mxu0 %v5232_v29  ;;  %3542 = vmatprep.subr.bf16.mxu1 %v5237_v30  ;;  %v5310_v29 = vld [vmem:[#allocation2 + $0xc90] ss:$8 sps:$4 sm:$0xff]   ;;  %v5315_v30 = vld [vmem:[#allocation2 + $0x4a4] ss:$8 sps:$4 sm:$0xff]  }
 0x13f   :  { %3870 = vmatprep.subr.bf16.mxu0 %v5240_v31  ;;  %v5318_v31 = vld [vmem:[#allocation2 + $0xca4] ss:$8 sps:$4 sm:$0xff]  }
 0x141   :  { %3543 = vmatpush1.bf16.msra.mxu1 %v5235_v32  ;;  %v5313_v32 = vld [vmem:[#allocation2 + $0x4a0] ss:$8 sps:$4 sm:$0xff]  }
 0x142   :  { %3871 = vmatpush1.bf16.msra.mxu0 %v5238_v33  ;;  %3544 = vmatprep.subr.bf16.mxu1 %v5243_v34  ;;  %v5316_v33 = vld [vmem:[#allocation2 + $0xca0] ss:$8 sps:$4 sm:$0xff]   ;;  %v5321_v34 = vld [vmem:[#allocation2 + $0x4b4] ss:$8 sps:$4 sm:$0xff]  }
 0x143   :  { %3872 = vmatprep.subr.bf16.mxu0 %v5246_v35  ;;  %v5324_v35 = vld [vmem:[#allocation2 + $0xcb4] ss:$8 sps:$4 sm:$0xff]  }
 0x145   :  { %3545 = vmatpush1.bf16.msra.mxu1 %v5241_v16  ;;  %v5319_v16 = vld [vmem:[#allocation2 + $0x4b0] ss:$8 sps:$4 sm:$0xff]  }
 0x146   :  { %3873 = vmatpush1.bf16.msra.mxu0 %v5244_v17  ;;  %3546 = vmatprep.subr.bf16.mxu1 %v5249_v43  ;;  %v5322_v17 = vld [vmem:[#allocation2 + $0xcb0] ss:$8 sps:$4 sm:$0xff]   ;;  %v5327_v43 = vld [vmem:[#allocation2 + $0x4c4] ss:$8 sps:$4 sm:$0xff]  }
 0x147   :  { %3874 = vmatprep.subr.bf16.mxu0 %v5252_v44  ;;  %v5330_v44 = vld [vmem:[#allocation2 + $0xcc4] ss:$8 sps:$4 sm:$0xff]  }
 0x149   :  { %3547 = vmatpush1.bf16.msra.mxu1 %v5247_v24  ;;  %v5325_v24 = vld [vmem:[#allocation2 + $0x4c0] ss:$8 sps:$4 sm:$0xff]  }
 0x14a   :  { %3875 = vmatpush1.bf16.msra.mxu0 %v5250_v25  ;;  %3557 = vmatprep.subr.bf16.mxu1 %v5255_v47  ;;  %v5328_v25 = vld [vmem:[#allocation2 + $0xcc0] ss:$8 sps:$4 sm:$0xff]   ;;  %v5333_v47 = vld [vmem:[#allocation2 + $0x4d4] ss:$8 sps:$4 sm:$0xff]  }
 0x14b   :  { %3885 = vmatprep.subr.bf16.mxu0 %v5258_v48  ;;  %v5336_v48 = vld [vmem:[#allocation2 + $0xcd4] ss:$8 sps:$4 sm:$0xff]  }
 0x14c   :  { %3549 = vmatmul.mubr.bf16.vlgmr.msra.gmra.mrb[0].mxu1 %v651_v53  ;;  %v5337_v53 = vld [vmem:[#allocation2 + $0x4e0] ss:$8 sps:$4 sm:$0xff]  }
 0x14d   :  { %3877 = vmatmul.mubr.bf16.vlgmr.msra.gmra.mrb[0].mxu0 %v749_v54  ;;  %3558 = vmatpush1.bf16.msra.mxu1 %v5253_v37  ;;  %v5339_v37 = vld [vmem:[#allocation2 + $0x4e4] ss:$8 sps:$4 sm:$0xff]   ;;  %v5340_v54 = vld [vmem:[#allocation2 + $0xce0] ss:$8 sps:$4 sm:$0xff]  }
 0x14e   :  { %3886 = vmatpush1.bf16.msra.mxu0 %v5256_v51  ;;  %3559 = vmatprep.subr.bf16.mxu1 %v5261_v55  ;;  %v5342_v51 = vld [vmem:[#allocation2 + $0xce4] ss:$8 sps:$4 sm:$0xff]   ;;  %v5345_v55 = vld [vmem:[#allocation2 + $0x4f4] ss:$8 sps:$4 sm:$0xff]  }
 0x14f   :  { %3887 = vmatprep.subr.bf16.mxu0 %v5264_v57  ;;  %3589 = vmatprep.mubr.bf16.mxu1 %v5964_v58  ;;  %v5348_v57 = vld [vmem:[#allocation2 + $0xcf4] ss:$8 sps:$4 sm:$0xff]  }
 0x150   :  { %3917 = vmatprep.mubr.bf16.mxu0 %v5967_v59 }
 0x151   :  { %3560 = vmatpush1.bf16.msra.mxu1 %v5259_v60  ;;  %v5343_v60 = vld [vmem:[#allocation2 + $0x4f0] ss:$8 sps:$4 sm:$0xff]  }
 0x152   :  { %3888 = vmatpush1.bf16.msra.mxu0 %v5262_v61  ;;  %3561 = vmatprep.subr.bf16.mxu1 %v5267_v38  ;;  %v5346_v61 = vld [vmem:[#allocation2 + $0xcf0] ss:$8 sps:$4 sm:$0xff]   ;;  %v5351_v38 = vld [vmem:[#allocation2 + $0x504] ss:$8 sps:$4 sm:$0xff]  }
 0x153   :  { %3889 = vmatprep.subr.bf16.mxu0 %v5270_v39  ;;  %v5354_v39 = vld [vmem:[#allocation2 + $0xd04] ss:$8 sps:$4 sm:$0xff]  }
 0x155   :  { %3562 = vmatpush1.bf16.msra.mxu1 %v5265_v62  ;;  %v5973_v62 = vrot.slane %v5949_v45, %v5871_v49  ;;  %v5355_v45 = vld [vmem:[#allocation2 + $0x510] ss:$8 sps:$4 sm:$0xff]  }
 0x156   :  { %3890 = vmatpush1.bf16.msra.mxu0 %v5268_v63  ;;  %3563 = vmatprep.subr.bf16.mxu1 %v5273_v0  ;;  %v5977_v63 = vrot.slane %v5953_v46, %v5871_v49  ;;  %v5349_v0 = vld [vmem:[#allocation2 + $0x500] ss:$8 sps:$4 sm:$0xff]   ;;  %v5358_v46 = vld [vmem:[#allocation2 + $0xd10] ss:$8 sps:$4 sm:$0xff]  }
 0x157   :  { %3891 = vmatprep.subr.bf16.mxu0 %v5276_v1  ;;  %v5352_v1 = vld [vmem:[#allocation2 + $0xd00] ss:$8 sps:$4 sm:$0xff]  }
 0x159   :  { %3564 = vmatpush1.bf16.msra.mxu1 %v5271_v2  ;;  %v5357_v2 = vld [vmem:[#allocation2 + $0x514] ss:$8 sps:$4 sm:$0xff]  }
 0x15a   :  { %3892 = vmatpush1.bf16.msra.mxu0 %v5274_v3  ;;  %3565 = vmatprep.subr.bf16.mxu1 %v5279_v4  ;;  %v5360_v3 = vld [vmem:[#allocation2 + $0xd14] ss:$8 sps:$4 sm:$0xff]   ;;  %v701_v4 = vcombine.high %v5964_v58, %v5964_v58  ;;  %v5361_v58 = vld [vmem:[#allocation2 + $0x520] ss:$8 sps:$4 sm:$0xff]  }
 0x15b   :  { %3893 = vmatprep.subr.bf16.mxu0 %v5282_v5  ;;  %v799_v5 = vcombine.high %v5967_v59, %v5967_v59  ;;  %v5369_v59 = vld [vmem:[#allocation2 + $0x534] ss:$8 sps:$4 sm:$0xff]  }
 0x15d   :  { %3566 = vmatpush1.bf16.msra.mxu1 %v5277_v6  ;;  %v5363_v6 = vld [vmem:[#allocation2 + $0x524] ss:$8 sps:$4 sm:$0xff]  }
 0x15e   :  { %3894 = vmatpush1.bf16.msra.mxu0 %v5280_v7  ;;  %3567 = vmatprep.subr.bf16.mxu1 %v5285_v8  ;;  %v5366_v7 = vld [vmem:[#allocation2 + $0xd24] ss:$8 sps:$4 sm:$0xff]   ;;  %v5364_v8 = vld [vmem:[#allocation2 + $0xd20] ss:$8 sps:$4 sm:$0xff]  }
 0x15f   :  { %3895 = vmatprep.subr.bf16.mxu0 %v5288_v9  ;;  %v5372_v9 = vld [vmem:[#allocation2 + $0xd34] ss:$8 sps:$4 sm:$0xff]  }
 0x161   :  { %3568 = vmatpush1.bf16.msra.mxu1 %v5283_v10  ;;  %v5367_v10 = vld [vmem:[#allocation2 + $0x530] ss:$8 sps:$4 sm:$0xff]  }
 0x162   :  { %3896 = vmatpush1.bf16.msra.mxu0 %v5286_v11  ;;  %3569 = vmatprep.subr.bf16.mxu1 %v5291_v12  ;;  %v5370_v11 = vld [vmem:[#allocation2 + $0xd30] ss:$8 sps:$4 sm:$0xff]   ;;  %v5375_v12 = vld [vmem:[#allocation2 + $0x544] ss:$8 sps:$4 sm:$0xff]  }
 0x163   :  { %3897 = vmatprep.subr.bf16.mxu0 %v5294_v13  ;;  %v5378_v13 = vld [vmem:[#allocation2 + $0xd44] ss:$8 sps:$4 sm:$0xff]  }
 0x165   :  { %3570 = vmatpush1.bf16.msra.mxu1 %v5289_v14  ;;  %v5373_v14 = vld [vmem:[#allocation2 + $0x540] ss:$8 sps:$4 sm:$0xff]  }
 0x166   :  { %3898 = vmatpush1.bf16.msra.mxu0 %v5292_v15  ;;  %3571 = vmatprep.subr.bf16.mxu1 %v5297_v18  ;;  %v5376_v15 = vld [vmem:[#allocation2 + $0xd40] ss:$8 sps:$4 sm:$0xff]   ;;  %v5381_v18 = vld [vmem:[#allocation2 + $0x554] ss:$8 sps:$4 sm:$0xff]  }
 0x167   :  { %3899 = vmatprep.subr.bf16.mxu0 %v5300_v19  ;;  %v5384_v19 = vld [vmem:[#allocation2 + $0xd54] ss:$8 sps:$4 sm:$0xff]  }
 0x169   :  { %3572 = vmatpush1.bf16.msra.mxu1 %v5295_v20  ;;  %v5379_v20 = vld [vmem:[#allocation2 + $0x550] ss:$8 sps:$4 sm:$0xff]  }
 0x16a   :  { %3900 = vmatpush1.bf16.msra.mxu0 %v5298_v21  ;;  %3573 = vmatprep.subr.bf16.mxu1 %v5303_v22  ;;  %v5382_v21 = vld [vmem:[#allocation2 + $0xd50] ss:$8 sps:$4 sm:$0xff]   ;;  %v5387_v22 = vld [vmem:[#allocation2 + $0x564] ss:$8 sps:$4 sm:$0xff]  }
 0x16b   :  { %3901 = vmatprep.subr.bf16.mxu0 %v5306_v23  ;;  %v5390_v23 = vld [vmem:[#allocation2 + $0xd64] ss:$8 sps:$4 sm:$0xff]  }
 0x16d   :  { %3574 = vmatpush1.bf16.msra.mxu1 %v5301_v52  ;;  %v5385_v52 = vld [vmem:[#allocation2 + $0x560] ss:$8 sps:$4 sm:$0xff]  }
 0x16e   :  { %3902 = vmatpush1.bf16.msra.mxu0 %v5304_v26  ;;  %3575 = vmatprep.subr.bf16.mxu1 %v5309_v56  ;;  %v5388_v26 = vld [vmem:[#allocation2 + $0xd60] ss:$8 sps:$4 sm:$0xff]   ;;  %v5393_v56 = vld [vmem:[#allocation2 + $0x574] ss:$8 sps:$4 sm:$0xff]  }
 0x16f   :  { %3903 = vmatprep.subr.bf16.mxu0 %v5312_v27  ;;  %v5396_v27 = vld [vmem:[#allocation2 + $0xd74] ss:$8 sps:$4 sm:$0xff]  }
 0x171   :  { %3576 = vmatpush1.bf16.msra.mxu1 %v5307_v28  ;;  %v5391_v28 = vld [vmem:[#allocation2 + $0x570] ss:$8 sps:$4 sm:$0xff]  }
 0x172   :  { %3904 = vmatpush1.bf16.msra.mxu0 %v5310_v29  ;;  %3577 = vmatprep.subr.bf16.mxu1 %v5315_v30  ;;  %v5394_v29 = vld [vmem:[#allocation2 + $0xd70] ss:$8 sps:$4 sm:$0xff]   ;;  %v5399_v30 = vld [vmem:[#allocation2 + $0x584] ss:$8 sps:$4 sm:$0xff]  }
 0x173   :  { %3905 = vmatprep.subr.bf16.mxu0 %v5318_v31  ;;  %v5402_v31 = vld [vmem:[#allocation2 + $0xd84] ss:$8 sps:$4 sm:$0xff]  }
 0x175   :  { %3578 = vmatpush1.bf16.msra.mxu1 %v5313_v32  ;;  %v5397_v32 = vld [vmem:[#allocation2 + $0x580] ss:$8 sps:$4 sm:$0xff]  }
 0x176   :  { %3906 = vmatpush1.bf16.msra.mxu0 %v5316_v33  ;;  %3579 = vmatprep.subr.bf16.mxu1 %v5321_v34  ;;  %v5400_v33 = vld [vmem:[#allocation2 + $0xd80] ss:$8 sps:$4 sm:$0xff]   ;;  %v5405_v34 = vld [vmem:[#allocation2 + $0x594] ss:$8 sps:$4 sm:$0xff]  }
 0x177   :  { %3907 = vmatprep.subr.bf16.mxu0 %v5324_v35  ;;  %v5408_v35 = vld [vmem:[#allocation2 + $0xd94] ss:$8 sps:$4 sm:$0xff]  }
 0x179   :  { %3580 = vmatpush1.bf16.msra.mxu1 %v5319_v16  ;;  %v5403_v16 = vld [vmem:[#allocation2 + $0x590] ss:$8 sps:$4 sm:$0xff]  }
 0x17a   :  { %3908 = vmatpush1.bf16.msra.mxu0 %v5322_v17  ;;  %3581 = vmatprep.subr.bf16.mxu1 %v5327_v43  ;;  %v5406_v17 = vld [vmem:[#allocation2 + $0xd90] ss:$8 sps:$4 sm:$0xff]   ;;  %v5411_v43 = vld [vmem:[#allocation2 + $0x5a4] ss:$8 sps:$4 sm:$0xff]  }
 0x17b   :  { %3909 = vmatprep.subr.bf16.mxu0 %v5330_v44  ;;  %v5414_v44 = vld [vmem:[#allocation2 + $0xda4] ss:$8 sps:$4 sm:$0xff]  }
 0x17d   :  { %3582 = vmatpush1.bf16.msra.mxu1 %v5325_v24  ;;  %v5409_v24 = vld [vmem:[#allocation2 + $0x5a0] ss:$8 sps:$4 sm:$0xff]  }
 0x17e   :  { %3910 = vmatpush1.bf16.msra.mxu0 %v5328_v25  ;;  %3583 = vmatprep.subr.bf16.mxu1 %v5333_v47  ;;  %v5412_v25 = vld [vmem:[#allocation2 + $0xda0] ss:$8 sps:$4 sm:$0xff]   ;;  %v5417_v47 = vld [vmem:[#allocation2 + $0x5b4] ss:$8 sps:$4 sm:$0xff]  }
 0x17f   :  { %3911 = vmatprep.subr.bf16.mxu0 %v5336_v48  ;;  %v5420_v48 = vld [vmem:[#allocation2 + $0xdb4] ss:$8 sps:$4 sm:$0xff]  }
 0x181   :  { %3584 = vmatpush1.bf16.msra.mxu1 %v5331_v36  ;;  %v5415_v36 = vld [vmem:[#allocation2 + $0x5b0] ss:$8 sps:$4 sm:$0xff]  }
 0x182   :  { %3912 = vmatpush1.bf16.msra.mxu0 %v5334_v50  ;;  %3585 = vmatprep.subr.bf16.mxu1 %v5339_v37  ;;  %v5418_v50 = vld [vmem:[#allocation2 + $0xdb0] ss:$8 sps:$4 sm:$0xff]   ;;  %v5423_v37 = vld [vmem:[#allocation2 + $0x5c4] ss:$8 sps:$4 sm:$0xff]  }
 0x183   :  { %3913 = vmatprep.subr.bf16.mxu0 %v5342_v51  ;;  %v5426_v51 = vld [vmem:[#allocation2 + $0xdc4] ss:$8 sps:$4 sm:$0xff]  }
 0x185   :  { %3586 = vmatpush1.bf16.msra.mxu1 %v5337_v53  ;;  %v5421_v53 = vld [vmem:[#allocation2 + $0x5c0] ss:$8 sps:$4 sm:$0xff]  }
 0x186   :  { %3914 = vmatpush1.bf16.msra.mxu0 %v5340_v54  ;;  %3587 = vmatprep.subr.bf16.mxu1 %v5345_v55  ;;  %v5424_v54 = vld [vmem:[#allocation2 + $0xdc0] ss:$8 sps:$4 sm:$0xff]   ;;  %v5429_v55 = vld [vmem:[#allocation2 + $0x5d4] ss:$8 sps:$4 sm:$0xff]  }
 0x187   :  { %3915 = vmatprep.subr.bf16.mxu0 %v5348_v57  ;;  %v5432_v57 = vld [vmem:[#allocation2 + $0xdd4] ss:$8 sps:$4 sm:$0xff]  }
 0x189   :  { %3588 = vmatpush1.bf16.msra.mxu1 %v5343_v60  ;;  %v5427_v60 = vld [vmem:[#allocation2 + $0x5d0] ss:$8 sps:$4 sm:$0xff]  }
 0x18a   :  { %3916 = vmatpush1.bf16.msra.mxu0 %v5346_v61  ;;  %3598 = vmatprep.subr.bf16.mxu1 %v5351_v38  ;;  %v5430_v61 = vld [vmem:[#allocation2 + $0xdd0] ss:$8 sps:$4 sm:$0xff]   ;;  %v5435_v38 = vld [vmem:[#allocation2 + $0x5e4] ss:$8 sps:$4 sm:$0xff]  }
 0x18b   :  { %3926 = vmatprep.subr.bf16.mxu0 %v5354_v39  ;;  %v5438_v39 = vld [vmem:[#allocation2 + $0xde4] ss:$8 sps:$4 sm:$0xff]  }
 0x18c   :  { %3590 = vmatmul.mubr.bf16.vlgmr.msra.gmra.mrb[0].mxu1 %v5973_v62 }
 0x18d   :  { %3918 = vmatmul.mubr.bf16.vlgmr.msra.gmra.mrb[0].mxu0 %v5977_v63  ;;  %3599 = vmatpush1.bf16.msra.mxu1 %v5349_v0  ;;  %v654_v0 = vcombine.high %v5940_v40, %v5940_v40  ;;  %v5439_v40 = vld [vmem:[#allocation2 + $0x5f0] ss:$8 sps:$4 sm:$0xff]  }
 0x18e   :  { %3927 = vmatpush1.bf16.msra.mxu0 %v5352_v1  ;;  %3600 = vmatprep.subr.bf16.mxu1 %v5357_v2  ;;  %v752_v1 = vcombine.high %v5945_v41, %v5945_v41  ;;  %v5433_v2 = vld [vmem:[#allocation2 + $0x5e0] ss:$8 sps:$4 sm:$0xff]   ;;  %v5447_v41 = vld [vmem:[#allocation2 + $0x604] ss:$8 sps:$4 sm:$0xff]  }
 0x18f   :  { %3928 = vmatprep.subr.bf16.mxu0 %v5360_v3  ;;  %3630 = vmatprep.mubr.bf16.mxu1 %v701_v4  ;;  %v5436_v3 = vld [vmem:[#allocation2 + $0xde0] ss:$8 sps:$4 sm:$0xff]   ;;  %v5441_v4 = vld [vmem:[#allocation2 + $0x5f4] ss:$8 sps:$4 sm:$0xff]  }
 0x190   :  { %3958 = vmatprep.mubr.bf16.mxu0 %v799_v5  ;;  %v5444_v5 = vld [vmem:[#allocation2 + $0xdf4] ss:$8 sps:$4 sm:$0xff]  }
 0x191   :  { %3601 = vmatpush1.bf16.msra.mxu1 %v5355_v45  ;;  %v5990_v45 = vrot.slane %v654_v0, %v5871_v49  ;;  %v5511_v0 = vld [vmem:[#allocation2 + $0x6b0] ss:$8 sps:$4 sm:$0xff]  }
 0x192   :  { %3929 = vmatpush1.bf16.msra.mxu0 %v5358_v46  ;;  %3602 = vmatprep.subr.bf16.mxu1 %v5363_v6  ;;  %v5993_v46 = vrot.slane %v752_v1, %v5871_v49  ;;  %v5442_v6 = vld [vmem:[#allocation2 + $0xdf0] ss:$8 sps:$4 sm:$0xff]  }
 0x193   :  { %3930 = vmatprep.subr.bf16.mxu0 %v5366_v7  ;;  %v5450_v7 = vld [vmem:[#allocation2 + $0xe04] ss:$8 sps:$4 sm:$0xff]   ;;  %v5514_v1 = vld [vmem:[#allocation2 + $0xeb0] ss:$8 sps:$4 sm:$0xff]  }
 0x195   :  { %3603 = vmatpush1.bf16.msra.mxu1 %v5361_v58  ;;  %v670_v58 = vcombine.high %v5990_v45, %v5990_v45 }
 0x196   :  { %3931 = vmatpush1.bf16.msra.mxu0 %v5364_v8  ;;  %3604 = vmatprep.subr.bf16.mxu1 %v5369_v59  ;;  %v768_v8 = vcombine.high %v5993_v46, %v5993_v46  ;;  %v699_v59 = vcombine.high %v5973_v62, %v5973_v62  ;;  %v5451_v62 = vld [vmem:[#allocation2 + $0x610] ss:$8 sps:$4 sm:$0xff]  }
 0x197   :  { %3932 = vmatprep.subr.bf16.mxu0 %v5372_v9  ;;  %v797_v9 = vcombine.high %v5977_v63, %v5977_v63  ;;  %v5454_v63 = vld [vmem:[#allocation2 + $0xe10] ss:$8 sps:$4 sm:$0xff]  }
 0x199   :  { %3605 = vmatpush1.bf16.msra.mxu1 %v5367_v10  ;;  %v5445_v10 = vld [vmem:[#allocation2 + $0x600] ss:$8 sps:$4 sm:$0xff]  }
 0x19a   :  { %3933 = vmatpush1.bf16.msra.mxu0 %v5370_v11  ;;  %3606 = vmatprep.subr.bf16.mxu1 %v5375_v12  ;;  %v5448_v11 = vld [vmem:[#allocation2 + $0xe00] ss:$8 sps:$4 sm:$0xff]   ;;  %v5453_v12 = vld [vmem:[#allocation2 + $0x614] ss:$8 sps:$4 sm:$0xff]  }
 0x19b   :  { %3934 = vmatprep.subr.bf16.mxu0 %v5378_v13  ;;  %v5456_v13 = vld [vmem:[#allocation2 + $0xe14] ss:$8 sps:$4 sm:$0xff]  }
 0x19d   :  { %3607 = vmatpush1.bf16.msra.mxu1 %v5373_v14  ;;  %v6004_v14 = vrot.slane %v670_v58, %v5871_v49  ;;  %v5531_v58 = vld [vmem:[#allocation2 + $0x6e4] ss:$8 sps:$4 sm:$0xff]  }
 0x19e   :  { %3935 = vmatpush1.bf16.msra.mxu0 %v5376_v15  ;;  %3608 = vmatprep.subr.bf16.mxu1 %v5381_v18  ;;  %v6007_v15 = vrot.slane %v768_v8, %v5871_v49  ;;  %v5459_v18 = vld [vmem:[#allocation2 + $0x624] ss:$8 sps:$4 sm:$0xff]  }
 0x19f   :  { %3936 = vmatprep.subr.bf16.mxu0 %v5384_v19  ;;  %v5462_v19 = vld [vmem:[#allocation2 + $0xe24] ss:$8 sps:$4 sm:$0xff]  }
 0x1a0   :  { %v5534_v8 = vld [vmem:[#allocation2 + $0xee4] ss:$8 sps:$4 sm:$0xff]  }
 0x1a1   :  { %3609 = vmatpush1.bf16.msra.mxu1 %v5379_v20  ;;  %v5457_v20 = vld [vmem:[#allocation2 + $0x620] ss:$8 sps:$4 sm:$0xff]  }
 0x1a2   :  { %3937 = vmatpush1.bf16.msra.mxu0 %v5382_v21  ;;  %3610 = vmatprep.subr.bf16.mxu1 %v5387_v22  ;;  %v5460_v21 = vld [vmem:[#allocation2 + $0xe20] ss:$8 sps:$4 sm:$0xff]   ;;  %v5465_v22 = vld [vmem:[#allocation2 + $0x634] ss:$8 sps:$4 sm:$0xff]  }
 0x1a3   :  { %3938 = vmatprep.subr.bf16.mxu0 %v5390_v23  ;;  %v5468_v23 = vld [vmem:[#allocation2 + $0xe34] ss:$8 sps:$4 sm:$0xff]  }
 0x1a5   :  { %3611 = vmatpush1.bf16.msra.mxu1 %v5385_v52  ;;  %v5463_v52 = vld [vmem:[#allocation2 + $0x630] ss:$8 sps:$4 sm:$0xff]  }
 0x1a6   :  { %3939 = vmatpush1.bf16.msra.mxu0 %v5388_v26  ;;  %3612 = vmatprep.subr.bf16.mxu1 %v5393_v56  ;;  %v5466_v26 = vld [vmem:[#allocation2 + $0xe30] ss:$8 sps:$4 sm:$0xff]   ;;  %v5471_v56 = vld [vmem:[#allocation2 + $0x644] ss:$8 sps:$4 sm:$0xff]  }
 0x1a7   :  { %3940 = vmatprep.subr.bf16.mxu0 %v5396_v27  ;;  %v5474_v27 = vld [vmem:[#allocation2 + $0xe44] ss:$8 sps:$4 sm:$0xff]  }
 0x1a9   :  { %3613 = vmatpush1.bf16.msra.mxu1 %v5391_v28  ;;  %v5469_v28 = vld [vmem:[#allocation2 + $0x640] ss:$8 sps:$4 sm:$0xff]  }
 0x1aa   :  { %3941 = vmatpush1.bf16.msra.mxu0 %v5394_v29  ;;  %3614 = vmatprep.subr.bf16.mxu1 %v5399_v30  ;;  %v5472_v29 = vld [vmem:[#allocation2 + $0xe40] ss:$8 sps:$4 sm:$0xff]   ;;  %v5477_v30 = vld [vmem:[#allocation2 + $0x654] ss:$8 sps:$4 sm:$0xff]  }
 0x1ab   :  { %3942 = vmatprep.subr.bf16.mxu0 %v5402_v31  ;;  %v5480_v31 = vld [vmem:[#allocation2 + $0xe54] ss:$8 sps:$4 sm:$0xff]  }
 0x1ad   :  { %3615 = vmatpush1.bf16.msra.mxu1 %v5397_v32  ;;  %v5475_v32 = vld [vmem:[#allocation2 + $0x650] ss:$8 sps:$4 sm:$0xff]  }
 0x1ae   :  { %3943 = vmatpush1.bf16.msra.mxu0 %v5400_v33  ;;  %3616 = vmatprep.subr.bf16.mxu1 %v5405_v34  ;;  %v5478_v33 = vld [vmem:[#allocation2 + $0xe50] ss:$8 sps:$4 sm:$0xff]   ;;  %v5483_v34 = vld [vmem:[#allocation2 + $0x664] ss:$8 sps:$4 sm:$0xff]  }
 0x1af   :  { %3944 = vmatprep.subr.bf16.mxu0 %v5408_v35  ;;  %v5486_v35 = vld [vmem:[#allocation2 + $0xe64] ss:$8 sps:$4 sm:$0xff]  }
 0x1b1   :  { %3617 = vmatpush1.bf16.msra.mxu1 %v5403_v16  ;;  %v5481_v16 = vld [vmem:[#allocation2 + $0x660] ss:$8 sps:$4 sm:$0xff]  }
 0x1b2   :  { %3945 = vmatpush1.bf16.msra.mxu0 %v5406_v17  ;;  %3618 = vmatprep.subr.bf16.mxu1 %v5411_v43  ;;  %v5484_v17 = vld [vmem:[#allocation2 + $0xe60] ss:$8 sps:$4 sm:$0xff]   ;;  %v5489_v43 = vld [vmem:[#allocation2 + $0x674] ss:$8 sps:$4 sm:$0xff]  }
 0x1b3   :  { %3946 = vmatprep.subr.bf16.mxu0 %v5414_v44  ;;  %v5492_v44 = vld [vmem:[#allocation2 + $0xe74] ss:$8 sps:$4 sm:$0xff]  }
 0x1b5   :  { %3619 = vmatpush1.bf16.msra.mxu1 %v5409_v24  ;;  %v5487_v24 = vld [vmem:[#allocation2 + $0x670] ss:$8 sps:$4 sm:$0xff]  }
 0x1b6   :  { %3947 = vmatpush1.bf16.msra.mxu0 %v5412_v25  ;;  %3620 = vmatprep.subr.bf16.mxu1 %v5417_v47  ;;  %v5490_v25 = vld [vmem:[#allocation2 + $0xe70] ss:$8 sps:$4 sm:$0xff]   ;;  %v5495_v47 = vld [vmem:[#allocation2 + $0x684] ss:$8 sps:$4 sm:$0xff]  }
 0x1b7   :  { %3948 = vmatprep.subr.bf16.mxu0 %v5420_v48  ;;  %v5498_v48 = vld [vmem:[#allocation2 + $0xe84] ss:$8 sps:$4 sm:$0xff]  }
 0x1b9   :  { %3621 = vmatpush1.bf16.msra.mxu1 %v5415_v36  ;;  %v5493_v36 = vld [vmem:[#allocation2 + $0x680] ss:$8 sps:$4 sm:$0xff]  }
 0x1ba   :  { %3949 = vmatpush1.bf16.msra.mxu0 %v5418_v50  ;;  %3622 = vmatprep.subr.bf16.mxu1 %v5423_v37  ;;  %v5496_v50 = vld [vmem:[#allocation2 + $0xe80] ss:$8 sps:$4 sm:$0xff]   ;;  %v5501_v37 = vld [vmem:[#allocation2 + $0x694] ss:$8 sps:$4 sm:$0xff]  }
 0x1bb   :  { %3950 = vmatprep.subr.bf16.mxu0 %v5426_v51  ;;  %v5504_v51 = vld [vmem:[#allocation2 + $0xe94] ss:$8 sps:$4 sm:$0xff]  }
 0x1bd   :  { %3623 = vmatpush1.bf16.msra.mxu1 %v5421_v53  ;;  %v5499_v53 = vld [vmem:[#allocation2 + $0x690] ss:$8 sps:$4 sm:$0xff]  }
 0x1be   :  { %3951 = vmatpush1.bf16.msra.mxu0 %v5424_v54  ;;  %3624 = vmatprep.subr.bf16.mxu1 %v5429_v55  ;;  %v5502_v54 = vld [vmem:[#allocation2 + $0xe90] ss:$8 sps:$4 sm:$0xff]   ;;  %v5507_v55 = vld [vmem:[#allocation2 + $0x6a4] ss:$8 sps:$4 sm:$0xff]  }
 0x1bf   :  { %3952 = vmatprep.subr.bf16.mxu0 %v5432_v57  ;;  %v5510_v57 = vld [vmem:[#allocation2 + $0xea4] ss:$8 sps:$4 sm:$0xff]  }
 0x1c1   :  { %3625 = vmatpush1.bf16.msra.mxu1 %v5427_v60  ;;  %v5505_v60 = vld [vmem:[#allocation2 + $0x6a0] ss:$8 sps:$4 sm:$0xff]  }
 0x1c2   :  { %3953 = vmatpush1.bf16.msra.mxu0 %v5430_v61  ;;  %3626 = vmatprep.subr.bf16.mxu1 %v5435_v38  ;;  %v5508_v61 = vld [vmem:[#allocation2 + $0xea0] ss:$8 sps:$4 sm:$0xff]   ;;  %v5513_v38 = vld [vmem:[#allocation2 + $0x6b4] ss:$8 sps:$4 sm:$0xff]  }
 0x1c3   :  { %3954 = vmatprep.subr.bf16.mxu0 %v5438_v39  ;;  %v5516_v39 = vld [vmem:[#allocation2 + $0xeb4] ss:$8 sps:$4 sm:$0xff]  }
 0x1c5   :  { %3627 = vmatpush1.bf16.msra.mxu1 %v5433_v2  ;;  %v5519_v2 = vld [vmem:[#allocation2 + $0x6c4] ss:$8 sps:$4 sm:$0xff]  }
 0x1c6   :  { %3955 = vmatpush1.bf16.msra.mxu0 %v5436_v3  ;;  %3628 = vmatprep.subr.bf16.mxu1 %v5441_v4  ;;  %v5522_v3 = vld [vmem:[#allocation2 + $0xec4] ss:$8 sps:$4 sm:$0xff]   ;;  %v5517_v4 = vld [vmem:[#allocation2 + $0x6c0] ss:$8 sps:$4 sm:$0xff]  }
 0x1c7   :  { %3956 = vmatprep.subr.bf16.mxu0 %v5444_v5  ;;  %v5520_v5 = vld [vmem:[#allocation2 + $0xec0] ss:$8 sps:$4 sm:$0xff]  }
 0x1c9   :  { %3629 = vmatpush1.bf16.msra.mxu1 %v5439_v40  ;;  %v5525_v40 = vld [vmem:[#allocation2 + $0x6d4] ss:$8 sps:$4 sm:$0xff]  }
 0x1ca   :  { %3957 = vmatpush1.bf16.msra.mxu0 %v5442_v6  ;;  %3639 = vmatprep.subr.bf16.mxu1 %v5447_v41  ;;  %v5528_v6 = vld [vmem:[#allocation2 + $0xed4] ss:$8 sps:$4 sm:$0xff]   ;;  %v5523_v41 = vld [vmem:[#allocation2 + $0x6d0] ss:$8 sps:$4 sm:$0xff]  }
 0x1cb   :  { %3967 = vmatprep.subr.bf16.mxu0 %v5450_v7  ;;  %v5526_v7 = vld [vmem:[#allocation2 + $0xed0] ss:$8 sps:$4 sm:$0xff]  }
 0x1cc   :  { %3631 = vmatmul.mubr.bf16.vlgmr.msra.gmra.mrb[0].mxu1 %v699_v59  ;;  %v5529_v59 = vld [vmem:[#allocation2 + $0x6e0] ss:$8 sps:$4 sm:$0xff]  }
 0x1cd   :  { %3959 = vmatmul.mubr.bf16.vlgmr.msra.gmra.mrb[0].mxu0 %v797_v9  ;;  %3640 = vmatpush1.bf16.msra.mxu1 %v5445_v10  ;;  %v5532_v9 = vld [vmem:[#allocation2 + $0xee0] ss:$8 sps:$4 sm:$0xff]   ;;  %v5537_v10 = vld [vmem:[#allocation2 + $0x6f4] ss:$8 sps:$4 sm:$0xff]  }
 0x1ce   :  { %3968 = vmatpush1.bf16.msra.mxu0 %v5448_v11  ;;  %3641 = vmatprep.subr.bf16.mxu1 %v5453_v12  ;;  %v5540_v11 = vld [vmem:[#allocation2 + $0xef4] ss:$8 sps:$4 sm:$0xff]   ;;  %v5535_v12 = vld [vmem:[#allocation2 + $0x6f0] ss:$8 sps:$4 sm:$0xff]  }
 0x1cf   :  { %3969 = vmatprep.subr.bf16.mxu0 %v5456_v13  ;;  %3671 = vmatprep.mubr.bf16.mxu1 %v6004_v14  ;;  %v5538_v13 = vld [vmem:[#allocation2 + $0xef0] ss:$8 sps:$4 sm:$0xff]  }
 0x1d0   :  { %3999 = vmatprep.mubr.bf16.mxu0 %v6007_v15 }
 0x1d1   :  { %3642 = vmatpush1.bf16.msra.mxu1 %v5451_v62  ;;  %v5544_v62 = vld [vmem:[#allocation2 + $0x704] ss:$8 sps:$4 sm:$0xff]  }
 0x1d2   :  { %3970 = vmatpush1.bf16.msra.mxu0 %v5454_v63  ;;  %3643 = vmatprep.subr.bf16.mxu1 %v5459_v18  ;;  %v5548_v63 = vld [vmem:[#allocation2 + $0xf04] ss:$8 sps:$4 sm:$0xff]   ;;  %v6013_v18 = vrot.slane %v5990_v45, %v5871_v49  ;;  %v5552_v45 = vld [vmem:[#allocation2 + $0xf10] ss:$8 sps:$4 sm:$0xff]  }
 0x1d3   :  { %3971 = vmatprep.subr.bf16.mxu0 %v5462_v19  ;;  %v6017_v19 = vrot.slane %v5993_v46, %v5871_v49  ;;  %v5549_v49 = vld [vmem:[#allocation2 + $0x710] ss:$8 sps:$4 sm:$0xff]   ;;  %v5557_v46 = vld [vmem:[#allocation2 + $0x724] ss:$8 sps:$4 sm:$0xff]  }
 0x1d5   :  { %3644 = vmatpush1.bf16.msra.mxu1 %v5457_v20  ;;  %v5542_v20 = vld [vmem:[#allocation2 + $0x700] ss:$8 sps:$4 sm:$0xff]  }
 0x1d6   :  { %3972 = vmatpush1.bf16.msra.mxu0 %v5460_v21  ;;  %3645 = vmatprep.subr.bf16.mxu1 %v5465_v22  ;;  %v5546_v21 = vld [vmem:[#allocation2 + $0xf00] ss:$8 sps:$4 sm:$0xff]   ;;  %v5551_v22 = vld [vmem:[#allocation2 + $0x714] ss:$8 sps:$4 sm:$0xff]  }
 0x1d7   :  { %3973 = vmatprep.subr.bf16.mxu0 %v5468_v23  ;;  %v5554_v23 = vld [vmem:[#allocation2 + $0xf14] ss:$8 sps:$4 sm:$0xff]  }
 0x1d9   :  { %3646 = vmatpush1.bf16.msra.mxu1 %v5463_v52  ;;  %v702_v52 = vcombine.high %v6004_v14, %v6004_v14  ;;  %v5555_v14 = vld [vmem:[#allocation2 + $0x720] ss:$8 sps:$4 sm:$0xff]  }
 0x1da   :  { %3974 = vmatpush1.bf16.msra.mxu0 %v5466_v26  ;;  %3647 = vmatprep.subr.bf16.mxu1 %v5471_v56  ;;  %v800_v26 = vcombine.high %v6007_v15, %v6007_v15  ;;  %v5560_v56 = vld [vmem:[#allocation2 + $0xf24] ss:$8 sps:$4 sm:$0xff]   ;;  %v5563_v15 = vld [vmem:[#allocation2 + $0x734] ss:$8 sps:$4 sm:$0xff]  }
 0x1db   :  { %3975 = vmatprep.subr.bf16.mxu0 %v5474_v27  ;;  %v5558_v27 = vld [vmem:[#allocation2 + $0xf20] ss:$8 sps:$4 sm:$0xff]  }
 0x1dd   :  { %3648 = vmatpush1.bf16.msra.mxu1 %v5469_v28  ;;  %v5566_v28 = vld [vmem:[#allocation2 + $0xf34] ss:$8 sps:$4 sm:$0xff]  }
 0x1de   :  { %3976 = vmatpush1.bf16.msra.mxu0 %v5472_v29  ;;  %3649 = vmatprep.subr.bf16.mxu1 %v5477_v30  ;;  %v5561_v29 = vld [vmem:[#allocation2 + $0x730] ss:$8 sps:$4 sm:$0xff]  }
 0x1df   :  { %3977 = vmatprep.subr.bf16.mxu0 %v5480_v31  ;;  %v5564_v30 = vld [vmem:[#allocation2 + $0xf30] ss:$8 sps:$4 sm:$0xff]   ;;  %v5569_v31 = vld [vmem:[#allocation2 + $0x744] ss:$8 sps:$4 sm:$0xff]  }
 0x1e1   :  { %3650 = vmatpush1.bf16.msra.mxu1 %v5475_v32  ;;  %v5572_v32 = vld [vmem:[#allocation2 + $0xf44] ss:$8 sps:$4 sm:$0xff]  }
 0x1e2   :  { %3978 = vmatpush1.bf16.msra.mxu0 %v5478_v33  ;;  %3651 = vmatprep.subr.bf16.mxu1 %v5483_v34  ;;  %v5567_v33 = vld [vmem:[#allocation2 + $0x740] ss:$8 sps:$4 sm:$0xff]  }
 0x1e3   :  { %3979 = vmatprep.subr.bf16.mxu0 %v5486_v35  ;;  %v5570_v34 = vld [vmem:[#allocation2 + $0xf40] ss:$8 sps:$4 sm:$0xff]   ;;  %v5575_v35 = vld [vmem:[#allocation2 + $0x754] ss:$8 sps:$4 sm:$0xff]  }
 0x1e5   :  { %3652 = vmatpush1.bf16.msra.mxu1 %v5481_v16  ;;  %v5578_v16 = vld [vmem:[#allocation2 + $0xf54] ss:$8 sps:$4 sm:$0xff]  }
 0x1e6   :  { %3980 = vmatpush1.bf16.msra.mxu0 %v5484_v17  ;;  %3653 = vmatprep.subr.bf16.mxu1 %v5489_v43  ;;  %v5573_v17 = vld [vmem:[#allocation2 + $0x750] ss:$8 sps:$4 sm:$0xff]  }
 0x1e7   :  { %3981 = vmatprep.subr.bf16.mxu0 %v5492_v44  ;;  %v5576_v43 = vld [vmem:[#allocation2 + $0xf50] ss:$8 sps:$4 sm:$0xff]   ;;  %v5581_v44 = vld [vmem:[#allocation2 + $0x764] ss:$8 sps:$4 sm:$0xff]  }
 0x1e9   :  { %3654 = vmatpush1.bf16.msra.mxu1 %v5487_v24  ;;  %v5584_v24 = vld [vmem:[#allocation2 + $0xf64] ss:$8 sps:$4 sm:$0xff]  }
 0x1ea   :  { %3982 = vmatpush1.bf16.msra.mxu0 %v5490_v25  ;;  %3655 = vmatprep.subr.bf16.mxu1 %v5495_v47  ;;  %v5579_v25 = vld [vmem:[#allocation2 + $0x760] ss:$8 sps:$4 sm:$0xff]  }
 0x1eb   :  { %3983 = vmatprep.subr.bf16.mxu0 %v5498_v48  ;;  %v5582_v47 = vld [vmem:[#allocation2 + $0xf60] ss:$8 sps:$4 sm:$0xff]   ;;  %v5587_v48 = vld [vmem:[#allocation2 + $0x774] ss:$8 sps:$4 sm:$0xff]  }
 0x1ed   :  { %3656 = vmatpush1.bf16.msra.mxu1 %v5493_v36  ;;  %v5590_v36 = vld [vmem:[#allocation2 + $0xf74] ss:$8 sps:$4 sm:$0xff]  }
 0x1ee   :  { %3984 = vmatpush1.bf16.msra.mxu0 %v5496_v50  ;;  %3657 = vmatprep.subr.bf16.mxu1 %v5501_v37  ;;  %v5585_v50 = vld [vmem:[#allocation2 + $0x770] ss:$8 sps:$4 sm:$0xff]  }
 0x1ef   :  { %3985 = vmatprep.subr.bf16.mxu0 %v5504_v51  ;;  %v5588_v37 = vld [vmem:[#allocation2 + $0xf70] ss:$8 sps:$4 sm:$0xff]   ;;  %v5593_v51 = vld [vmem:[#allocation2 + $0x784] ss:$8 sps:$4 sm:$0xff]  }
 0x1f1   :  { %3658 = vmatpush1.bf16.msra.mxu1 %v5499_v53  ;;  %v5596_v53 = vld [vmem:[#allocation2 + $0xf84] ss:$8 sps:$4 sm:$0xff]  }
 0x1f2   :  { %3986 = vmatpush1.bf16.msra.mxu0 %v5502_v54  ;;  %3659 = vmatprep.subr.bf16.mxu1 %v5507_v55  ;;  %v5591_v54 = vld [vmem:[#allocation2 + $0x780] ss:$8 sps:$4 sm:$0xff]  }
 0x1f3   :  { %3987 = vmatprep.subr.bf16.mxu0 %v5510_v57  ;;  %v5594_v55 = vld [vmem:[#allocation2 + $0xf80] ss:$8 sps:$4 sm:$0xff]   ;;  %v5599_v57 = vld [vmem:[#allocation2 + $0x794] ss:$8 sps:$4 sm:$0xff]  }
 0x1f5   :  { %3660 = vmatpush1.bf16.msra.mxu1 %v5505_v60  ;;  %v5602_v60 = vld [vmem:[#allocation2 + $0xf94] ss:$8 sps:$4 sm:$0xff]  }
 0x1f6   :  { %3988 = vmatpush1.bf16.msra.mxu0 %v5508_v61  ;;  %3661 = vmatprep.subr.bf16.mxu1 %v5513_v38  ;;  %v5597_v61 = vld [vmem:[#allocation2 + $0x790] ss:$8 sps:$4 sm:$0xff]  }
 0x1f7   :  { %3989 = vmatprep.subr.bf16.mxu0 %v5516_v39  ;;  %v5600_v38 = vld [vmem:[#allocation2 + $0xf90] ss:$8 sps:$4 sm:$0xff]   ;;  %v5605_v39 = vld [vmem:[#allocation2 + $0x7a4] ss:$8 sps:$4 sm:$0xff]  }
 0x1f9   :  { %3662 = vmatpush1.bf16.msra.mxu1 %v5511_v0  ;;  %v5608_v0 = vld [vmem:[#allocation2 + $0xfa4] ss:$8 sps:$4 sm:$0xff]  }
 0x1fa   :  { %3990 = vmatpush1.bf16.msra.mxu0 %v5514_v1  ;;  %3663 = vmatprep.subr.bf16.mxu1 %v5519_v2  ;;  %v5603_v1 = vld [vmem:[#allocation2 + $0x7a0] ss:$8 sps:$4 sm:$0xff]  }
 0x1fb   :  { %3991 = vmatprep.subr.bf16.mxu0 %v5522_v3  ;;  %v5606_v2 = vld [vmem:[#allocation2 + $0xfa0] ss:$8 sps:$4 sm:$0xff]   ;;  %v5611_v3 = vld [vmem:[#allocation2 + $0x7b4] ss:$8 sps:$4 sm:$0xff]  }
 0x1fd   :  { %3664 = vmatpush1.bf16.msra.mxu1 %v5517_v4  ;;  %v5614_v4 = vld [vmem:[#allocation2 + $0xfb4] ss:$8 sps:$4 sm:$0xff]  }
 0x1fe   :  { %3992 = vmatpush1.bf16.msra.mxu0 %v5520_v5  ;;  %3665 = vmatprep.subr.bf16.mxu1 %v5525_v40  ;;  %v5609_v5 = vld [vmem:[#allocation2 + $0x7b0] ss:$8 sps:$4 sm:$0xff]  }
 0x1ff   :  { %3993 = vmatprep.subr.bf16.mxu0 %v5528_v6  ;;  %v5612_v40 = vld [vmem:[#allocation2 + $0xfb0] ss:$8 sps:$4 sm:$0xff]   ;;  %v5617_v6 = vld [vmem:[#allocation2 + $0x7c4] ss:$8 sps:$4 sm:$0xff]  }
 0x201   :  { %3666 = vmatpush1.bf16.msra.mxu1 %v5523_v41  ;;  %v5620_v41 = vld [vmem:[#allocation2 + $0xfc4] ss:$8 sps:$4 sm:$0xff]  }
 0x202   :  { %3994 = vmatpush1.bf16.msra.mxu0 %v5526_v7  ;;  %3667 = vmatprep.subr.bf16.mxu1 %v5531_v58  ;;  %v5615_v7 = vld [vmem:[#allocation2 + $0x7c0] ss:$8 sps:$4 sm:$0xff]  }
 0x203   :  { %3995 = vmatprep.subr.bf16.mxu0 %v5534_v8  ;;  %v5618_v58 = vld [vmem:[#allocation2 + $0xfc0] ss:$8 sps:$4 sm:$0xff]   ;;  %v5623_v8 = vld [vmem:[#allocation2 + $0x7d4] ss:$8 sps:$4 sm:$0xff]  }
 0x205   :  { %3668 = vmatpush1.bf16.msra.mxu1 %v5529_v59  ;;  %v5626_v59 = vld [vmem:[#allocation2 + $0xfd4] ss:$8 sps:$4 sm:$0xff]  }
 0x206   :  { %3996 = vmatpush1.bf16.msra.mxu0 %v5532_v9  ;;  %3669 = vmatprep.subr.bf16.mxu1 %v5537_v10  ;;  %v5621_v9 = vld [vmem:[#allocation2 + $0x7d0] ss:$8 sps:$4 sm:$0xff]  }
 0x207   :  { %3997 = vmatprep.subr.bf16.mxu0 %v5540_v11  ;;  %v5624_v10 = vld [vmem:[#allocation2 + $0xfd0] ss:$8 sps:$4 sm:$0xff]   ;;  %v5629_v11 = vld [vmem:[#allocation2 + $0x7e4] ss:$8 sps:$4 sm:$0xff]  }
 0x209   :  { %3670 = vmatpush1.bf16.msra.mxu1 %v5535_v12  ;;  %v5632_v12 = vld [vmem:[#allocation2 + $0xfe4] ss:$8 sps:$4 sm:$0xff]  }
 0x20a   :  { %3998 = vmatpush1.bf16.msra.mxu0 %v5538_v13  ;;  %3680 = vmatprep.subr.bf16.mxu1 %v5544_v62  ;;  %v5627_v13 = vld [vmem:[#allocation2 + $0x7e0] ss:$8 sps:$4 sm:$0xff]  }
 0x20b   :  { %4008 = vmatprep.subr.bf16.mxu0 %v5548_v63  ;;  %v5630_v62 = vld [vmem:[#allocation2 + $0xfe0] ss:$8 sps:$4 sm:$0xff]   ;;  %v5635_v63 = vld [vmem:[#allocation2 + $0x7f4] ss:$8 sps:$4 sm:$0xff]  }
 0x20c   :  { %3672 = vmatmul.mubr.bf16.vlgmr.msra.gmra.mrb[0].mxu1 %v6013_v18 }
 0x20d   :  { %4000 = vmatmul.mubr.bf16.vlgmr.msra.gmra.mrb[0].mxu0 %v6017_v19  ;;  %3681 = vmatpush1.bf16.msra.mxu1 %v5542_v20  ;;  %v5638_v20 = vld [vmem:[#allocation2 + $0xff4] ss:$8 sps:$4 sm:$0xff]  }
 0x20e   :  { %4009 = vmatpush1.bf16.msra.mxu0 %v5546_v21  ;;  %3682 = vmatprep.subr.bf16.mxu1 %v5551_v22  ;;  %v5633_v21 = vld [vmem:[#allocation2 + $0x7f0] ss:$8 sps:$4 sm:$0xff]  }
 0x20f   :  { %4010 = vmatprep.subr.bf16.mxu0 %v5554_v23  ;;  %3712 = vmatprep.mubr.bf16.mxu1 %v702_v52  ;;  %v5636_v22 = vld [vmem:[#allocation2 + $0xff0] ss:$8 sps:$4 sm:$0xff]   ;;  %v5639_v23 = vld [vmem:[#allocation7 + $0x40] sm:$0xff]   ;;  %v700_v52 = vcombine.high %v6013_v18, %v6013_v18 }
 0x210   :  { %4040 = vmatprep.mubr.bf16.mxu0 %v800_v26  ;;  %v798_v26 = vcombine.high %v6017_v19, %v6017_v19  ;;  %v5646_v18 = vld [vmem:[#allocation7 + $0x18] sm:$0xff]   ;;  %v5648_v19 = vld [vmem:[#allocation7 + $0x20] sm:$0xff]  }
 0x211   :  { %3683 = vmatpush1.bf16.msra.mxu1 %v5549_v49  ;;  %v5640_v49 = vld [vmem:[#allocation7] sm:$0xff]  }
 0x212   :  { %4011 = vmatpush1.bf16.msra.mxu0 %v5552_v45  ;;  %3684 = vmatprep.subr.bf16.mxu1 %v5557_v46  ;;  %v5641_v45 = vld [vmem:[#allocation7 + $0x48] sm:$0xff]  }
 0x213   :  { %4012 = vmatprep.subr.bf16.mxu0 %v5560_v56  ;;  %v5642_v46 = vld [vmem:[#allocation7 + $0x8] sm:$0xff]   ;;  %v5643_v56 = vld [vmem:[#allocation7 + $0x50] sm:$0xff]  }
 0x215   :  { %3685 = vmatpush1.bf16.msra.mxu1 %v5555_v14  ;;  %v5644_v14 = vld [vmem:[#allocation7 + $0x10] sm:$0xff]  }
 0x216   :  { %4013 = vmatpush1.bf16.msra.mxu0 %v5558_v27  ;;  %3686 = vmatprep.subr.bf16.mxu1 %v5563_v15  ;;  %v5645_v27 = vld [vmem:[#allocation7 + $0x58] sm:$0xff]   ;;  %v5647_v15 = vld [vmem:[#allocation7 + $0x60] sm:$0xff]  }
 0x217   :  { %4014 = vmatprep.subr.bf16.mxu0 %v5566_v28  ;;  %v5649_v28 = vld [vmem:[#allocation7 + $0x68] sm:$0xff]  }
 0x219   :  { %3687 = vmatpush1.bf16.msra.mxu1 %v5561_v29  ;;  %v5650_v29 = vld [vmem:[#allocation7 + $0x28] sm:$0xff]  }
 0x21a   :  { %4015 = vmatpush1.bf16.msra.mxu0 %v5564_v30  ;;  %3688 = vmatprep.subr.bf16.mxu1 %v5569_v31  ;;  %v5651_v30 = vld [vmem:[#allocation7 + $0x70] sm:$0xff]  }
 0x21b   :  { %4016 = vmatprep.subr.bf16.mxu0 %v5572_v32  ;;  %v5652_v31 = vld [vmem:[#allocation7 + $0x30] sm:$0xff]   ;;  %v5653_v32 = vld [vmem:[#allocation7 + $0x78] sm:$0xff]  }
 0x21d   :  { %3689 = vmatpush1.bf16.msra.mxu1 %v5567_v33  ;;  %v5654_v33 = vld [vmem:[#allocation7 + $0x38] sm:$0xff]  }
 0x21e   :  { %4017 = vmatpush1.bf16.msra.mxu0 %v5570_v34  ;;  %3690 = vmatprep.subr.bf16.mxu1 %v5575_v35  ;;  %v593_v34 = vsub.s32 0, %v5868_v42  ;;  %v589_v35 = vld [vmem:[#allocation5] sm:$0x3] }
 0x21f   :  { %4018 = vmatprep.subr.bf16.mxu0 %v5578_v16  ;;  %v597_v16 = vsub.s32 1, %v5868_v42 }
 0x221   :  { %3691 = vmatpush1.bf16.msra.mxu1 %v5573_v17  ;;  %v594_v17 = vrot.slane %v589_v35, %v593_v34 }
 0x222   :  { %4019 = vmatpush1.bf16.msra.mxu0 %v5576_v43  ;;  %3692 = vmatprep.subr.bf16.mxu1 %v5581_v44  ;;  %v598_v43 = vrot.slane %v589_v35, %v597_v16 }
 0x223   :  { %4020 = vmatprep.subr.bf16.mxu0 %v5584_v24 }
 0x225   :  { %3693 = vmatpush1.bf16.msra.mxu1 %v5579_v25 }
 0x226   :  { %4021 = vmatpush1.bf16.msra.mxu0 %v5582_v47  ;;  %3694 = vmatprep.subr.bf16.mxu1 %v5587_v48 }
 0x227   :  { %4022 = vmatprep.subr.bf16.mxu0 %v5590_v36 }
 0x229   :  { %3695 = vmatpush1.bf16.msra.mxu1 %v5585_v50 }
 0x22a   :  { %4023 = vmatpush1.bf16.msra.mxu0 %v5588_v37  ;;  %3696 = vmatprep.subr.bf16.mxu1 %v5593_v51 }
 0x22b   :  { %4024 = vmatprep.subr.bf16.mxu0 %v5596_v53 }
 0x22d   :  { %3697 = vmatpush1.bf16.msra.mxu1 %v5591_v54 }
 0x22e   :  { %4025 = vmatpush1.bf16.msra.mxu0 %v5594_v55  ;;  %3698 = vmatprep.subr.bf16.mxu1 %v5599_v57 }
 0x22f   :  { %4026 = vmatprep.subr.bf16.mxu0 %v5602_v60 }
 0x231   :  { %3699 = vmatpush1.bf16.msra.mxu1 %v5597_v61 }
 0x232   :  { %4027 = vmatpush1.bf16.msra.mxu0 %v5600_v38  ;;  %3700 = vmatprep.subr.bf16.mxu1 %v5605_v39  ;;  %v4758_v39 = vld [vmem:[#allocation8] ss:$0 sm:$0xff] }
 0x233   :  { %4028 = vmatprep.subr.bf16.mxu0 %v5608_v0 }
 0x235   :  { %3701 = vmatpush1.bf16.msra.mxu1 %v5603_v1 }
 0x236   :  { %4029 = vmatpush1.bf16.msra.mxu0 %v5606_v2  ;;  %3702 = vmatprep.subr.bf16.mxu1 %v5611_v3 }
 0x237   :  { %4030 = vmatprep.subr.bf16.mxu0 %v5614_v4 }
 0x239   :  { %3703 = vmatpush1.bf16.msra.mxu1 %v5609_v5 }
 0x23a   :  { %4031 = vmatpush1.bf16.msra.mxu0 %v5612_v40  ;;  %3704 = vmatprep.subr.bf16.mxu1 %v5617_v6 }
 0x23b   :  { %4032 = vmatprep.subr.bf16.mxu0 %v5620_v41 }
 0x23d   :  { %3705 = vmatpush1.bf16.msra.mxu1 %v5615_v7 }
 0x23e   :  { %4033 = vmatpush1.bf16.msra.mxu0 %v5618_v58  ;;  %3706 = vmatprep.subr.bf16.mxu1 %v5623_v8 }
 0x23f   :  { %4034 = vmatprep.subr.bf16.mxu0 %v5626_v59 }
 0x241   :  { %3707 = vmatpush1.bf16.msra.mxu1 %v5621_v9 }
 0x242   :  { %4035 = vmatpush1.bf16.msra.mxu0 %v5624_v10  ;;  %3708 = vmatprep.subr.bf16.mxu1 %v5629_v11 }
 0x243   :  { %4036 = vmatprep.subr.bf16.mxu0 %v5632_v12 }
 0x245   :  { %3709 = vmatpush1.bf16.msra.mxu1 %v5627_v13 }
 0x246   :  { %4037 = vmatpush1.bf16.msra.mxu0 %v5630_v62  ;;  %3710 = vmatprep.subr.bf16.mxu1 %v5635_v63 }
 0x247   :  { %4038 = vmatprep.subr.bf16.mxu0 %v5638_v20 }
 0x249   :  { %3711 = vmatpush1.bf16.msra.mxu1 %v5633_v21 }
 0x24a   :  { %4039 = vmatpush1.bf16.msra.mxu0 %v5636_v22  ;;  %4775 = vmatprep.subr.bf16.mxu1 %v5639_v23 }
 0x24c   :  { %3713 = vmatmul.mubr.bf16.vlgmr.msra.gmra.mrb[0].mxu1 %v700_v52 }
 0x24d   :  { %4041 = vmatmul.mubr.bf16.vlgmr.msra.gmra.mrb[0].mxu0 %v798_v26  ;;  %4776 = vmatpush3.bf16.msra.mxu1 %v5640_v49 }
 0x24e   :  { %4777 = vmatprep.subr.bf16.mxu1 %v5641_v45 }
 0x251   :  { %4778 = vmatpush3.bf16.msra.mxu1 %v5642_v46 }
 0x252   :  { %4779 = vmatprep.subr.bf16.mxu1 %v5643_v56 }
 0x255   :  { %4780 = vmatpush3.bf16.msra.mxu1 %v5644_v14 }
 0x256   :  { %4781 = vmatprep.subr.bf16.mxu1 %v5645_v27 }
 0x259   :  { %4782 = vmatpush3.bf16.msra.mxu1 %v5646_v18 }
 0x25a   :  { %4783 = vmatprep.subr.bf16.mxu1 %v5647_v15 }
 0x25d   :  { %4784 = vmatpush3.bf16.msra.mxu1 %v5648_v19 }
 0x25e   :  { %4785 = vmatprep.subr.bf16.mxu1 %v5649_v28 }
 0x261   :  { %4786 = vmatpush3.bf16.msra.mxu1 %v5650_v29 }
 0x262   :  { %4787 = vmatprep.subr.bf16.mxu1 %v5651_v30 }
 0x265   :  { %4788 = vmatpush3.bf16.msra.mxu1 %v5652_v31 }
 0x266   :  { %4789 = vmatprep.subr.bf16.mxu1 %v5653_v32 }
 0x269   :  { %4790 = vmatpush3.bf16.msra.mxu1 %v5654_v33 }
 0x31f   :  { %v3714_v44 = vpop.f32.mrb[0].mxu1 }
 0x320   :  { %v4042_v24 = vpop.f32.mrb[0].mxu0  ;;  %v4797_v25 = vadd.f32 %v3714_v44, %v594_v17  ;;  %v3716_v47 = vpop.f32.mrb[1].mxu1 }
 0x321   :  { %v4044_v48 = vpop.f32.mrb[1].mxu0  ;;  %v4799_v36 = vadd.f32 %v3716_v47, %v598_v43  ;;  %v3718_v50 = vpop.f32.mrb[2].mxu1 }
 0x322   :  { %v4046_v37 = vpop.f32.mrb[2].mxu0  ;;  %v4798_v51 = vadd.f32 %v4797_v25, %v4042_v24  ;;  %v3719_v53 = vpop.f32.mrb[3].mxu1 }
 0x323   :  { %v4047_v54 = vpop.f32.mrb[3].mxu0  ;;  %v4800_v55 = vadd.f32 %v4799_v36, %v4044_v48 }
 0x324   :  { %v4049_v57 = vmax.f32 %v4798_v51, 0.0 }
 0x325   :  { %v4050_v60 = vmax.f32 %v4800_v55, 0.0 }
 0x326   :  { %v4051_v38 = vpack.c.bf16 %v4049_v57, %v4049_v57 }
 0x327   :  { %v4052_v61 = vpack.c.bf16 %v4050_v60, %v4050_v60 }
 0x329   :  { %4220 = vmatprep.mubr.bf16.mxu1 %v4052_v61 }
 0x32a   :  { %4221 = vmatmul.mubr.bf16.vlgmr.msra.gmra.mrb[4].mxu1 %v4051_v38 }
 0x3fd   :  { %v4791_v42 = vpop.f32.mrb[4].mxu1 }
 0x3fe   :  { %v4792_v0 = vpop.f32.mrb[5].mxu1 }
 0x3ff   :  { %v4793_v1 = vadd.f32 %v4792_v0, %v4791_v42  ;;  %v4794_v2 = vpop.f32.mrb[6].mxu1 }
 0x400   :  { %v4795_v3 = vpop.f32.mrb[7].mxu1 }
 0x401   :  { %v4223_v4 = vadd.f32 %v4793_v1, %v4758_v39 }
 0x403   :  { %4228 = vst [vmem:[#allocation10] sm:$0x3] %v4223_v4 }
 0x404   :  { %5754 = shalt.err (!%p5751_p8)
}
 0x405   :  { %s5755_s1 = scalar_lea.hbm %s6048_s5, 32 }
 0x406   :  { %p5756_p9 = scmp.ne.s32.totalorder %s6048_s5, %s5755_s1  ;;  %p5759_p10 = scmp.lt.u32.totalorder %s5755_s1, %s6048_s5 }
 0x408   :  { %p5761_p11 = pnand %p5759_p10, %p5756_p9 }
 0x40a   :  { %5764 = shalt.err (!%p5761_p11)
}
 0x40b   :  { %4238 = dma.vmem_to_hbm [thread:$0]  %s4236_s25, 32, %s6048_s5, [#allocation4]  }
 0x40c   :  { %5771 = dma.done.wait [#allocation4], 32  }
 0x40d   :  { %5772 = vsyncadd [#allocation4], 4294967264 }
 0x40e   :  { %4242 = vsyncpa [#allocation3], 1 }
 0x40f   :  { %4243 = vsyncpa [#allocation6], 1 }
 0x410   :  { %4244 = vsyncpa [#allocation9], 1 }
 0x411   :  { %4245 = vsyncpa [#allocation4], 1 }

</bundles_post_ra>
